<compile_context>
chip_gen: v7x
topology: tpu7x:2x2x1
jax: 0.10.0
libtpu: 0.0.40
codegen_flags: <defaults>
</compile_context>

<pallas_src>
import functools

import jax
import jax.numpy as jnp
from jax.experimental import pallas as pl
from jax.experimental.pallas import tpu as pltpu


def seq2seq_attn_kernel(x_ref, wsc_ref, bsc_ref, uxw_ref, v_ref,
                        wcomb_ref, bgate_ref, wd_ref, bd_ref,
                        predict_ref, weight_ref, *, use_bf16):
    """One batch-block of the full forward pass.

    Refs (all VMEM resident; problem is tiny):
      x_ref      : (B, W, I)        input sequence block
      wsc_ref    : (I, 2H)          fused [ws_t | wc_t]  (context_s / context_c)
      bsc_ref    : (1, 2H)          fused [bs | bc]
      uxw_ref    : (I, 4H+I)        fused [wih_ctx | uatt_t]  (4H block first -> lane aligned)
      v_ref      : (1, I)           attention V^T
      wcomb_ref  : (2, 2H, 4H+I)    [0]=step-0 wcomb, [1]=folded wcomb (steps>=1)
      bgate_ref  : (2, 4H)          [0]=b_ih+b_hh, [1]=b_ih+b_hh+bd@wih_y
      wd_ref/bd  : (H, O), (1, O)   dense head
      predict_ref: (B, P, O)        predictions (batch-major)
      weight_ref : (B, P, W)        attention weights (batch-major)
    """
    x = x_ref[...]                                        # (B, W, I)
    B, Wn, I = x.shape
    H = wd_ref.shape[0]
    O = wd_ref.shape[1]
    P = predict_ref.shape[1]
    H4 = 4 * H
    f32 = jnp.float32
    mxu_dt = jnp.bfloat16 if use_bf16 else jnp.float32

    def mm(a, b):
        return jnp.dot(a.astype(mxu_dt), b.astype(mxu_dt),
                       preferred_element_type=f32)

    # ---- loop-invariant weight loads -------------------------------------
    wsc = wsc_ref[...]                                    # (I, 2H)
    bsc = bsc_ref[...]                                    # (1, 2H)
    uxw = uxw_ref[...]                                    # (I, 4H+I)
    wcomb0 = wcomb_ref[0]                                 # (2H, 4H+I) step 0
    wcomb1 = wcomb_ref[1]                                 # (2H, 4H+I) steps >= 1 (dense folded)
    wd = wd_ref[...]                                      # (H, O)
    bd = bd_ref[...]                                      # (1, O)

    # ---- initial hidden / cell state (fused tanh/sigmoid projection) -----
    xl = x[:, Wn - 1, :]                                  # (B, I)
    pre = mm(xl, wsc) + bsc                               # (B, 2H)
    s = jnp.tanh(pre[:, :H])                              # (B, H)
    c = jax.nn.sigmoid(pre[:, H:])                        # (B, H)

    # ---- loop-invariant x projections, one fused matmul -------------------
    #   XW = x @ wih_ctx : per-step context contribution to the gates
    #   Uk = x @ U^T     : attention key projection
    xproj = mm(x.reshape(B * Wn, I), uxw)                 # (B*W, 4H+I)
    XW = xproj[:, :H4].reshape(B, Wn, H4)                 # (B, W, 4H)
    Uk = xproj[:, H4:].reshape(B, Wn, I)                  # (B, W, I)

    # ---- hoisted broadcasts (not CSE'd if left inside the unrolled loop) --
    v_b = jnp.broadcast_to(v_ref[...].reshape(1, 1, I), (B, Wn, I))
    bg0 = jnp.broadcast_to(bgate_ref[0:1, :], (B, H4))
    bg1 = jnp.broadcast_to(bgate_ref[1:2, :], (B, H4))
    wcomb0_m = wcomb0.astype(mxu_dt)
    wcomb1_m = wcomb1.astype(mxu_dt)

    # ---- recurrence: fully unrolled, step 0 peeled (y_0 = 0) --------------
    alphas = []
    s_states = []
    for step in range(P):
        w_use = wcomb0_m if step == 0 else wcomb1_m
        b_use = bg0 if step == 0 else bg1

        # single fused MXU op per step:
        #   [s | c] @ wcomb -> [ s @ (whh [+ wd@wih_y])  |  q @ W_att^T ]
        sc = jnp.concatenate([s, c], axis=1)              # (B, 2H)
        comb = jnp.dot(sc.astype(mxu_dt), w_use,
                       preferred_element_type=f32)        # (B, 4H+I)
        s_whh = comb[:, :H4]                              # (B, 4H)
        Wq = comb[:, H4:]                                 # (B, I)

        # AdditiveScore attention: softmax(V^T tanh(W q + U k))
        # (no max-subtraction: |score| <= sum|v|, asserted at prep time)
        t = jnp.tanh(Wq[:, None, :] + Uk)                 # (B, W, I)
        score = jnp.sum(t * v_b, axis=-1)                 # (B, W)
        e = jnp.exp(score)
        inv = pl.reciprocal(jnp.sum(e, axis=-1, keepdims=True), approx=True)
        alpha = e * inv                                   # (B, W)
        alphas.append(alpha)

        # context contribution to the gates, no per-step matmul
        ctx_g = jnp.sum(alpha[:, :, None] * XW, axis=1)   # (B, 4H)

        # single-step LSTM cell (PyTorch gate order i,f,g,o); dense head and
        # y->gate term are folded into s_whh / b_use for step >= 1.
        gates = s_whh + ctx_g + b_use                     # (B, 4H)
        sig = jax.nn.sigmoid(gates)
        tnh = jnp.tanh(gates)
        i_g = sig[:, 0 * H:1 * H]
        f_g = sig[:, 1 * H:2 * H]
        g_g = tnh[:, 2 * H:3 * H]
        o_g = sig[:, 3 * H:4 * H]
        c = f_g * c + i_g * g_g
        s = o_g * jnp.tanh(c)
        s_states.append(s)

    # ---- dense head: one matmul over all P states, one store each ---------
    s_all = jnp.stack(s_states, axis=1)                   # (B, P, H)
    y_all = mm(s_all.reshape(B * P, H), wd) + bd          # (B*P, O)
    predict_ref[...] = y_all.reshape(B, P, O)
    weight_ref[...] = jnp.stack(alphas, axis=1)           # (B, P, W)


def prepare_params(p):
    """One-time (eager) parameter packing / algebraic fusion."""
    I = p["uatt_t"].shape[0]
    H = p["ws_t"].shape[1]
    O = p["wd_t"].shape[1]
    H4 = 4 * H

    # Fused initial-state projection: x_last @ [ws_t | wc_t] + [bs | bc]
    w_sc = jnp.concatenate([p["ws_t"], p["wc_t"]], axis=1)        # (I, 2H)
    b_sc = jnp.concatenate([p["bs"], p["bc"]], axis=1)            # (1, 2H)

    # Split LSTM input weight into y-rows and context-rows.
    wih_y = p["wih_t"][:O, :]                                     # (O, 4H)
    wih_ctx = p["wih_t"][O:, :]                                   # (I, 4H)

    # Fused loop-invariant x projection: [wih_ctx | uatt_t] (4H block first).
    u_xw = jnp.concatenate([wih_ctx, p["uatt_t"]], axis=1)        # (I, 4H+I)

    # Combined per-step matmul weight:
    #   [s | c] @ wcomb = [ gate-term | q @ W_att^T ]
    # wcomb[0]: step 0   (y_0 = 0)       -> gate block = whh_t
    # wcomb[1]: steps>=1 (dense folded)  -> gate block = whh_t + wd_t @ wih_y
    def build_wcomb(gate_block):
        w = jnp.zeros((2 * H, H4 + I), jnp.float32)
        w = w.at[:H, :H4].set(gate_block)
        w = w.at[:, H4:].set(p["watt_t"])
        return w

    whh_fold = p["whh_t"] + p["wd_t"] @ wih_y
    w_comb = jnp.stack([build_wcomb(p["whh_t"]), build_wcomb(whh_fold)], axis=0)

    b_gate0 = p["bih"] + p["bhh"]
    b_gate1 = b_gate0 + p["bd"] @ wih_y
    b_gate = jnp.concatenate([b_gate0, b_gate1], axis=0)          # (2, 4H)

    # Safety for dropping the softmax max-subtraction: |score| <= sum|v|
    # (tanh is bounded by 1), so exp() cannot overflow in f32.
    score_bound = float(jnp.sum(jnp.abs(p["v_row"])))
    assert score_bound < 60.0, (
        "attention score bound too large to drop the softmax max-subtraction")

    return {"w_sc": w_sc, "b_sc": b_sc, "u_xw": u_xw, "v_row": p["v_row"],
            "w_comb": w_comb, "b_gate": b_gate,
            "wd_t": p["wd_t"], "bd": p["bd"]}


@functools.partial(jax.jit, static_argnames=("plength", "block_b", "use_bf16"))
def seq2seq_with_attention(x, prep, plength, block_b=8, use_bf16=False):
    """Jitted wrapper: pads batch to sublane-dense multiples of `block_b` and
    runs one pallas_call with a batch-parallel grid (uses both TCs on v7x when
    the batch spans multiple blocks)."""
    B, Wn, I = x.shape
    H, O = prep["wd_t"].shape

    Bp = ((B + block_b - 1) // block_b) * block_b
    if Bp != B:
        x = jnp.concatenate([x, jnp.zeros((Bp - B, Wn, I), x.dtype)], axis=0)
    nb = Bp // block_b

    kernel = functools.partial(seq2seq_attn_kernel, use_bf16=use_bf16)

    def full_spec(a):
        return pl.BlockSpec(a.shape, lambda b, _nd=a.ndim: (0,) * _nd)

    predict, weight = pl.pallas_call(
        kernel,
        out_shape=(jax.ShapeDtypeStruct((Bp, plength, O), jnp.float32),
                   jax.ShapeDtypeStruct((Bp, plength, Wn), jnp.float32)),
        grid=(nb,),
        in_specs=[
            pl.BlockSpec((block_b, Wn, I), lambda b: (b, 0, 0)),
            full_spec(prep["w_sc"]), full_spec(prep["b_sc"]),
            full_spec(prep["u_xw"]), full_spec(prep["v_row"]),
            full_spec(prep["w_comb"]), full_spec(prep["b_gate"]),
            full_spec(prep["wd_t"]), full_spec(prep["bd"]),
        ],
        out_specs=(pl.BlockSpec((block_b, plength, O), lambda b: (b, 0, 0)),
                   pl.BlockSpec((block_b, plength, Wn), lambda b: (b, 0, 0))),
        compiler_params=pltpu.CompilerParams(
            dimension_semantics=("parallel",)),
    )(x, prep["w_sc"], prep["b_sc"], prep["u_xw"], prep["v_row"],
      prep["w_comb"], prep["b_gate"], prep["wd_t"], prep["bd"])

    return predict[:B], weight[:B]


def reference_forward(x, p, plength):
    """Pure-JAX mirror of the PyTorch forward (correctness oracle)."""
    B, Wn, I = x.shape
    H = p["ws_t"].shape[1]
    O = p["wd_t"].shape[1]
    xl = x[:, -1, :]
    s = jnp.tanh(xl @ p["ws_t"] + p["bs"])
    c = jax.nn.sigmoid(xl @ p["wc_t"] + p["bc"])
    y = jnp.zeros((B, O), jnp.float32)
    Uk = jnp.einsum("bwj,ji->bwi", x, p["uatt_t"])
    preds, weights = [], []
    for _ in range(plength):
        q = jnp.concatenate([s, c], axis=1)
        Wq = q @ p["watt_t"]
        t = jnp.tanh(Wq[:, None, :] + Uk)
        score = jnp.sum(t * p["v_row"][None], axis=-1)
        alpha = jax.nn.softmax(score, axis=-1)
        weights.append(alpha)
        context = jnp.einsum("bw,bwi->bi", alpha, x)
        lstm_in = jnp.concatenate([y, context], axis=1)
        gates = lstm_in @ p["wih_t"] + s @ p["whh_t"] + p["bih"] + p["bhh"]
        i_g = jax.nn.sigmoid(gates[:, :H])
        f_g = jax.nn.sigmoid(gates[:, H:2 * H])
        g_g = jnp.tanh(gates[:, 2 * H:3 * H])
        o_g = jax.nn.sigmoid(gates[:, 3 * H:])
        c = f_g * c + i_g * g_g
        s = o_g * jnp.tanh(c)
        y = s @ p["wd_t"] + p["bd"]
        preds.append(y)
    return jnp.stack(preds, axis=1), jnp.stack(weights, axis=1)


def make_params(key, input_size, hidden, output_size):
    """Deterministic synthetic parameters matching the module's __init__ shapes."""
    ks = jax.random.split(key, 14)
    I, H, O = input_size, hidden, output_size
    scale = 0.1
    # AdditiveScore: V (I,1), W (I,2H), U (I,I) -> stored transposed
    v = jax.random.normal(ks[0], (I, 1), jnp.float32)
    w_att = jax.random.normal(ks[1], (I, 2 * H), jnp.float32) * scale
    u_att = jax.random.normal(ks[2], (I, I), jnp.float32) * scale
    # LSTM: weight_ih (4H, O+I) [input = cat(y, context)], weight_hh (4H, H)
    w_ih = jax.random.normal(ks[3], (4 * H, I + O), jnp.float32) * scale
    w_hh = jax.random.normal(ks[4], (4 * H, H), jnp.float32) * scale
    b_ih = jax.random.normal(ks[5], (4 * H,), jnp.float32) * scale
    b_hh = jax.random.normal(ks[6], (4 * H,), jnp.float32) * scale
    # dense: (O, H) + (O,)
    w_d = jax.random.normal(ks[7], (O, H), jnp.float32) * scale
    b_d = jax.random.normal(ks[8], (O,), jnp.float32) * scale
    # context_s / context_c: (H, I) + (H,)
    w_s = jax.random.normal(ks[9], (H, I), jnp.float32) * scale
    b_s = jax.random.normal(ks[10], (H,), jnp.float32) * scale
    w_c = jax.random.normal(ks[11], (H, I), jnp.float32) * scale
    b_c = jax.random.normal(ks[12], (H,), jnp.float32) * scale
    return {
        "v_row": v.T,                       # (1, I)
        "watt_t": w_att.T,                  # (2H, I)
        "uatt_t": u_att.T,                  # (I, I)
        "wih_t": w_ih.T,                    # (O+I, 4H)
        "whh_t": w_hh.T,                    # (H, 4H)
        "bih": b_ih[None, :],               # (1, 4H)
        "bhh": b_hh[None, :],               # (1, 4H)
        "wd_t": w_d.T,                      # (H, O)
        "bd": b_d[None, :],                 # (1, O)
        "ws_t": w_s.T,                      # (I, H)
        "bs": b_s[None, :],                 # (1, H)
        "wc_t": w_c.T,                      # (I, H)
        "bc": b_c[None, :],                 # (1, H)
    }


if __name__ == "__main__":
    key = jax.random.PRNGKey(0)
    k_x, k_p = jax.random.split(key)

    # B chosen as a multiple of 8 (sublane-dense tiles, per perf feedback).
    B, window, input_size, hidden, output_size, plength = 8, 8, 8, 32, 4, 6

    x = jax.random.normal(k_x, (B, window, input_size), jnp.float32)
    params = make_params(k_p, input_size, hidden, output_size)
    prep = prepare_params(params)            # one-time fused weights

    # f32 MXU path (exact semantics; approx reciprocal only).
    predict_y, weight = seq2seq_with_attention(x, prep, plength=plength)
    jax.block_until_ready((predict_y, weight))
    assert predict_y.shape == (B, plength, output_size)
    assert weight.shape == (B, plength, window)

    ref_pred, ref_weight = reference_forward(x, params, plength)
    assert jnp.allclose(predict_y, ref_pred, atol=2e-3, rtol=2e-3), "predict_y mismatch"
    assert jnp.allclose(weight, ref_weight, atol=2e-3, rtol=2e-3), "attention weight mismatch"

    # Padding path: small non-multiple-of-8 batch (module's typical usage).
    pred_small, w_small = seq2seq_with_attention(x[:2], prep, plength=plength)
    jax.block_until_ready((pred_small, w_small))
    assert jnp.allclose(pred_small, ref_pred[:2], atol=2e-3, rtol=2e-3), "padded-batch mismatch"
    assert jnp.allclose(w_small, ref_weight[:2], atol=2e-3, rtol=2e-3), "padded-batch weight mismatch"

    # bf16 MXU-operand fast path (v6e/v7x); f32 accumulation, looser tolerance.
    pred_bf16, w_bf16 = seq2seq_with_attention(x, prep, plength=plength, use_bf16=True)
    jax.block_until_ready((pred_bf16, w_bf16))
    assert jnp.allclose(pred_bf16, ref_pred, atol=3e-2, rtol=3e-2), "bf16 predict_y mismatch"
    assert jnp.allclose(w_bf16, ref_weight, atol=3e-2, rtol=3e-2), "bf16 weight mismatch"

    print("KERNEL_OK")
</pallas_src>

<mosaic_0001>
module attributes {stable_mosaic.version = 11 : i64} {
  func.func @seq2seq_attn_kernel(%arg0: i32, %arg1: memref<8x8x8xf32, #tpu.memory_space<vmem>>, %arg2: memref<8x64xf32, #tpu.memory_space<vmem>>, %arg3: memref<1x64xf32, #tpu.memory_space<vmem>>, %arg4: memref<8x136xf32, #tpu.memory_space<vmem>>, %arg5: memref<1x8xf32, #tpu.memory_space<vmem>>, %arg6: memref<2x64x136xf32, #tpu.memory_space<vmem>>, %arg7: memref<2x128xf32, #tpu.memory_space<vmem>>, %arg8: memref<32x4xf32, #tpu.memory_space<vmem>>, %arg9: memref<1x4xf32, #tpu.memory_space<vmem>>, %arg10: memref<8x6x4xf32, #tpu.memory_space<vmem>>, %arg11: memref<8x6x8xf32, #tpu.memory_space<vmem>>) attributes {dimension_semantics = [#tpu.dimension_semantics<parallel>], iteration_bounds = array<i64: 1>, scalar_prefetch = 0 : i64, scratch_operands = 0 : i64, tpu.core_type = #tpu.core_type<tc>, window_params = [{transform_indices = @transform_0, window_bounds = array<i64: 8, 8, 8>}, {pipeline_mode = #tpu.pipeline_mode<synchronous>, transform_indices = @transform_1, window_bounds = array<i64: 8, 64>}, {pipeline_mode = #tpu.pipeline_mode<synchronous>, transform_indices = @transform_2, window_bounds = array<i64: 1, 64>}, {pipeline_mode = #tpu.pipeline_mode<synchronous>, transform_indices = @transform_3, window_bounds = array<i64: 8, 136>}, {pipeline_mode = #tpu.pipeline_mode<synchronous>, transform_indices = @transform_4, window_bounds = array<i64: 1, 8>}, {pipeline_mode = #tpu.pipeline_mode<synchronous>, transform_indices = @transform_5, window_bounds = array<i64: 2, 64, 136>}, {pipeline_mode = #tpu.pipeline_mode<synchronous>, transform_indices = @transform_6, window_bounds = array<i64: 2, 128>}, {pipeline_mode = #tpu.pipeline_mode<synchronous>, transform_indices = @transform_7, window_bounds = array<i64: 32, 4>}, {pipeline_mode = #tpu.pipeline_mode<synchronous>, transform_indices = @transform_8, window_bounds = array<i64: 1, 4>}, {transform_indices = @transform_9, window_bounds = array<i64: 8, 6, 4>}, {transform_indices = @transform_10, window_bounds = array<i64: 8, 6, 8>}]} {
    %c0 = arith.constant 0 : index
    %c0_0 = arith.constant 0 : index
    %c0_1 = arith.constant 0 : index
    %0 = vector.load %arg1[%c0, %c0_0, %c0_1] : memref<8x8x8xf32, #tpu.memory_space<vmem>>, vector<8x8x8xf32>
    %c0_2 = arith.constant 0 : index
    %c0_3 = arith.constant 0 : index
    %1 = vector.load %arg2[%c0_2, %c0_3] : memref<8x64xf32, #tpu.memory_space<vmem>>, vector<8x64xf32>
    %c0_4 = arith.constant 0 : index
    %c0_5 = arith.constant 0 : index
    %2 = vector.load %arg3[%c0_4, %c0_5] : memref<1x64xf32, #tpu.memory_space<vmem>>, vector<1x64xf32>
    %c0_6 = arith.constant 0 : index
    %c0_7 = arith.constant 0 : index
    %3 = vector.load %arg4[%c0_6, %c0_7] : memref<8x136xf32, #tpu.memory_space<vmem>>, vector<8x136xf32>
    %c0_8 = arith.constant 0 : index
    %c0_9 = arith.constant 0 : index
    %c0_10 = arith.constant 0 : index
    %4 = vector.load %arg6[%c0_8, %c0_9, %c0_10] : memref<2x64x136xf32, #tpu.memory_space<vmem>>, vector<1x64x136xf32>
    %5 = vector.shape_cast %4 : vector<1x64x136xf32> to vector<64x136xf32>
    %c1 = arith.constant 1 : index
    %c0_11 = arith.constant 0 : index
    %c0_12 = arith.constant 0 : index
    %6 = vector.load %arg6[%c1, %c0_11, %c0_12] : memref<2x64x136xf32, #tpu.memory_space<vmem>>, vector<1x64x136xf32>
    %7 = vector.shape_cast %6 : vector<1x64x136xf32> to vector<64x136xf32>
    %c0_13 = arith.constant 0 : index
    %c0_14 = arith.constant 0 : index
    %8 = vector.load %arg8[%c0_13, %c0_14] : memref<32x4xf32, #tpu.memory_space<vmem>>, vector<32x4xf32>
    %c0_15 = arith.constant 0 : index
    %c0_16 = arith.constant 0 : index
    %9 = vector.load %arg9[%c0_15, %c0_16] : memref<1x4xf32, #tpu.memory_space<vmem>>, vector<1x4xf32>
    %10 = vector.extract_strided_slice %0 {offsets = [0, 7, 0], sizes = [8, 1, 8], strides = [1, 1, 1]} : vector<8x8x8xf32> to vector<8x1x8xf32>
    %11 = vector.shape_cast %10 : vector<8x1x8xf32> to vector<8x8xf32>
    %cst = arith.constant dense<0.000000e+00> : vector<8x64xf32>
    %12 = tpu.matmul %11, %1, %cst {dimension_numbers = #tpu.dot_dimension_numbers<[1], [0], [0], [1], [0, 0, 1, 1], [], []>} : vector<8x8xf32>, vector<8x64xf32>, vector<8x64xf32> -> vector<8x64xf32>
    %13 = vector.broadcast %2 : vector<1x64xf32> to vector<8x64xf32>
    %14 = arith.addf %12, %13 : vector<8x64xf32>
    %15 = vector.extract_strided_slice %14 {offsets = [0, 0], sizes = [8, 32], strides = [1, 1]} : vector<8x64xf32> to vector<8x32xf32>
    %16 = math.tanh %15 : vector<8x32xf32>
    %17 = vector.extract_strided_slice %14 {offsets = [0, 32], sizes = [8, 32], strides = [1, 1]} : vector<8x64xf32> to vector<8x32xf32>
    %18 = arith.negf %17 : vector<8x32xf32>
    %19 = math.exp %18 : vector<8x32xf32>
    %cst_17 = arith.constant 1.000000e+00 : f32
    %20 = vector.broadcast %cst_17 : f32 to vector<8x32xf32>
    %21 = arith.addf %20, %19 : vector<8x32xf32>
    %22 = arith.divf %20, %21 : vector<8x32xf32>
    %23 = vector.shape_cast %0 : vector<8x8x8xf32> to vector<64x8xf32>
    %cst_18 = arith.constant dense<0.000000e+00> : vector<64x136xf32>
    %24 = tpu.matmul %23, %3, %cst_18 {dimension_numbers = #tpu.dot_dimension_numbers<[1], [0], [0], [1], [0, 0, 1, 1], [], []>} : vector<64x8xf32>, vector<8x136xf32>, vector<64x136xf32> -> vector<64x136xf32>
    %25 = vector.extract_strided_slice %24 {offsets = [0, 0], sizes = [64, 128], strides = [1, 1]} : vector<64x136xf32> to vector<64x128xf32>
    %26 = vector.shape_cast %25 : vector<64x128xf32> to vector<8x8x128xf32>
    %27 = vector.extract_strided_slice %24 {offsets = [0, 128], sizes = [64, 8], strides = [1, 1]} : vector<64x136xf32> to vector<64x8xf32>
    %28 = vector.shape_cast %27 : vector<64x8xf32> to vector<8x8x8xf32>
    %c0_19 = arith.constant 0 : index
    %c0_20 = arith.constant 0 : index
    %29 = vector.load %arg5[%c0_19, %c0_20] : memref<1x8xf32, #tpu.memory_space<vmem>>, vector<1x8xf32>
    %30 = vector.shape_cast %29 : vector<1x8xf32> to vector<1x1x8xf32>
    %31 = vector.shape_cast %30 : vector<1x1x8xf32> to vector<1x1x8xf32>
    %32 = vector.broadcast %31 : vector<1x1x8xf32> to vector<8x8x8xf32>
    %c0_21 = arith.constant 0 : index
    %c0_22 = arith.constant 0 : index
    %33 = vector.load %arg7[%c0_21, %c0_22] : memref<2x128xf32, #tpu.memory_space<vmem>>, vector<1x128xf32>
    %34 = vector.shape_cast %33 : vector<1x128xf32> to vector<1x128xf32>
    %35 = vector.broadcast %34 : vector<1x128xf32> to vector<8x128xf32>
    %c1_23 = arith.constant 1 : index
    %c0_24 = arith.constant 0 : index
    %36 = vector.load %arg7[%c1_23, %c0_24] : memref<2x128xf32, #tpu.memory_space<vmem>>, vector<1x128xf32>
    %37 = vector.shape_cast %36 : vector<1x128xf32> to vector<1x128xf32>
    %38 = vector.broadcast %37 : vector<1x128xf32> to vector<8x128xf32>
    %39 = tpu.concatenate %16, %22 in 1 : vector<8x32xf32>, vector<8x32xf32> -> vector<8x64xf32>
    %cst_25 = arith.constant dense<0.000000e+00> : vector<8x136xf32>
    %40 = tpu.matmul %39, %5, %cst_25 {dimension_numbers = #tpu.dot_dimension_numbers<[1], [0], [0], [1], [0, 0, 1, 1], [], []>} : vector<8x64xf32>, vector<64x136xf32>, vector<8x136xf32> -> vector<8x136xf32>
    %41 = vector.extract_strided_slice %40 {offsets = [0, 0], sizes = [8, 128], strides = [1, 1]} : vector<8x136xf32> to vector<8x128xf32>
    %42 = vector.extract_strided_slice %40 {offsets = [0, 128], sizes = [8, 8], strides = [1, 1]} : vector<8x136xf32> to vector<8x8xf32>
    %43 = vector.shape_cast %42 : vector<8x8xf32> to vector<8x1x8xf32>
    %44 = vector.broadcast %43 : vector<8x1x8xf32> to vector<8x8x8xf32>
    %45 = arith.addf %44, %28 : vector<8x8x8xf32>
    %46 = math.tanh %45 : vector<8x8x8xf32>
    %47 = arith.mulf %46, %32 : vector<8x8x8xf32>
    %cst_26 = arith.constant dense<0.000000e+00> : vector<8x8xf32>
    %48 = vector.multi_reduction <add>, %47, %cst_26 [2] : vector<8x8x8xf32> to vector<8x8xf32>
    %49 = math.exp %48 : vector<8x8xf32>
    %cst_27 = arith.constant dense<0.000000e+00> : vector<8xf32>
    %50 = vector.multi_reduction <add>, %49, %cst_27 [1] : vector<8x8xf32> to vector<8xf32>
    %51 = vector.shape_cast %50 : vector<8xf32> to vector<8x1xf32>
    %52 = tpu.reciprocal %51 {approx = true} : vector<8x1xf32> -> vector<8x1xf32>
    %53 = vector.broadcast %52 : vector<8x1xf32> to vector<8x8xf32>
    %54 = arith.mulf %49, %53 : vector<8x8xf32>
    %55 = vector.shape_cast %54 : vector<8x8xf32> to vector<8x8x1xf32>
    %56 = vector.broadcast %55 : vector<8x8x1xf32> to vector<8x8x128xf32>
    %57 = arith.mulf %56, %26 : vector<8x8x128xf32>
    %cst_28 = arith.constant dense<0.000000e+00> : vector<8x128xf32>
    %58 = vector.multi_reduction <add>, %57, %cst_28 [1] : vector<8x8x128xf32> to vector<8x128xf32>
    %59 = arith.addf %41, %58 : vector<8x128xf32>
    %60 = arith.addf %59, %35 : vector<8x128xf32>
    %61 = arith.negf %60 : vector<8x128xf32>
    %62 = math.exp %61 : vector<8x128xf32>
    %cst_29 = arith.constant 1.000000e+00 : f32
    %63 = vector.broadcast %cst_29 : f32 to vector<8x128xf32>
    %64 = arith.addf %63, %62 : vector<8x128xf32>
    %65 = arith.divf %63, %64 : vector<8x128xf32>
    %66 = math.tanh %60 : vector<8x128xf32>
    %67 = vector.extract_strided_slice %65 {offsets = [0, 0], sizes = [8, 32], strides = [1, 1]} : vector<8x128xf32> to vector<8x32xf32>
    %68 = vector.extract_strided_slice %65 {offsets = [0, 32], sizes = [8, 32], strides = [1, 1]} : vector<8x128xf32> to vector<8x32xf32>
    %69 = vector.extract_strided_slice %66 {offsets = [0, 64], sizes = [8, 32], strides = [1, 1]} : vector<8x128xf32> to vector<8x32xf32>
    %70 = vector.extract_strided_slice %65 {offsets = [0, 96], sizes = [8, 32], strides = [1, 1]} : vector<8x128xf32> to vector<8x32xf32>
    %71 = arith.mulf %68, %22 : vector<8x32xf32>
    %72 = arith.mulf %67, %69 : vector<8x32xf32>
    %73 = arith.addf %71, %72 : vector<8x32xf32>
    %74 = math.tanh %73 : vector<8x32xf32>
    %75 = arith.mulf %70, %74 : vector<8x32xf32>
    %76 = tpu.concatenate %75, %73 in 1 : vector<8x32xf32>, vector<8x32xf32> -> vector<8x64xf32>
    %cst_30 = arith.constant dense<0.000000e+00> : vector<8x136xf32>
    %77 = tpu.matmul %76, %7, %cst_30 {dimension_numbers = #tpu.dot_dimension_numbers<[1], [0], [0], [1], [0, 0, 1, 1], [], []>} : vector<8x64xf32>, vector<64x136xf32>, vector<8x136xf32> -> vector<8x136xf32>
    %78 = vector.extract_strided_slice %77 {offsets = [0, 0], sizes = [8, 128], strides = [1, 1]} : vector<8x136xf32> to vector<8x128xf32>
    %79 = vector.extract_strided_slice %77 {offsets = [0, 128], sizes = [8, 8], strides = [1, 1]} : vector<8x136xf32> to vector<8x8xf32>
    %80 = vector.shape_cast %79 : vector<8x8xf32> to vector<8x1x8xf32>
    %81 = vector.broadcast %80 : vector<8x1x8xf32> to vector<8x8x8xf32>
    %82 = arith.addf %81, %28 : vector<8x8x8xf32>
    %83 = math.tanh %82 : vector<8x8x8xf32>
    %84 = arith.mulf %83, %32 : vector<8x8x8xf32>
    %cst_31 = arith.constant dense<0.000000e+00> : vector<8x8xf32>
    %85 = vector.multi_reduction <add>, %84, %cst_31 [2] : vector<8x8x8xf32> to vector<8x8xf32>
    %86 = math.exp %85 : vector<8x8xf32>
    %cst_32 = arith.constant dense<0.000000e+00> : vector<8xf32>
    %87 = vector.multi_reduction <add>, %86, %cst_32 [1] : vector<8x8xf32> to vector<8xf32>
    %88 = vector.shape_cast %87 : vector<8xf32> to vector<8x1xf32>
    %89 = tpu.reciprocal %88 {approx = true} : vector<8x1xf32> -> vector<8x1xf32>
    %90 = vector.broadcast %89 : vector<8x1xf32> to vector<8x8xf32>
    %91 = arith.mulf %86, %90 : vector<8x8xf32>
    %92 = vector.shape_cast %91 : vector<8x8xf32> to vector<8x8x1xf32>
    %93 = vector.broadcast %92 : vector<8x8x1xf32> to vector<8x8x128xf32>
    %94 = arith.mulf %93, %26 : vector<8x8x128xf32>
    %cst_33 = arith.constant dense<0.000000e+00> : vector<8x128xf32>
    %95 = vector.multi_reduction <add>, %94, %cst_33 [1] : vector<8x8x128xf32> to vector<8x128xf32>
    %96 = arith.addf %78, %95 : vector<8x128xf32>
    %97 = arith.addf %96, %38 : vector<8x128xf32>
    %98 = arith.negf %97 : vector<8x128xf32>
    %99 = math.exp %98 : vector<8x128xf32>
    %cst_34 = arith.constant 1.000000e+00 : f32
    %100 = vector.broadcast %cst_34 : f32 to vector<8x128xf32>
    %101 = arith.addf %100, %99 : vector<8x128xf32>
    %102 = arith.divf %100, %101 : vector<8x128xf32>
    %103 = math.tanh %97 : vector<8x128xf32>
    %104 = vector.extract_strided_slice %102 {offsets = [0, 0], sizes = [8, 32], strides = [1, 1]} : vector<8x128xf32> to vector<8x32xf32>
    %105 = vector.extract_strided_slice %102 {offsets = [0, 32], sizes = [8, 32], strides = [1, 1]} : vector<8x128xf32> to vector<8x32xf32>
    %106 = vector.extract_strided_slice %103 {offsets = [0, 64], sizes = [8, 32], strides = [1, 1]} : vector<8x128xf32> to vector<8x32xf32>
    %107 = vector.extract_strided_slice %102 {offsets = [0, 96], sizes = [8, 32], strides = [1, 1]} : vector<8x128xf32> to vector<8x32xf32>
    %108 = arith.mulf %105, %73 : vector<8x32xf32>
    %109 = arith.mulf %104, %106 : vector<8x32xf32>
    %110 = arith.addf %108, %109 : vector<8x32xf32>
    %111 = math.tanh %110 : vector<8x32xf32>
    %112 = arith.mulf %107, %111 : vector<8x32xf32>
    %113 = tpu.concatenate %112, %110 in 1 : vector<8x32xf32>, vector<8x32xf32> -> vector<8x64xf32>
    %cst_35 = arith.constant dense<0.000000e+00> : vector<8x136xf32>
    %114 = tpu.matmul %113, %7, %cst_35 {dimension_numbers = #tpu.dot_dimension_numbers<[1], [0], [0], [1], [0, 0, 1, 1], [], []>} : vector<8x64xf32>, vector<64x136xf32>, vector<8x136xf32> -> vector<8x136xf32>
    %115 = vector.extract_strided_slice %114 {offsets = [0, 0], sizes = [8, 128], strides = [1, 1]} : vector<8x136xf32> to vector<8x128xf32>
    %116 = vector.extract_strided_slice %114 {offsets = [0, 128], sizes = [8, 8], strides = [1, 1]} : vector<8x136xf32> to vector<8x8xf32>
    %117 = vector.shape_cast %116 : vector<8x8xf32> to vector<8x1x8xf32>
    %118 = vector.broadcast %117 : vector<8x1x8xf32> to vector<8x8x8xf32>
    %119 = arith.addf %118, %28 : vector<8x8x8xf32>
    %120 = math.tanh %119 : vector<8x8x8xf32>
    %121 = arith.mulf %120, %32 : vector<8x8x8xf32>
    %cst_36 = arith.constant dense<0.000000e+00> : vector<8x8xf32>
    %122 = vector.multi_reduction <add>, %121, %cst_36 [2] : vector<8x8x8xf32> to vector<8x8xf32>
    %123 = math.exp %122 : vector<8x8xf32>
    %cst_37 = arith.constant dense<0.000000e+00> : vector<8xf32>
    %124 = vector.multi_reduction <add>, %123, %cst_37 [1] : vector<8x8xf32> to vector<8xf32>
    %125 = vector.shape_cast %124 : vector<8xf32> to vector<8x1xf32>
    %126 = tpu.reciprocal %125 {approx = true} : vector<8x1xf32> -> vector<8x1xf32>
    %127 = vector.broadcast %126 : vector<8x1xf32> to vector<8x8xf32>
    %128 = arith.mulf %123, %127 : vector<8x8xf32>
    %129 = vector.shape_cast %128 : vector<8x8xf32> to vector<8x8x1xf32>
    %130 = vector.broadcast %129 : vector<8x8x1xf32> to vector<8x8x128xf32>
    %131 = arith.mulf %130, %26 : vector<8x8x128xf32>
    %cst_38 = arith.constant dense<0.000000e+00> : vector<8x128xf32>
    %132 = vector.multi_reduction <add>, %131, %cst_38 [1] : vector<8x8x128xf32> to vector<8x128xf32>
    %133 = arith.addf %115, %132 : vector<8x128xf32>
    %134 = arith.addf %133, %38 : vector<8x128xf32>
    %135 = arith.negf %134 : vector<8x128xf32>
    %136 = math.exp %135 : vector<8x128xf32>
    %cst_39 = arith.constant 1.000000e+00 : f32
    %137 = vector.broadcast %cst_39 : f32 to vector<8x128xf32>
    %138 = arith.addf %137, %136 : vector<8x128xf32>
    %139 = arith.divf %137, %138 : vector<8x128xf32>
    %140 = math.tanh %134 : vector<8x128xf32>
    %141 = vector.extract_strided_slice %139 {offsets = [0, 0], sizes = [8, 32], strides = [1, 1]} : vector<8x128xf32> to vector<8x32xf32>
    %142 = vector.extract_strided_slice %139 {offsets = [0, 32], sizes = [8, 32], strides = [1, 1]} : vector<8x128xf32> to vector<8x32xf32>
    %143 = vector.extract_strided_slice %140 {offsets = [0, 64], sizes = [8, 32], strides = [1, 1]} : vector<8x128xf32> to vector<8x32xf32>
    %144 = vector.extract_strided_slice %139 {offsets = [0, 96], sizes = [8, 32], strides = [1, 1]} : vector<8x128xf32> to vector<8x32xf32>
    %145 = arith.mulf %142, %110 : vector<8x32xf32>
    %146 = arith.mulf %141, %143 : vector<8x32xf32>
    %147 = arith.addf %145, %146 : vector<8x32xf32>
    %148 = math.tanh %147 : vector<8x32xf32>
    %149 = arith.mulf %144, %148 : vector<8x32xf32>
    %150 = tpu.concatenate %149, %147 in 1 : vector<8x32xf32>, vector<8x32xf32> -> vector<8x64xf32>
    %cst_40 = arith.constant dense<0.000000e+00> : vector<8x136xf32>
    %151 = tpu.matmul %150, %7, %cst_40 {dimension_numbers = #tpu.dot_dimension_numbers<[1], [0], [0], [1], [0, 0, 1, 1], [], []>} : vector<8x64xf32>, vector<64x136xf32>, vector<8x136xf32> -> vector<8x136xf32>
    %152 = vector.extract_strided_slice %151 {offsets = [0, 0], sizes = [8, 128], strides = [1, 1]} : vector<8x136xf32> to vector<8x128xf32>
    %153 = vector.extract_strided_slice %151 {offsets = [0, 128], sizes = [8, 8], strides = [1, 1]} : vector<8x136xf32> to vector<8x8xf32>
    %154 = vector.shape_cast %153 : vector<8x8xf32> to vector<8x1x8xf32>
    %155 = vector.broadcast %154 : vector<8x1x8xf32> to vector<8x8x8xf32>
    %156 = arith.addf %155, %28 : vector<8x8x8xf32>
    %157 = math.tanh %156 : vector<8x8x8xf32>
    %158 = arith.mulf %157, %32 : vector<8x8x8xf32>
    %cst_41 = arith.constant dense<0.000000e+00> : vector<8x8xf32>
    %159 = vector.multi_reduction <add>, %158, %cst_41 [2] : vector<8x8x8xf32> to vector<8x8xf32>
    %160 = math.exp %159 : vector<8x8xf32>
    %cst_42 = arith.constant dense<0.000000e+00> : vector<8xf32>
    %161 = vector.multi_reduction <add>, %160, %cst_42 [1] : vector<8x8xf32> to vector<8xf32>
    %162 = vector.shape_cast %161 : vector<8xf32> to vector<8x1xf32>
    %163 = tpu.reciprocal %162 {approx = true} : vector<8x1xf32> -> vector<8x1xf32>
    %164 = vector.broadcast %163 : vector<8x1xf32> to vector<8x8xf32>
    %165 = arith.mulf %160, %164 : vector<8x8xf32>
    %166 = vector.shape_cast %165 : vector<8x8xf32> to vector<8x8x1xf32>
    %167 = vector.broadcast %166 : vector<8x8x1xf32> to vector<8x8x128xf32>
    %168 = arith.mulf %167, %26 : vector<8x8x128xf32>
    %cst_43 = arith.constant dense<0.000000e+00> : vector<8x128xf32>
    %169 = vector.multi_reduction <add>, %168, %cst_43 [1] : vector<8x8x128xf32> to vector<8x128xf32>
    %170 = arith.addf %152, %169 : vector<8x128xf32>
    %171 = arith.addf %170, %38 : vector<8x128xf32>
    %172 = arith.negf %171 : vector<8x128xf32>
    %173 = math.exp %172 : vector<8x128xf32>
    %cst_44 = arith.constant 1.000000e+00 : f32
    %174 = vector.broadcast %cst_44 : f32 to vector<8x128xf32>
    %175 = arith.addf %174, %173 : vector<8x128xf32>
    %176 = arith.divf %174, %175 : vector<8x128xf32>
    %177 = math.tanh %171 : vector<8x128xf32>
    %178 = vector.extract_strided_slice %176 {offsets = [0, 0], sizes = [8, 32], strides = [1, 1]} : vector<8x128xf32> to vector<8x32xf32>
    %179 = vector.extract_strided_slice %176 {offsets = [0, 32], sizes = [8, 32], strides = [1, 1]} : vector<8x128xf32> to vector<8x32xf32>
    %180 = vector.extract_strided_slice %177 {offsets = [0, 64], sizes = [8, 32], strides = [1, 1]} : vector<8x128xf32> to vector<8x32xf32>
    %181 = vector.extract_strided_slice %176 {offsets = [0, 96], sizes = [8, 32], strides = [1, 1]} : vector<8x128xf32> to vector<8x32xf32>
    %182 = arith.mulf %179, %147 : vector<8x32xf32>
    %183 = arith.mulf %178, %180 : vector<8x32xf32>
    %184 = arith.addf %182, %183 : vector<8x32xf32>
    %185 = math.tanh %184 : vector<8x32xf32>
    %186 = arith.mulf %181, %185 : vector<8x32xf32>
    %187 = tpu.concatenate %186, %184 in 1 : vector<8x32xf32>, vector<8x32xf32> -> vector<8x64xf32>
    %cst_45 = arith.constant dense<0.000000e+00> : vector<8x136xf32>
    %188 = tpu.matmul %187, %7, %cst_45 {dimension_numbers = #tpu.dot_dimension_numbers<[1], [0], [0], [1], [0, 0, 1, 1], [], []>} : vector<8x64xf32>, vector<64x136xf32>, vector<8x136xf32> -> vector<8x136xf32>
    %189 = vector.extract_strided_slice %188 {offsets = [0, 0], sizes = [8, 128], strides = [1, 1]} : vector<8x136xf32> to vector<8x128xf32>
    %190 = vector.extract_strided_slice %188 {offsets = [0, 128], sizes = [8, 8], strides = [1, 1]} : vector<8x136xf32> to vector<8x8xf32>
    %191 = vector.shape_cast %190 : vector<8x8xf32> to vector<8x1x8xf32>
    %192 = vector.broadcast %191 : vector<8x1x8xf32> to vector<8x8x8xf32>
    %193 = arith.addf %192, %28 : vector<8x8x8xf32>
    %194 = math.tanh %193 : vector<8x8x8xf32>
    %195 = arith.mulf %194, %32 : vector<8x8x8xf32>
    %cst_46 = arith.constant dense<0.000000e+00> : vector<8x8xf32>
    %196 = vector.multi_reduction <add>, %195, %cst_46 [2] : vector<8x8x8xf32> to vector<8x8xf32>
    %197 = math.exp %196 : vector<8x8xf32>
    %cst_47 = arith.constant dense<0.000000e+00> : vector<8xf32>
    %198 = vector.multi_reduction <add>, %197, %cst_47 [1] : vector<8x8xf32> to vector<8xf32>
    %199 = vector.shape_cast %198 : vector<8xf32> to vector<8x1xf32>
    %200 = tpu.reciprocal %199 {approx = true} : vector<8x1xf32> -> vector<8x1xf32>
    %201 = vector.broadcast %200 : vector<8x1xf32> to vector<8x8xf32>
    %202 = arith.mulf %197, %201 : vector<8x8xf32>
    %203 = vector.shape_cast %202 : vector<8x8xf32> to vector<8x8x1xf32>
    %204 = vector.broadcast %203 : vector<8x8x1xf32> to vector<8x8x128xf32>
    %205 = arith.mulf %204, %26 : vector<8x8x128xf32>
    %cst_48 = arith.constant dense<0.000000e+00> : vector<8x128xf32>
    %206 = vector.multi_reduction <add>, %205, %cst_48 [1] : vector<8x8x128xf32> to vector<8x128xf32>
    %207 = arith.addf %189, %206 : vector<8x128xf32>
    %208 = arith.addf %207, %38 : vector<8x128xf32>
    %209 = arith.negf %208 : vector<8x128xf32>
    %210 = math.exp %209 : vector<8x128xf32>
    %cst_49 = arith.constant 1.000000e+00 : f32
    %211 = vector.broadcast %cst_49 : f32 to vector<8x128xf32>
    %212 = arith.addf %211, %210 : vector<8x128xf32>
    %213 = arith.divf %211, %212 : vector<8x128xf32>
    %214 = math.tanh %208 : vector<8x128xf32>
    %215 = vector.extract_strided_slice %213 {offsets = [0, 0], sizes = [8, 32], strides = [1, 1]} : vector<8x128xf32> to vector<8x32xf32>
    %216 = vector.extract_strided_slice %213 {offsets = [0, 32], sizes = [8, 32], strides = [1, 1]} : vector<8x128xf32> to vector<8x32xf32>
    %217 = vector.extract_strided_slice %214 {offsets = [0, 64], sizes = [8, 32], strides = [1, 1]} : vector<8x128xf32> to vector<8x32xf32>
    %218 = vector.extract_strided_slice %213 {offsets = [0, 96], sizes = [8, 32], strides = [1, 1]} : vector<8x128xf32> to vector<8x32xf32>
    %219 = arith.mulf %216, %184 : vector<8x32xf32>
    %220 = arith.mulf %215, %217 : vector<8x32xf32>
    %221 = arith.addf %219, %220 : vector<8x32xf32>
    %222 = math.tanh %221 : vector<8x32xf32>
    %223 = arith.mulf %218, %222 : vector<8x32xf32>
    %224 = tpu.concatenate %223, %221 in 1 : vector<8x32xf32>, vector<8x32xf32> -> vector<8x64xf32>
    %cst_50 = arith.constant dense<0.000000e+00> : vector<8x136xf32>
    %225 = tpu.matmul %224, %7, %cst_50 {dimension_numbers = #tpu.dot_dimension_numbers<[1], [0], [0], [1], [0, 0, 1, 1], [], []>} : vector<8x64xf32>, vector<64x136xf32>, vector<8x136xf32> -> vector<8x136xf32>
    %226 = vector.extract_strided_slice %225 {offsets = [0, 0], sizes = [8, 128], strides = [1, 1]} : vector<8x136xf32> to vector<8x128xf32>
    %227 = vector.extract_strided_slice %225 {offsets = [0, 128], sizes = [8, 8], strides = [1, 1]} : vector<8x136xf32> to vector<8x8xf32>
    %228 = vector.shape_cast %227 : vector<8x8xf32> to vector<8x1x8xf32>
    %229 = vector.broadcast %228 : vector<8x1x8xf32> to vector<8x8x8xf32>
    %230 = arith.addf %229, %28 : vector<8x8x8xf32>
    %231 = math.tanh %230 : vector<8x8x8xf32>
    %232 = arith.mulf %231, %32 : vector<8x8x8xf32>
    %cst_51 = arith.constant dense<0.000000e+00> : vector<8x8xf32>
    %233 = vector.multi_reduction <add>, %232, %cst_51 [2] : vector<8x8x8xf32> to vector<8x8xf32>
    %234 = math.exp %233 : vector<8x8xf32>
    %cst_52 = arith.constant dense<0.000000e+00> : vector<8xf32>
    %235 = vector.multi_reduction <add>, %234, %cst_52 [1] : vector<8x8xf32> to vector<8xf32>
    %236 = vector.shape_cast %235 : vector<8xf32> to vector<8x1xf32>
    %237 = tpu.reciprocal %236 {approx = true} : vector<8x1xf32> -> vector<8x1xf32>
    %238 = vector.broadcast %237 : vector<8x1xf32> to vector<8x8xf32>
    %239 = arith.mulf %234, %238 : vector<8x8xf32>
    %240 = vector.shape_cast %239 : vector<8x8xf32> to vector<8x8x1xf32>
    %241 = vector.broadcast %240 : vector<8x8x1xf32> to vector<8x8x128xf32>
    %242 = arith.mulf %241, %26 : vector<8x8x128xf32>
    %cst_53 = arith.constant dense<0.000000e+00> : vector<8x128xf32>
    %243 = vector.multi_reduction <add>, %242, %cst_53 [1] : vector<8x8x128xf32> to vector<8x128xf32>
    %244 = arith.addf %226, %243 : vector<8x128xf32>
    %245 = arith.addf %244, %38 : vector<8x128xf32>
    %246 = arith.negf %245 : vector<8x128xf32>
    %247 = math.exp %246 : vector<8x128xf32>
    %cst_54 = arith.constant 1.000000e+00 : f32
    %248 = vector.broadcast %cst_54 : f32 to vector<8x128xf32>
    %249 = arith.addf %248, %247 : vector<8x128xf32>
    %250 = arith.divf %248, %249 : vector<8x128xf32>
    %251 = math.tanh %245 : vector<8x128xf32>
    %252 = vector.extract_strided_slice %250 {offsets = [0, 0], sizes = [8, 32], strides = [1, 1]} : vector<8x128xf32> to vector<8x32xf32>
    %253 = vector.extract_strided_slice %250 {offsets = [0, 32], sizes = [8, 32], strides = [1, 1]} : vector<8x128xf32> to vector<8x32xf32>
    %254 = vector.extract_strided_slice %251 {offsets = [0, 64], sizes = [8, 32], strides = [1, 1]} : vector<8x128xf32> to vector<8x32xf32>
    %255 = vector.extract_strided_slice %250 {offsets = [0, 96], sizes = [8, 32], strides = [1, 1]} : vector<8x128xf32> to vector<8x32xf32>
    %256 = arith.mulf %253, %221 : vector<8x32xf32>
    %257 = arith.mulf %252, %254 : vector<8x32xf32>
    %258 = arith.addf %256, %257 : vector<8x32xf32>
    %259 = math.tanh %258 : vector<8x32xf32>
    %260 = arith.mulf %255, %259 : vector<8x32xf32>
    %261 = vector.shape_cast %75 : vector<8x32xf32> to vector<8x1x32xf32>
    %262 = vector.shape_cast %112 : vector<8x32xf32> to vector<8x1x32xf32>
    %263 = vector.shape_cast %149 : vector<8x32xf32> to vector<8x1x32xf32>
    %264 = vector.shape_cast %186 : vector<8x32xf32> to vector<8x1x32xf32>
    %265 = vector.shape_cast %223 : vector<8x32xf32> to vector<8x1x32xf32>
    %266 = vector.shape_cast %260 : vector<8x32xf32> to vector<8x1x32xf32>
    %267 = tpu.concatenate %261, %262, %263, %264, %265, %266 in 1 : vector<8x1x32xf32>, vector<8x1x32xf32>, vector<8x1x32xf32>, vector<8x1x32xf32>, vector<8x1x32xf32>, vector<8x1x32xf32> -> vector<8x6x32xf32>
    %268 = vector.shape_cast %267 : vector<8x6x32xf32> to vector<48x32xf32>
    %cst_55 = arith.constant dense<0.000000e+00> : vector<48x4xf32>
    %269 = tpu.matmul %268, %8, %cst_55 {dimension_numbers = #tpu.dot_dimension_numbers<[1], [0], [0], [1], [0, 0, 1, 1], [], []>} : vector<48x32xf32>, vector<32x4xf32>, vector<48x4xf32> -> vector<48x4xf32>
    %270 = vector.broadcast %9 : vector<1x4xf32> to vector<48x4xf32>
    %271 = arith.addf %269, %270 : vector<48x4xf32>
    %272 = vector.shape_cast %271 : vector<48x4xf32> to vector<8x6x4xf32>
    %c0_56 = arith.constant 0 : index
    %c0_57 = arith.constant 0 : index
    %c0_58 = arith.constant 0 : index
    %273 = vector.load %arg10[%c0_56, %c0_57, %c0_58] : memref<8x6x4xf32, #tpu.memory_space<vmem>>, vector<8x6x4xf32>
    tpu.vector_store %arg10[%c0_56, %c0_57, %c0_58], %272 {strides = array<i32>} : memref<8x6x4xf32, #tpu.memory_space<vmem>>, vector<8x6x4xf32>,
    %274 = vector.shape_cast %54 : vector<8x8xf32> to vector<8x1x8xf32>
    %275 = vector.shape_cast %91 : vector<8x8xf32> to vector<8x1x8xf32>
    %276 = vector.shape_cast %128 : vector<8x8xf32> to vector<8x1x8xf32>
    %277 = vector.shape_cast %165 : vector<8x8xf32> to vector<8x1x8xf32>
    %278 = vector.shape_cast %202 : vector<8x8xf32> to vector<8x1x8xf32>
    %279 = vector.shape_cast %239 : vector<8x8xf32> to vector<8x1x8xf32>
    %280 = tpu.concatenate %274, %275, %276, %277, %278, %279 in 1 : vector<8x1x8xf32>, vector<8x1x8xf32>, vector<8x1x8xf32>, vector<8x1x8xf32>, vector<8x1x8xf32>, vector<8x1x8xf32> -> vector<8x6x8xf32>
    %c0_59 = arith.constant 0 : index
    %c0_60 = arith.constant 0 : index
    %c0_61 = arith.constant 0 : index
    %281 = vector.load %arg11[%c0_59, %c0_60, %c0_61] : memref<8x6x8xf32, #tpu.memory_space<vmem>>, vector<8x6x8xf32>
    tpu.vector_store %arg11[%c0_59, %c0_60, %c0_61], %280 {strides = array<i32>} : memref<8x6x8xf32, #tpu.memory_space<vmem>>, vector<8x6x8xf32>,
    return
  }
  func.func @transform_0(%arg0: i32) -> (i32, i32, i32) {
    %c0_i32 = arith.constant 0 : i32
    %c0_i32_0 = arith.constant 0 : i32
    %c0_i32_1 = arith.constant 0 : i32
    return %arg0, %c0_i32, %c0_i32_0 : i32, i32, i32
  }
  func.func @transform_1(%arg0: i32) -> (i32, i32) {
    %c0_i32 = arith.constant 0 : i32
    %c0_i32_0 = arith.constant 0 : i32
    %c0_i32_1 = arith.constant 0 : i32
    return %c0_i32, %c0_i32_0 : i32, i32
  }
  func.func @transform_2(%arg0: i32) -> (i32, i32) {
    %c0_i32 = arith.constant 0 : i32
    %c0_i32_0 = arith.constant 0 : i32
    %c0_i32_1 = arith.constant 0 : i32
    return %c0_i32, %c0_i32_0 : i32, i32
  }
  func.func @transform_3(%arg0: i32) -> (i32, i32) {
    %c0_i32 = arith.constant 0 : i32
    %c0_i32_0 = arith.constant 0 : i32
    %c0_i32_1 = arith.constant 0 : i32
    return %c0_i32, %c0_i32_0 : i32, i32
  }
  func.func @transform_4(%arg0: i32) -> (i32, i32) {
    %c0_i32 = arith.constant 0 : i32
    %c0_i32_0 = arith.constant 0 : i32
    %c0_i32_1 = arith.constant 0 : i32
    return %c0_i32, %c0_i32_0 : i32, i32
  }
  func.func @transform_5(%arg0: i32) -> (i32, i32, i32) {
    %c0_i32 = arith.constant 0 : i32
    %c0_i32_0 = arith.constant 0 : i32
    %c0_i32_1 = arith.constant 0 : i32
    %c0_i32_2 = arith.constant 0 : i32
    return %c0_i32, %c0_i32_0, %c0_i32_1 : i32, i32, i32
  }
  func.func @transform_6(%arg0: i32) -> (i32, i32) {
    %c0_i32 = arith.constant 0 : i32
    %c0_i32_0 = arith.constant 0 : i32
    %c0_i32_1 = arith.constant 0 : i32
    return %c0_i32, %c0_i32_0 : i32, i32
  }
  func.func @transform_7(%arg0: i32) -> (i32, i32) {
    %c0_i32 = arith.constant 0 : i32
    %c0_i32_0 = arith.constant 0 : i32
    %c0_i32_1 = arith.constant 0 : i32
    return %c0_i32, %c0_i32_0 : i32, i32
  }
  func.func @transform_8(%arg0: i32) -> (i32, i32) {
    %c0_i32 = arith.constant 0 : i32
    %c0_i32_0 = arith.constant 0 : i32
    %c0_i32_1 = arith.constant 0 : i32
    return %c0_i32, %c0_i32_0 : i32, i32
  }
  func.func @transform_9(%arg0: i32) -> (i32, i32, i32) {
    %c0_i32 = arith.constant 0 : i32
    %c0_i32_0 = arith.constant 0 : i32
    %c0_i32_1 = arith.constant 0 : i32
    return %arg0, %c0_i32, %c0_i32_0 : i32, i32, i32
  }
  func.func @transform_10(%arg0: i32) -> (i32, i32, i32) {
    %c0_i32 = arith.constant 0 : i32
    %c0_i32_0 = arith.constant 0 : i32
    %c0_i32_1 = arith.constant 0 : i32
    return %arg0, %c0_i32, %c0_i32_0 : i32, i32, i32
  }
}

</mosaic_0001>

<bundles_post_ra>
// kernel: seq2seq_with_attention.1
= control target key start
LH: loop header
LB: loop body
LE: loop exit
PB: predicated region body
PF: predicated region fallthrough
CT: control target
= control target key end

     0   :  { %16 = vsyncpa [#allocation3], 0  ;;  %s6615_s0 = inlined_call_operand.hbm [shape: f32[8,8,8], index: 0, kind: input, shape index: {}]   ;;  %s6616_s1 = inlined_call_operand.vmem [shape: f32[8,64], index: 1, kind: input, shape index: {}]   ;;  %s6617_s2 = inlined_call_operand.vmem [shape: f32[1,64], index: 2, kind: input, shape index: {}]   ;;  %s6618_s3 = inlined_call_operand.vmem [shape: f32[8,136], index: 3, kind: input, shape index: {}]   ;;  %s6619_s4 = inlined_call_operand.vmem [shape: f32[1,8], index: 4, kind: input, shape index: {}]   ;;  %s6620_s5 = inlined_call_operand.hbm [shape: f32[2,64,136], index: 5, kind: input, shape index: {}]   ;;  %s6621_s6 = inlined_call_operand.vmem [shape: f32[2,128], index: 6, kind: input, shape index: {}]   ;;  %s6622_s7 = inlined_call_operand.vmem [shape: f32[32,4], index: 7, kind: input, shape index: {}]   ;;  %s6623_s8 = inlined_call_operand.vmem [shape: f32[1,4], index: 8, kind: input, shape index: {}]   ;;  %s6624_s9 = inlined_call_operand.vmem [shape: f32[8,6,4], index: 9, kind: output, shape index: {0}]   ;;  %s6625_s10 = inlined_call_operand.vmem [shape: f32[8,6,8], index: 10, kind: output, shape index: {1}]  }
   0x1   :  { %17 = vsyncpa [#allocation5], 0  ;;  %s5164_s13 = smov [#allocation2]   ;;  %s5116_s17 = scalar_lea.hbm %s6615_s0, 1024 }
   0x2   :  { %s23_s14 = sshll.u32 %s5164_s13, 4  ;;  %p5117_p0 = scmp.ne.s32.totalorder %s6615_s0, %s5116_s17  ;;  %s24_s14 = int_to_ptr.vmem [resolvable:$true] %s23_s14 }
   0x3   :  { %p5120_p1 = scmp.lt.u32.totalorder %s5116_s17, %s6615_s0 }
   0x5   :  { %p5122_p2 = pnand %p5120_p1, %p5117_p0 }
   0x7   :  { %5125 = shalt.err (!%p5122_p2)
}
   0x8   :  { %s5126_s22 = scalar_lea.vmem %s24_s14, 1024  ;;  %p5131_p4 = scmp.lt.s32.totalorder %s24_s14, %s24_s14 }
   0x9   :  { %p5127_p3 = scmp.ne.s32.totalorder %s24_s14, %s5126_s22  ;;  %p5132_p5 = scmp.lt.s32.totalorder %s5126_s22, %s5126_s22 }
   0xb   :  { %p5133_p6 = por %p5132_p5, %p5131_p4 }
   0xd   :  { %p5134_p7 = pnand %p5133_p6, %p5127_p3 }
   0xf   :  { %5137 = shalt.err (!%p5134_p7)
}
  0x10   :  { %s5165_s23 = smov 128   ;;  %s5166_s24 = smov 8  }
  0x11   :  { %29 = dma.hbm_to_vmem [thread:$0]  %s6615_s0, 1024, %s24_s14, [#allocation3], %s5165_s23, %s5165_s23, %s5166_s24  }
  0x12   :  { %s5167_s27 = smov [#allocation4]   ;;  %s5138_s11 = scalar_lea.hbm %s6620_s5, 4096 }
  0x13   :  { %s43_s28 = sshll.u32 %s5167_s27, 4  ;;  %p5139_p8 = scmp.ne.s32.totalorder %s6620_s5, %s5138_s11  ;;  %s44_s28 = int_to_ptr.vmem [resolvable:$true] %s43_s28 }
  0x14   :  { %p5142_p9 = scmp.lt.u32.totalorder %s5138_s11, %s6620_s5 }
  0x16   :  { %p5144_p10 = pnand %p5142_p9, %p5139_p8 }
  0x18   :  { %5147 = shalt.err (!%p5144_p10)
}
  0x19   :  { %s5148_s17 = scalar_lea.vmem %s44_s28, 4096  ;;  %p5153_p12 = scmp.lt.s32.totalorder %s44_s28, %s44_s28 }
  0x1a   :  { %p5149_p11 = scmp.ne.s32.totalorder %s44_s28, %s5148_s17  ;;  %p5154_p13 = scmp.lt.s32.totalorder %s5148_s17, %s5148_s17 }
  0x1c   :  { %p5155_p0 = por %p5154_p13, %p5153_p12 }
  0x1e   :  { %p5156_p1 = pnand %p5155_p0, %p5149_p11 }
  0x20   :  { %5159 = shalt.err (!%p5156_p1)
}
  0x21   :  { %s5168_s0 = smov 256   ;;  %s5169_s14 = smov 16  }
  0x22   :  { %49 = dma.hbm_to_vmem [thread:$0]  %s6620_s5, 4096, %s44_s28, [#allocation5], %s5168_s0, %s5168_s0, %s5169_s14  }
  0x23   :  { %5160 = dma.done.wait [#allocation3], 1024  }
  0x24   :  { %5161 = vsyncadd [#allocation3], 4294966272 }
  0x25   :  { %5162 = dma.done.wait [#allocation5], 4096  }
  0x26   :  { %5163 = vsyncadd [#allocation5], 4294963200  ;;  %v6626_v0 = vmov 0.0   ;;  %vm5171_vm0 = vmmov 0   ;;  %v70_v1 = vld [vmem:[%s6616_s1] sm:$0xff]  ;;  %v63_v3 = vld [vmem:[#allocation2 + $0x8] sm:$0xff] }
  0x27   :  { %4713 = vmatprep.subr.mxu0 %v6626_v0  ;;  %4715 = vmatprep.mubr.msk.f32.mxu0 %vm5171_vm0, %v6626_v0  ;;  %v62_v2 = vld [vmem:[#allocation2] sm:$0xff]  ;;  %vm128_vm1 = vcmask 1041409   ;;  %v5262_v4 = vld [vmem:[#allocation2 + $0x10] sm:$0xff]  ;;  %v5264_v5 = vld [vmem:[#allocation2 + $0x18] sm:$0xff]  ;;  %v127_v8 = vrot.slane %v63_v3, 6  ;;  %vm131_vm2 = vcmask 1042434  }
  0x28   :  { %307 = vmatprep.mubr.f32.mxu1 %v6626_v0  ;;  %4714 = vmatpush3.msra.mxu0 %v70_v1  ;;  %v5266_v6 = vld [vmem:[#allocation2 + $0x20] sm:$0xff]  ;;  %v126_v7 = vrot.slane %v62_v2, 7  ;;  %v5268_v9 = vld [vmem:[#allocation2 + $0x28] sm:$0xff]  ;;  %v5270_v10 = vld [vmem:[#allocation2 + $0x30] sm:$0xff]  ;;  %v130_v11 = vrot.slane %v5262_v4, 5  ;;  %v133_v12 = vrot.slane %v5264_v5, 4 }
  0x29   :  { %vm134_vm3 = vcmask 1043459   ;;  %v136_v13 = vrot.slane %v5266_v6, 3  ;;  %vm137_vm4 = vcmask 1044484   ;;  %v139_v15 = vrot.slane %v5268_v9, 2  ;;  %v69_v19 = vld [vmem:[#allocation2 + $0x38] sm:$0xff]  ;;  %v73_v24 = vld [vmem:[%s6618_s3 + $0x8] sm:$0xff] }
  0x2a   :  { %v129_v14 = vsel %vm128_vm1, %v127_v8, %v126_v7  ;;  %vm140_vm5 = vcmask 1045509   ;;  %v142_v17 = vrot.slane %v5270_v10, 1  ;;  %vm143_vm6 = vcmask 1046534   ;;  %v75_v25 = vld [vmem:[#allocation4 + $0x8] sm:$0xff]  ;;  %v77_v26 = vld [vmem:[#allocation4 + $0x18] sm:$0xff]  ;;  %243 = vmatprep.subr.mxu1 %v73_v24  ;;  %v72_v27 = vld [vmem:[%s6618_s3] sm:$0xff] }
  0x2b   :  { %v132_v16 = vsel %vm131_vm2, %v130_v11, %v129_v14  ;;  %vm145_vm7 = vcmask 1047559   ;;  %vm147_vm8 = vcmask 64512   ;;  %v4735_v28 = vpack.c.bf16 %v77_v26, %v75_v25  ;;  %v74_v29 = vld [vmem:[#allocation4] sm:$0xff]  ;;  %v76_v30 = vld [vmem:[#allocation4 + $0x10] sm:$0xff]  ;;  %244 = vmatpush1.msra.mxu1 %v72_v27  ;;  %v79_v32 = vld [vmem:[#allocation4 + $0x28] sm:$0xff]  ;;  %s5174_s28 = smov 64  }
  0x2c   :  { %v135_v18 = vsel %vm134_vm3, %v133_v12, %v132_v16  ;;  %v4737_v31 = vpack.c.bf16 %v76_v30, %v74_v29  ;;  %4671 = vmatmul.mubr.msk.f32.vlgmr.msra.gmra.mrb[0].mxu1 %vm147_vm8, %v62_v2  ;;  %v81_v33 = vld [vmem:[#allocation4 + $0x38] sm:$0xff]  ;;  %v78_v35 = vld [vmem:[#allocation4 + $0x20] sm:$0xff]  ;;  %v80_v36 = vld [vmem:[#allocation4 + $0x30] sm:$0xff]  ;;  %vm373_vm9 = vcmask 261120   ;;  %vm375_vm10 = vcmask 523264   ;;  %s5175_s29 = smov 32  }
  0x2d   :  { %v138_v20 = vsel %vm137_vm4, %v136_v13, %v135_v18  ;;  %4736 = vmatprep.subr.bf16.mxu0 %v4735_v28  ;;  %313 = vmatprep.mubr.f32.mxu1 %v6626_v0  ;;  %v4739_v34 = vpack.c.bf16 %v81_v33, %v79_v32  ;;  %v4741_v37 = vpack.c.bf16 %v80_v36, %v78_v35  ;;  %v83_v38 = vld [vmem:[#allocation4 + $0x48] sm:$0xff]  ;;  %v85_v39 = vld [vmem:[#allocation4 + $0x58] sm:$0xff]  ;;  %v82_v40 = vld [vmem:[#allocation4 + $0x40] sm:$0xff]  ;;  %v5172_v13 = vmov 1966171168  }
  0x2e   :  { %v141_v21 = vsel %vm140_vm5, %v139_v15, %v138_v20  ;;  %v4743_v41 = vpack.c.bf16 %v85_v39, %v83_v38  ;;  %v84_v42 = vld [vmem:[#allocation4 + $0x50] sm:$0xff]  ;;  %v87_v43 = vld [vmem:[#allocation4 + $0x68] sm:$0xff]  ;;  %v89_v44 = vld [vmem:[#allocation4 + $0x78] sm:$0xff]  ;;  %v453_v14 = vunpack.c.l.s4 %v5172_v13  ;;  %v455_v15 = vlaneseq }
  0x2f   :  { %v144_v22 = vsel %vm143_vm6, %v142_v17, %v141_v21  ;;  %v4745_v45 = vpack.c.bf16 %v84_v42, %v82_v40  ;;  %v4747_v46 = vpack.c.bf16 %v89_v44, %v87_v43  ;;  %v86_v47 = vld [vmem:[#allocation4 + $0x60] sm:$0xff]  ;;  %v88_v48 = vld [vmem:[#allocation4 + $0x70] sm:$0xff]  ;;  %vm3708_vm11 = vcmask 1040384  }
  0x30   :  { %v146_v23 = vsel %vm145_vm7, %v69_v19, %v144_v22  ;;  %4672 = vmatmul.mubr.msk.f32.gmra.mrb[2].mxu1 %vm147_vm8, %v63_v3  ;;  %v4749_v49 = vpack.c.bf16 %v88_v48, %v86_v47  ;;  %v4668_v50 = vld [vmem:[%s6617_s2] ss:$0 sm:$0xff]  ;;  %v454_v16 = vunpack.c.0.s8 %v453_v14  ;;  %v5355_v17 = vshrl.u32 %v455_v15, 7 }
  0x31   :  { %4716 = vmatmul.mubr.msk.f32.vlgmr.msra.gmra.mrb[0].mxu0 %vm147_vm8, %v146_v23  ;;  %319 = vmatprep.mubr.f32.mxu1 %v6626_v0  ;;  %vm3717_vm12 = vcmask 1041408   ;;  %vm3726_vm13 = vcmask 1042432   ;;  %vm3735_vm14 = vcmask 1043456   ;;  %vm3744_vm15 = vcmask 1044480  }
  0x32   :  { %443 = vmatprep.mubr.f32.mxu0 %v6626_v0  ;;  %4738 = vmatpush1.bf16.msra.mxu0 %v4737_v31  ;;  %6689 = vst [vmem:[#allocation18_spill] sm:$0xff] %v5355_v17  ;;  %v5358_v18 = vsub.s32 %v454_v16, %v5355_v17  ;;  %v5364_v23 = vsub.s32 0, %v5355_v17  ;;  %vm4649_vm0 = vcmask 62464  }
  0x33   :  { %4740 = vmatprep.subr.bf16.mxu0 %v4739_v34 }
  0x34   :  { %4673 = vmatmul.mubr.msk.f32.gmra.mrb[4].mxu1 %vm147_vm8, %v5262_v4 }
  0x35   :  { %325 = vmatprep.mubr.f32.mxu1 %v6626_v0 }
  0x36   :  { %4742 = vmatpush1.bf16.msra.mxu0 %v4741_v37 }
  0x37   :  { %4744 = vmatprep.subr.bf16.mxu0 %v4743_v41 }
  0x38   :  { %4674 = vmatmul.mubr.msk.f32.gmra.mrb[6].mxu1 %vm147_vm8, %v5264_v5 }
  0x39   :  { %331 = vmatprep.mubr.f32.mxu1 %v6626_v0 }
  0x3a   :  { %4746 = vmatpush1.bf16.msra.mxu0 %v4745_v45 }
  0x3b   :  { %4748 = vmatprep.subr.bf16.mxu0 %v4747_v46 }
  0x3c   :  { %4675 = vmatmul.mubr.msk.f32.gmra.mrb[8].mxu1 %vm147_vm8, %v5266_v6 }
  0x3d   :  { %337 = vmatprep.mubr.f32.mxu1 %v6626_v0 }
  0x3e   :  { %4750 = vmatpush1.bf16.msra.mxu0 %v4749_v49 }
  0x40   :  { %4676 = vmatmul.mubr.msk.f32.gmra.mrb[10].mxu1 %vm147_vm8, %v5268_v9 }
  0x41   :  { %343 = vmatprep.mubr.f32.mxu1 %v6626_v0 }
  0x44   :  { %4677 = vmatmul.mubr.msk.f32.gmra.mrb[12].mxu1 %vm147_vm8, %v5270_v10 }
  0x45   :  { %349 = vmatprep.mubr.f32.mxu1 %v6626_v0 }
  0x48   :  { %4678 = vmatmul.mubr.msk.f32.gmra.mrb[14].mxu1 %vm147_vm8, %v69_v19 }
  0x49   :  { %1389 = vmatprep.mubr.f32.mxu1 %v6626_v0 }
  0xff   :  { %v5322_v60 = vpop.f32.mrb[0].mxu1 }
 0x100   :  { %6679 = vst [vmem:[#allocation8_spill] sm:$0xff] %v5322_v60  ;;  %v5324_v61 = vpop.f32.mrb[1].mxu1 }
 0x103   :  { %v5326_v62 = vpop.f32.mrb[2].mxu1 }
 0x104   :  { %v216_v51 = vpop.f32.mrb[0].mxu0  ;;  %6680 = vst [vmem:[#allocation9_spill] sm:$0xff] %v5326_v62  ;;  %v5328_v63 = vpop.f32.mrb[3].mxu1 }
 0x105   :  { %v217_v52 = vadd.f32 %v4668_v50, %v216_v51  ;;  %v4717_v53 = vpop.f32.mrb[1].mxu0  ;;  %v5390_v51 = vld [vmem:[%s6619_s4] ss:$0 sm:$0xff] }
 0x107   :  { %v4670_v54 = vmul.f32 -1.442695, %v217_v52  ;;  %v5330_v1 = vpop.f32.mrb[4].mxu1 }
 0x108   :  { %6681 = vst [vmem:[#allocation10_spill] sm:$0xff] %v5330_v1  ;;  %v5332_v2 = vpop.f32.mrb[5].mxu1 }
 0x109   :  { %4854 = vpow2.f32 %v4670_v54 }
 0x10a   :  { %4856 = vtanh.f32 %v217_v52 }
 0x10b   :  { %v5334_v3 = vpop.f32.mrb[6].mxu1 }
 0x10c   :  { %6682 = vst [vmem:[#allocation11_spill] sm:$0xff] %v5334_v3  ;;  %v5336_v4 = vpop.f32.mrb[7].mxu1 }
 0x10f   :  { %v5338_v5 = vpop.f32.mrb[8].mxu1 }
 0x110   :  { %6683 = vst [vmem:[#allocation12_spill] sm:$0xff] %v5338_v5  ;;  %v5340_v6 = vpop.f32.mrb[9].mxu1 }
 0x113   :  { %v4855_v55 = vpop.eup %4854  ;;  %v5342_v7 = vpop.f32.mrb[10].mxu1 }
 0x114   :  { %v224_v56 = vadd.f32 1.0, %v4855_v55  ;;  %v4857_v57 = vpop.eup %4856  ;;  %6684 = vst [vmem:[#allocation13_spill] sm:$0xff] %v5342_v7  ;;  %v5344_v8 = vpop.f32.mrb[11].mxu1 }
 0x115   :  { %6685 = vst [vmem:[#allocation14_spill] sm:$0xff] %v5344_v8 }
 0x116   :  { %4858 = vrcp.f32 %v224_v56 }
 0x117   :  { %v5346_v9 = vpop.f32.mrb[12].mxu1 }
 0x118   :  { %6686 = vst [vmem:[#allocation15_spill] sm:$0xff] %v5346_v9  ;;  %v5348_v10 = vpop.f32.mrb[13].mxu1 }
 0x119   :  { %6687 = vst [vmem:[#allocation16_spill] sm:$0xff] %v5348_v10 }
 0x11b   :  { %v5350_v11 = vpop.f32.mrb[14].mxu1 }
 0x11c   :  { %v5352_v12 = vpop.f32.mrb[15].mxu1 }
 0x11d   :  { %6688 = vst [vmem:[#allocation17_spill] sm:$0xff] %v5352_v12 }
 0x120   :  { %v5316_v58 = vpop.eup %4858 }
 0x121   :  { %v374_v59 = vsel %vm373_vm9, %v4857_v57, %v5316_v58 }
 0x122   :  { %4682 = vmatmul.mubr.msk.f32.vlgmr.msra.gmra.mrb[2].mxu0 %vm375_vm10, %v374_v59 }
 0x123   :  { %917 = vmatprep.mubr.f32.mxu0 %v6626_v0 }
 0x1f5   :  { %v5360_v19 = vpop.f32.mrb[2].mxu0 }
 0x1f6   :  { %v447_v20 = vpop.f32.mrb[3].mxu0 }
 0x1f7   :  { %v451_v21 = vcombine.high %v447_v20, %v447_v20  ;;  %v458_v22 = vrot.slane %v447_v20, %v5358_v18 }
 0x1f9   :  { %v465_v24 = vrot.slane %v451_v21, %v5358_v18  ;;  %v466_v25 = vcombine.high %v458_v22, %v458_v22  ;;  %v474_v26 = vrot.slane %v458_v22, %v5358_v18 }
 0x1fb   :  { %v467_v27 = vcombine.high %v465_v24, %v465_v24  ;;  %v481_v28 = vrot.slane %v465_v24, %v5358_v18  ;;  %v488_v29 = vrot.slane %v466_v25, %v5358_v18  ;;  %v496_v30 = vcombine.high %v474_v26, %v474_v26 }
 0x1fc   :  { %v503_v31 = vrot.slane %v474_v26, %v5364_v23 }
 0x1fd   :  { %v495_v32 = vrot.slane %v467_v27, %v5358_v18  ;;  %v497_v33 = vcombine.high %v481_v28, %v481_v28  ;;  %v498_v34 = vcombine.high %v488_v29, %v488_v29  ;;  %v507_v35 = vrot.slane %v488_v29, %v5364_v23 }
 0x1fe   :  { %v511_v36 = vrot.slane %v496_v30, %v5364_v23  ;;  %v519_v37 = vrot.slane %v481_v28, %v5364_v23  ;;  %v540_v38 = vadd.f32 %v503_v31, %v5324_v61 }
 0x1ff   :  { %v499_v39 = vcombine.high %v495_v32, %v495_v32  ;;  %v515_v40 = vrot.slane %v498_v34, %v5364_v23  ;;  %v523_v41 = vrot.slane %v495_v32, %v5364_v23  ;;  %v527_v42 = vrot.slane %v497_v33, %v5364_v23 }
 0x200   :  { %v541_v43 = vadd.f32 %v507_v35, %v5328_v63  ;;  %v542_v44 = vadd.f32 %v511_v36, %v5332_v2  ;;  %4860 = vtanh.f32 %v540_v38  ;;  %v544_v45 = vadd.f32 %v519_v37, %v5340_v6 }
 0x201   :  { %v531_v46 = vrot.slane %v499_v39, %v5364_v23  ;;  %v543_v47 = vadd.f32 %v515_v40, %v5336_v4  ;;  %v545_v48 = vadd.f32 %v523_v41, %v5344_v8  ;;  %v546_v49 = vadd.f32 %v527_v42, %v5348_v10 }
 0x202   :  { %4862 = vtanh.f32 %v541_v43 }
 0x203   :  { %4864 = vtanh.f32 %v542_v44  ;;  %v547_v50 = vadd.f32 %v531_v46, %v5352_v12 }
 0x204   :  { %4866 = vtanh.f32 %v543_v47 }
 0x205   :  { %4868 = vtanh.f32 %v544_v45  ;;  %v613_v45 = vand.u32 127, %v455_v15 }
 0x206   :  { %4870 = vtanh.f32 %v545_v48 }
 0x207   :  { %4872 = vtanh.f32 %v546_v49 }
 0x208   :  { %4874 = vtanh.f32 %v547_v50  ;;  %v5410_v50 = vsub.s32 %v613_v45, %v5355_v17 }
 0x20a   :  { %v4861_v52 = vpop.eup %4860 }
 0x20b   :  { %v556_v53 = vmul.f32 %v4861_v52, %v5390_v51 }
 0x20c   :  { %v4863_v54 = vpop.eup %4862 }
 0x20d   :  { %v4865_v55 = vpop.eup %4864  ;;  %v564_v56 = vsel %vm147_vm8, %v556_v53, 0.0  ;;  %v557_v57 = vmul.f32 %v4863_v54, %v5390_v51 }
 0x20e   :  { %v4867_v59 = vpop.eup %4866  ;;  %565 = vadd.xlane.f32.xlu0 %v564_v56  ;;  %v558_v13 = vmul.f32 %v4865_v55, %v5390_v51 }
 0x20f   :  { %v4869_v14 = vpop.eup %4868  ;;  %v559_v20 = vmul.f32 %v4867_v59, %v5390_v51  ;;  %v567_v22 = vsel %vm147_vm8, %v557_v57, 0.0 }
 0x210   :  { %v570_v16 = vsel %vm147_vm8, %v558_v13, 0.0  ;;  %v4871_v21 = vpop.eup %4870  ;;  %v560_v24 = vmul.f32 %v4869_v14, %v5390_v51 }
 0x211   :  { %571 = vadd.xlane.f32.xlu1 %v570_v16  ;;  %v4873_v25 = vpop.eup %4872  ;;  %v573_v26 = vsel %vm147_vm8, %v559_v20, 0.0  ;;  %v561_v27 = vmul.f32 %v4871_v21, %v5390_v51 }
 0x212   :  { %568 = vadd.xlane.f32.xlu0 %v567_v22  ;;  %v4875_v28 = vpop.eup %4874  ;;  %v576_v29 = vsel %vm147_vm8, %v560_v24, 0.0  ;;  %v562_v30 = vmul.f32 %v4873_v25, %v5390_v51 }
 0x213   :  { %v579_v31 = vsel %vm147_vm8, %v561_v27, 0.0  ;;  %v563_v32 = vmul.f32 %v4875_v28, %v5390_v51 }
 0x214   :  { %v582_v33 = vsel %vm147_vm8, %v562_v30, 0.0 }
 0x215   :  { %574 = vadd.xlane.f32.xlu1 %v573_v26  ;;  %v585_v34 = vsel %vm147_vm8, %v563_v32, 0.0 }
 0x216   :  { %577 = vadd.xlane.f32.xlu0 %v576_v29 }
 0x219   :  { %580 = vadd.xlane.f32.xlu1 %v579_v31 }
 0x21a   :  { %583 = vadd.xlane.f32.xlu0 %v582_v33 }
 0x21d   :  { %586 = vadd.xlane.f32.xlu1 %v585_v34 }
 0x29b   :  { %v566_v35 = vpop.xlane.xlu0 %565 }
 0x29c   :  { %v588_v36 = vmul.f32 1.442695, %v566_v35 }
 0x29e   :  { %v572_v37 = vpop.xlane.xlu1 %571  ;;  %4876 = vpow2.f32 %v588_v36  ;;  %v5173_v36 = vmov 0  }
 0x29f   :  { %v592_v38 = vmul.f32 1.442695, %v572_v37  ;;  %v569_v39 = vpop.xlane.xlu0 %568  ;;  %4853 = vset.pattern.permute.xlu0 %v5173_v36  ;;  %4852 = vset.pattern.permute.xlu1 %v5173_v36 }
 0x2a0   :  { %v590_v40 = vmul.f32 1.442695, %v569_v39  ;;  %v5432_v39 = vsub.s32 2, %v5355_v17 }
 0x2a1   :  { %4878 = vpow2.f32 %v592_v38  ;;  %v5429_v38 = vsub.s32 1, %v5355_v17 }
 0x2a2   :  { %4880 = vpow2.f32 %v590_v40  ;;  %v575_v41 = vpop.xlane.xlu1 %574 }
 0x2a3   :  { %v594_v42 = vmul.f32 1.442695, %v575_v41  ;;  %v578_v43 = vpop.xlane.xlu0 %577 }
 0x2a4   :  { %v596_v44 = vmul.f32 1.442695, %v578_v43 }
 0x2a5   :  { %4882 = vpow2.f32 %v594_v42 }
 0x2a6   :  { %4884 = vpow2.f32 %v596_v44  ;;  %v581_v46 = vpop.xlane.xlu1 %580 }
 0x2a7   :  { %v598_v47 = vmul.f32 1.442695, %v581_v46  ;;  %v584_v48 = vpop.xlane.xlu0 %583  ;;  %v5438_v46 = vsub.s32 3, %v5355_v17 }
 0x2a8   :  { %v600_v49 = vmul.f32 1.442695, %v584_v48  ;;  %v4877_v52 = vpop.eup %4876 }
 0x2a9   :  { %4886 = vpow2.f32 %v598_v47  ;;  %v617_v57 = vrot.slane %v4877_v52, %v5410_v50 }
 0x2aa   :  { %4888 = vpow2.f32 %v600_v49  ;;  %v587_v53 = vpop.xlane.xlu1 %586  ;;  %v5442_v49 = vsub.s32 4, %v5355_v17 }
 0x2ab   :  { %v4879_v54 = vpop.eup %4878  ;;  %v602_v55 = vmul.f32 1.442695, %v587_v53 }
 0x2ac   :  { %v4881_v56 = vpop.eup %4880  ;;  %v625_v59 = vrot.slane %v4879_v54, %v5410_v50 }
 0x2ad   :  { %v621_v15 = vrot.slane %v4881_v56, %v5410_v50  ;;  %4890 = vpow2.f32 %v602_v55 }
 0x2af   :  { %v4883_v13 = vpop.eup %4882  ;;  %v646_v14 = vsel %vm128_vm1, %v621_v15, %v617_v57  ;;  %v5450_v15 = vsub.s32 6, %v5355_v17 }
 0x2b0   :  { %v4885_v16 = vpop.eup %4884  ;;  %v629_v20 = vrot.slane %v4883_v13, %v5410_v50  ;;  %v647_v21 = vsel %vm131_vm2, %v625_v59, %v646_v14  ;;  %v5454_v14 = vsub.s32 7, %v5355_v17 }
 0x2b1   :  { %v633_v22 = vrot.slane %v4885_v16, %v5410_v50  ;;  %6690 = vst [vmem:[#allocation19_spill] sm:$0xff] %v5450_v15 }
 0x2b2   :  { %v648_v24 = vsel %vm134_vm3, %v629_v20, %v647_v21  ;;  %6691 = vst [vmem:[#allocation20_spill] sm:$0xff] %v5454_v14 }
 0x2b3   :  { %v4887_v25 = vpop.eup %4886  ;;  %v649_v26 = vsel %vm137_vm4, %v633_v22, %v648_v24 }
 0x2b4   :  { %v4889_v27 = vpop.eup %4888  ;;  %v637_v28 = vrot.slane %v4887_v25, %v5410_v50 }
 0x2b5   :  { %v641_v29 = vrot.slane %v4889_v27, %v5410_v50 }
 0x2b6   :  { %v650_v30 = vsel %vm140_vm5, %v637_v28, %v649_v26 }
 0x2b7   :  { %v4891_v31 = vpop.eup %4890  ;;  %v651_v32 = vsel %vm143_vm6, %v641_v29, %v650_v30 }
 0x2b8   :  { %v645_v33 = vrot.slane %v4891_v31, %v5410_v50 }
 0x2ba   :  { %v652_v34 = vsel %vm145_vm7, %v645_v33, %v651_v32 }
 0x2bb   :  { %v654_v35 = vsel %vm147_vm8, %v652_v34, 0.0 }
 0x2bc   :  { %655 = vadd.xlane.f32.xlu0 %v654_v35 }
 0x349   :  { %v656_v37 = vpop.xlane.xlu0 %655 }
 0x34a   :  { %4892 = vrcp.f32 %v656_v37 }
 0x354   :  { %v4893_v40 = vpop.eup %4892 }
 0x355   :  { %v666_v41 = vrot.slane %v4893_v40, %v5429_v38  ;;  %v662_v42 = vrot.slane %v4893_v40, %v5364_v23  ;;  %v670_v45 = vrot.slane %v4893_v40, %v5432_v39  ;;  %v674_v48 = vrot.slane %v4893_v40, %v5438_v46 }
 0x356   :  { %v678_v55 = vrot.slane %v4893_v40, %v5442_v49  ;;  %v686_v59 = vrot.slane %v4893_v40, %v5450_v15  ;;  %v690_v20 = vrot.slane %v4893_v40, %v5454_v14 }
 0x357   :  { %v700_v43 = vmul.f32 %v4881_v56, %v666_v41  ;;  %v699_v44 = vmul.f32 %v4877_v52, %v662_v42  ;;  %v701_v47 = vmul.f32 %v4879_v54, %v670_v45  ;;  %v702_v53 = vmul.f32 %v4883_v13, %v674_v48 }
 0x358   :  { %v5446_v56 = vsub.s32 5, %v5355_v17  ;;  %v703_v52 = vmul.f32 %v4885_v16, %v678_v55  ;;  %v705_v13 = vmul.f32 %v4889_v27, %v686_v59  ;;  %v706_v21 = vmul.f32 %v4891_v31, %v690_v20 }
 0x359   :  { %714 = vperm.xlu0 %4853, %v700_v43   ;;  %709 = vperm.xlu1 %4852, %v699_v44  }
 0x35a   :  { %v682_v57 = vrot.slane %v4893_v40, %v5446_v56 }
 0x35c   :  { %v704_v54 = vmul.f32 %v4887_v25, %v682_v57 }
 0x35d   :  { %719 = vperm.xlu1 %4852, %v701_v47  }
 0x361   :  { %724 = vperm.xlu1 %4852, %v702_v53  }
 0x365   :  { %729 = vperm.xlu1 %4852, %v703_v52  }
 0x369   :  { %734 = vperm.xlu1 %4852, %v704_v54  }
 0x36d   :  { %739 = vperm.xlu1 %4852, %v705_v13  }
 0x371   :  { %744 = vperm.xlu1 %4852, %v706_v21  }
 0x3d8   :  { %v5457_v16 = vpop.permute.xlu0 %714  ;;  %v5459_v22 = vpop.permute.xlu1 %709 }
 0x3d9   :  { %6692 = vst [vmem:[#allocation21_spill] sm:$0xff] %v5457_v16  ;;  %6693 = vst [vmem:[#allocation22_spill] sm:$0xff] %v5459_v22  ;;  %v748_v24 = vmul.f32 %v5457_v16, %v5326_v62  ;;  %v747_v25 = vmul.f32 %v5459_v22, %v5322_v60 }
 0x3db   :  { %v761_v26 = vrot.slane %v748_v24, 4  ;;  %v755_v28 = vrot.slane %v747_v25, 4 }
 0x3dc   :  { %v5465_v29 = vpop.permute.xlu1 %719 }
 0x3dd   :  { %6694 = vst [vmem:[#allocation23_spill] sm:$0xff] %v5465_v29  ;;  %v762_v27 = vadd.f32 %v761_v26, %v748_v24  ;;  %v756_v30 = vadd.f32 %v755_v28, %v747_v25  ;;  %v749_v31 = vmul.f32 %v5465_v29, %v5330_v1 }
 0x3df   :  { %v763_v32 = vrot.slane %v762_v27, 2  ;;  %v757_v33 = vrot.slane %v756_v30, 2  ;;  %v767_v34 = vrot.slane %v749_v31, 4 }
 0x3e0   :  { %v5469_v35 = vpop.permute.xlu1 %724 }
 0x3e1   :  { %6695 = vst [vmem:[#allocation24_spill] sm:$0xff] %v5469_v35  ;;  %v764_v36 = vadd.f32 %v763_v32, %v762_v27  ;;  %v758_v37 = vadd.f32 %v757_v33, %v756_v30  ;;  %v768_v40 = vadd.f32 %v767_v34, %v749_v31  ;;  %v750_v41 = vmul.f32 %v5469_v35, %v5334_v3 }
 0x3e3   :  { %v765_v42 = vrot.slane %v764_v36, 1  ;;  %v759_v43 = vrot.slane %v758_v37, 1  ;;  %v769_v44 = vrot.slane %v768_v40, 2  ;;  %v773_v45 = vrot.slane %v750_v41, 4 }
 0x3e4   :  { %v5473_v47 = vpop.permute.xlu1 %729 }
 0x3e5   :  { %v766_v48 = vadd.f32 %v765_v42, %v764_v36  ;;  %v760_v53 = vadd.f32 %v759_v43, %v758_v37  ;;  %v770_v55 = vadd.f32 %v769_v44, %v768_v40  ;;  %v774_v52 = vadd.f32 %v773_v45, %v750_v41 }
 0x3e6   :  { %v751_v57 = vmul.f32 %v5473_v47, %v5338_v5 }
 0x3e7   :  { %v811_v54 = vsel %vm128_vm1, %v766_v48, %v760_v53  ;;  %v771_v59 = vrot.slane %v770_v55, 1  ;;  %v775_v13 = vrot.slane %v774_v52, 2 }
 0x3e8   :  { %v779_v20 = vrot.slane %v751_v57, 4  ;;  %v5478_v21 = vpop.permute.xlu1 %734 }
 0x3e9   :  { %6696 = vst [vmem:[#allocation25_spill] sm:$0xff] %v5478_v21  ;;  %v772_v24 = vadd.f32 %v771_v59, %v770_v55  ;;  %v776_v25 = vadd.f32 %v775_v13, %v774_v52  ;;  %v752_v26 = vmul.f32 %v5478_v21, %v5342_v7 }
 0x3ea   :  { %v780_v28 = vadd.f32 %v779_v20, %v751_v57 }
 0x3eb   :  { %v812_v27 = vsel %vm131_vm2, %v772_v24, %v811_v54  ;;  %v777_v30 = vrot.slane %v776_v25, 1  ;;  %v785_v31 = vrot.slane %v752_v26, 4 }
 0x3ec   :  { %v781_v32 = vrot.slane %v780_v28, 2  ;;  %v5483_v33 = vpop.permute.xlu1 %739 }
 0x3ed   :  { %6697 = vst [vmem:[#allocation26_spill] sm:$0xff] %v5483_v33  ;;  %v778_v34 = vadd.f32 %v777_v30, %v776_v25  ;;  %v786_v36 = vadd.f32 %v785_v31, %v752_v26  ;;  %v753_v37 = vmul.f32 %v5483_v33, %v5346_v9 }
 0x3ee   :  { %v782_v40 = vadd.f32 %v781_v32, %v780_v28 }
 0x3ef   :  { %v813_v41 = vsel %vm134_vm3, %v778_v34, %v812_v27  ;;  %v787_v42 = vrot.slane %v786_v36, 2  ;;  %v791_v43 = vrot.slane %v753_v37, 4 }
 0x3f0   :  { %v783_v44 = vrot.slane %v782_v40, 1  ;;  %v5488_v45 = vpop.permute.xlu1 %744 }
 0x3f1   :  { %6698 = vst [vmem:[#allocation27_spill] sm:$0xff] %v5488_v45  ;;  %v788_v48 = vadd.f32 %v787_v42, %v786_v36  ;;  %v792_v53 = vadd.f32 %v791_v43, %v753_v37  ;;  %v754_v55 = vmul.f32 %v5488_v45, %v5350_v11  ;;  %v4680_v37 = vld [vmem:[%s6621_s6] ss:$0 sm:$0xff] }
 0x3f2   :  { %v784_v52 = vadd.f32 %v783_v44, %v782_v40 }
 0x3f3   :  { %v789_v57 = vrot.slane %v788_v48, 1  ;;  %v793_v54 = vrot.slane %v792_v53, 2  ;;  %v797_v59 = vrot.slane %v754_v55, 4 }
 0x3f4   :  { %v814_v13 = vsel %vm137_vm4, %v784_v52, %v813_v41 }
 0x3f5   :  { %v790_v20 = vadd.f32 %v789_v57, %v788_v48  ;;  %v794_v24 = vadd.f32 %v793_v54, %v792_v53  ;;  %v798_v25 = vadd.f32 %v797_v59, %v754_v55 }
 0x3f7   :  { %v815_v26 = vsel %vm140_vm5, %v790_v20, %v814_v13  ;;  %v795_v28 = vrot.slane %v794_v24, 1  ;;  %v799_v27 = vrot.slane %v798_v25, 2  ;;  %v92_v13 = vld [vmem:[#allocation4 + $0x88] sm:$0xff]  ;;  %v94_v20 = vld [vmem:[#allocation4 + $0x98] sm:$0xff] }
 0x3f9   :  { %v796_v30 = vadd.f32 %v795_v28, %v794_v24  ;;  %v800_v31 = vadd.f32 %v799_v27, %v798_v25  ;;  %v91_v24 = vld [vmem:[#allocation4 + $0x80] sm:$0xff]  ;;  %v4751_v25 = vpack.c.bf16 %v94_v20, %v92_v13  ;;  %v96_v28 = vld [vmem:[#allocation4 + $0xa8] sm:$0xff]  ;;  %v98_v27 = vld [vmem:[#allocation4 + $0xb8] sm:$0xff] }
 0x3fb   :  { %v816_v32 = vsel %vm143_vm6, %v796_v30, %v815_v26  ;;  %v801_v34 = vrot.slane %v800_v31, 1  ;;  %v93_v26 = vld [vmem:[#allocation4 + $0x90] sm:$0xff]  ;;  %4752 = vmatprep.subr.bf16.mxu0 %v4751_v25  ;;  %4768 = vmatprep.subr.bf16.mxu1 %v4751_v25 }
 0x3fd   :  { %v802_v36 = vadd.f32 %v801_v34, %v800_v31  ;;  %v5506_v31 = vpack.c.bf16 %v93_v26, %v91_v24  ;;  %v95_v34 = vld [vmem:[#allocation4 + $0xa0] sm:$0xff] }
 0x3ff   :  { %v817_v40 = vsel %vm145_vm7, %v802_v36, %v816_v32  ;;  %v5508_v32 = vpack.c.bf16 %v98_v27, %v96_v28  ;;  %v97_v36 = vld [vmem:[#allocation4 + $0xb0] sm:$0xff]  ;;  %4754 = vmatpush1.bf16.msra.mxu0 %v5506_v31  ;;  %4770 = vmatpush1.bf16.msra.mxu1 %v5506_v31 }
 0x400   :  { %v819_v41 = vadd.f32 %v817_v40, %v5360_v19  ;;  %v5512_v40 = vpack.c.bf16 %v97_v36, %v95_v34 }
 0x401   :  { %4756 = vmatprep.subr.bf16.mxu0 %v5508_v32  ;;  %4772 = vmatprep.subr.bf16.mxu1 %v5508_v32 }
 0x402   :  { %v820_v42 = vadd.f32 %v4680_v37, %v819_v41  ;;  %v102_v37 = vld [vmem:[#allocation4 + $0xd8] sm:$0xff] }
 0x403   :  { %4758 = vmatpush1.bf16.msra.mxu0 %v5512_v40  ;;  %4774 = vmatpush1.bf16.msra.mxu1 %v5512_v40 }
 0x404   :  { %4894 = vtanh.f32 %v820_v42  ;;  %v4683_v44 = vmul.f32 -1.442695, %v820_v42  ;;  %v99_v42 = vld [vmem:[#allocation4 + $0xc0] sm:$0xff] }
 0x406   :  { %4896 = vpow2.f32 %v4683_v44  ;;  %v104_v44 = vld [vmem:[#allocation4 + $0xe8] sm:$0xff] }
 0x40e   :  { %v4895_v43 = vpop.eup %4894 }
 0x40f   :  { %830 = vrot.lane.b32.xlu1 %v4895_v43, %s5174_s28  ;;  %v101_v43 = vld [vmem:[#allocation4 + $0xd0] sm:$0xff] }
 0x410   :  { %v4897_v48 = vpop.eup %4896 }
 0x411   :  { %v824_v53 = vadd.f32 1.0, %v4897_v48  ;;  %v106_v48 = vld [vmem:[#allocation4 + $0xf8] sm:$0xff] }
 0x413   :  { %4898 = vrcp.f32 %v824_v53  ;;  %v5520_v53 = vpack.c.bf16 %v101_v43, %v99_v42 }
 0x41d   :  { %v4899_v55 = vpop.eup %4898 }
 0x41e   :  { %v828_v54 = vmul.f32 %v4899_v55, %v5316_v58  ;;  %v100_v58 = vld [vmem:[#allocation4 + $0xc8] sm:$0xff] }
 0x41f   :  { %v5515_v41 = vpack.c.bf16 %v102_v37, %v100_v58 }
 0x421   :  { %4760 = vmatprep.subr.bf16.mxu0 %v5515_v41  ;;  %4776 = vmatprep.subr.bf16.mxu1 %v5515_v41 }
 0x422   :  { %4762 = vmatpush1.bf16.msra.mxu0 %v5520_v53  ;;  %4778 = vmatpush1.bf16.msra.mxu1 %v5520_v53 }
 0x481   :  { %v831_v52 = vpop.permute.xlu1 %830 }
 0x482   :  { %v833_v57 = vmul.f32 %v4899_v55, %v831_v52  ;;  %v5523_v52 = vpack.c.bf16 %v106_v48, %v104_v44 }
 0x484   :  { %835 = vrot.lane.b32.xlu1 %v833_v57, %s5175_s29  ;;  %v103_v57 = vld [vmem:[#allocation4 + $0xe0] sm:$0xff]  ;;  %4764 = vmatprep.subr.bf16.mxu0 %v5523_v52 }
 0x485   :  { %4780 = vmatprep.subr.bf16.mxu1 %v5523_v52 }
 0x4f6   :  { %v836_v19 = vpop.permute.xlu1 %835 }
 0x4f7   :  { %v5503_v59 = vadd.f32 %v836_v19, %v828_v54  ;;  %v105_v54 = vld [vmem:[#allocation4 + $0xf0] sm:$0xff] }
 0x4f8   :  { %v5528_v19 = vpack.c.bf16 %v105_v54, %v103_v57 }
 0x4f9   :  { %4900 = vtanh.f32 %v5503_v59 }
 0x4fa   :  { %4766 = vmatpush1.bf16.msra.mxu0 %v5528_v19  ;;  %4782 = vmatpush1.bf16.msra.mxu1 %v5528_v19 }
 0x4fb   :  { %4784 = vmatprep.subr.bf16.mxu0 %v4751_v25  ;;  %4800 = vmatprep.subr.bf16.mxu1 %v4751_v25 }
 0x503   :  { %v4901_v30 = vpop.eup %4900 }
 0x504   :  { %841 = vrot.lane.b32.xlu0 %v4901_v30, %s5174_s28 }
 0x576   :  { %v842_v13 = vpop.permute.xlu0 %841 }
 0x577   :  { %v5535_v20 = vmul.f32 %v4899_v55, %v842_v13 }
 0x579   :  { %846 = vrot.lane.b32.xlu1 %v5535_v20, %s5175_s29 }
 0x5eb   :  { %v847_v24 = vpop.permute.xlu1 %846 }
 0x5ec   :  { %v849_v26 = vsel %vm373_vm9, %v847_v24, %v5503_v59 }
 0x5ed   :  { %4684 = vmatmul.mubr.msk.f32.vlgmr.msra.gmra.mrb[4].mxu0 %vm375_vm10, %v849_v26 }
 0x5ee   :  { %4786 = vmatpush1.bf16.msra.mxu0 %v5506_v31  ;;  %1861 = vmatprep.mubr.f32.mxu0 %v6626_v0 }
 0x5ef   :  { %4788 = vmatprep.subr.bf16.mxu0 %v5508_v32 }
 0x5f2   :  { %4790 = vmatpush1.bf16.msra.mxu0 %v5512_v40 }
 0x5f3   :  { %4792 = vmatprep.subr.bf16.mxu0 %v5515_v41 }
 0x5f6   :  { %4794 = vmatpush1.bf16.msra.mxu0 %v5520_v53 }
 0x5f7   :  { %4796 = vmatprep.subr.bf16.mxu0 %v5523_v52 }
 0x5fa   :  { %4798 = vmatpush1.bf16.msra.mxu0 %v5528_v19 }
 0x5fb   :  { %4816 = vmatprep.subr.bf16.mxu0 %v4751_v25 }
 0x6c0   :  { %v5550_v55 = vpop.f32.mrb[4].mxu0 }
 0x6c1   :  { %v921_v28 = vpop.f32.mrb[5].mxu0 }
 0x6c2   :  { %v925_v27 = vcombine.high %v921_v28, %v921_v28  ;;  %v932_v30 = vrot.slane %v921_v28, %v5358_v18 }
 0x6c4   :  { %v939_v34 = vrot.slane %v925_v27, %v5358_v18  ;;  %v940_v36 = vcombine.high %v932_v30, %v932_v30  ;;  %v948_v58 = vrot.slane %v932_v30, %v5358_v18 }
 0x6c6   :  { %v941_v37 = vcombine.high %v939_v34, %v939_v34  ;;  %v955_v42 = vrot.slane %v939_v34, %v5358_v18  ;;  %v962_v43 = vrot.slane %v940_v36, %v5358_v18  ;;  %v970_v44 = vcombine.high %v948_v58, %v948_v58 }
 0x6c7   :  { %v977_v48 = vrot.slane %v948_v58, %v5364_v23 }
 0x6c8   :  { %v969_v25 = vrot.slane %v941_v37, %v5358_v18  ;;  %v971_v57 = vcombine.high %v955_v42, %v955_v42  ;;  %v972_v54 = vcombine.high %v962_v43, %v962_v43  ;;  %v981_v13 = vrot.slane %v962_v43, %v5364_v23 }
 0x6c9   :  { %v985_v24 = vrot.slane %v970_v44, %v5364_v23  ;;  %v993_v26 = vrot.slane %v955_v42, %v5364_v23  ;;  %v1014_v28 = vadd.f32 %v977_v48, %v5324_v61 }
 0x6ca   :  { %v973_v27 = vcombine.high %v969_v25, %v969_v25  ;;  %v989_v30 = vrot.slane %v972_v54, %v5364_v23  ;;  %v997_v34 = vrot.slane %v969_v25, %v5364_v23  ;;  %v1001_v36 = vrot.slane %v971_v57, %v5364_v23 }
 0x6cb   :  { %v1015_v58 = vadd.f32 %v981_v13, %v5328_v63  ;;  %v1016_v37 = vadd.f32 %v985_v24, %v5332_v2  ;;  %v1018_v0 = vadd.f32 %v993_v26, %v5340_v6  ;;  %4902 = vtanh.f32 %v1014_v28 }
 0x6cc   :  { %v1005_v43 = vrot.slane %v973_v27, %v5364_v23  ;;  %v1017_v42 = vadd.f32 %v989_v30, %v5336_v4  ;;  %v1019_v44 = vadd.f32 %v997_v34, %v5344_v8  ;;  %v1020_v48 = vadd.f32 %v1001_v36, %v5348_v10 }
 0x6cd   :  { %4904 = vtanh.f32 %v1015_v58 }
 0x6ce   :  { %v1021_v25 = vadd.f32 %v1005_v43, %v5352_v12  ;;  %4906 = vtanh.f32 %v1016_v37 }
 0x6cf   :  { %4908 = vtanh.f32 %v1017_v42 }
 0x6d0   :  { %4910 = vtanh.f32 %v1018_v0 }
 0x6d1   :  { %4912 = vtanh.f32 %v1020_v48 }
 0x6d2   :  { %4914 = vtanh.f32 %v1019_v44 }
 0x6d3   :  { %4916 = vtanh.f32 %v1021_v25 }
 0x6d5   :  { %v4903_v57 = vpop.eup %4902 }
 0x6d6   :  { %v1030_v54 = vmul.f32 %v4903_v57, %v5390_v51 }
 0x6d7   :  { %v4905_v13 = vpop.eup %4904 }
 0x6d8   :  { %v4907_v24 = vpop.eup %4906  ;;  %v1038_v26 = vsel %vm147_vm8, %v1030_v54, 0.0  ;;  %v1031_v28 = vmul.f32 %v4905_v13, %v5390_v51 }
 0x6d9   :  { %v4909_v27 = vpop.eup %4908  ;;  %1039 = vadd.xlane.f32.xlu0 %v1038_v26  ;;  %v1032_v30 = vmul.f32 %v4907_v24, %v5390_v51 }
 0x6da   :  { %v4911_v34 = vpop.eup %4910  ;;  %v1041_v36 = vsel %vm147_vm8, %v1031_v28, 0.0  ;;  %v1033_v43 = vmul.f32 %v4909_v27, %v5390_v51 }
 0x6db   :  { %1042 = vadd.xlane.f32.xlu1 %v1041_v36  ;;  %v1034_v0 = vmul.f32 %v4911_v34, %v5390_v51  ;;  %v4913_v58 = vpop.eup %4912  ;;  %v1044_v37 = vsel %vm147_vm8, %v1032_v30, 0.0 }
 0x6dc   :  { %v4915_v42 = vpop.eup %4914  ;;  %v1036_v48 = vmul.f32 %v4913_v58, %v5390_v51  ;;  %v1047_v25 = vsel %vm147_vm8, %v1033_v43, 0.0 }
 0x6dd   :  { %1045 = vadd.xlane.f32.xlu0 %v1044_v37  ;;  %v1050_v44 = vsel %vm147_vm8, %v1034_v0, 0.0  ;;  %v1035_v57 = vmul.f32 %v4915_v42, %v5390_v51  ;;  %v4917_v54 = vpop.eup %4916 }
 0x6de   :  { %v1056_v13 = vsel %vm147_vm8, %v1036_v48, 0.0  ;;  %v1037_v26 = vmul.f32 %v4917_v54, %v5390_v51 }
 0x6df   :  { %1051 = vadd.xlane.f32.xlu1 %v1050_v44  ;;  %v1053_v24 = vsel %vm147_vm8, %v1035_v57, 0.0 }
 0x6e0   :  { %v1059_v28 = vsel %vm147_vm8, %v1037_v26, 0.0 }
 0x6e1   :  { %1048 = vadd.xlane.f32.xlu0 %v1047_v25 }
 0x6e3   :  { %1057 = vadd.xlane.f32.xlu1 %v1056_v13 }
 0x6e5   :  { %1054 = vadd.xlane.f32.xlu0 %v1053_v24 }
 0x6e9   :  { %1060 = vadd.xlane.f32.xlu0 %v1059_v28 }
 0x766   :  { %v1040_v27 = vpop.xlane.xlu0 %1039 }
 0x767   :  { %v1062_v30 = vmul.f32 1.442695, %v1040_v27 }
 0x768   :  { %v1043_v34 = vpop.xlane.xlu1 %1042 }
 0x769   :  { %v1064_v36 = vmul.f32 1.442695, %v1043_v34  ;;  %4918 = vpow2.f32 %v1062_v30 }
 0x76a   :  { %v1046_v0 = vpop.xlane.xlu0 %1045 }
 0x76b   :  { %4920 = vpow2.f32 %v1064_v36  ;;  %v1066_v58 = vmul.f32 1.442695, %v1046_v0 }
 0x76c   :  { %v1052_v37 = vpop.xlane.xlu1 %1051 }
 0x76d   :  { %4922 = vpow2.f32 %v1066_v58  ;;  %v1070_v43 = vmul.f32 1.442695, %v1052_v37 }
 0x76e   :  { %v1049_v42 = vpop.xlane.xlu0 %1048 }
 0x76f   :  { %v1068_v44 = vmul.f32 1.442695, %v1049_v42 }
 0x770   :  { %v1058_v48 = vpop.xlane.xlu1 %1057 }
 0x771   :  { %4924 = vpow2.f32 %v1068_v44  ;;  %v1074_v51 = vmul.f32 1.442695, %v1058_v48 }
 0x772   :  { %4926 = vpow2.f32 %v1070_v43  ;;  %v1055_v25 = vpop.xlane.xlu0 %1054 }
 0x773   :  { %v1072_v57 = vmul.f32 1.442695, %v1055_v25  ;;  %v4919_v54 = vpop.eup %4918 }
 0x774   :  { %v1089_v30 = vrot.slane %v4919_v54, %v5410_v50 }
 0x775   :  { %v4921_v13 = vpop.eup %4920  ;;  %4928 = vpow2.f32 %v1072_v57 }
 0x776   :  { %v1093_v24 = vrot.slane %v4921_v13, %v5410_v50  ;;  %4930 = vpow2.f32 %v1074_v51  ;;  %v1061_v26 = vpop.xlane.xlu0 %1060 }
 0x777   :  { %v4923_v28 = vpop.eup %4922  ;;  %v1076_v27 = vmul.f32 1.442695, %v1061_v26 }
 0x778   :  { %v1097_v34 = vrot.slane %v4923_v28, %v5410_v50  ;;  %v1118_v36 = vsel %vm128_vm1, %v1093_v24, %v1089_v30 }
 0x779   :  { %4932 = vpow2.f32 %v1076_v27 }
 0x77a   :  { %v1119_v43 = vsel %vm131_vm2, %v1097_v34, %v1118_v36 }
 0x77b   :  { %v4925_v0 = vpop.eup %4924 }
 0x77c   :  { %v4927_v58 = vpop.eup %4926  ;;  %v1101_v37 = vrot.slane %v4925_v0, %v5410_v50 }
 0x77d   :  { %v1105_v48 = vrot.slane %v4927_v58, %v5410_v50 }
 0x77e   :  { %v1120_v42 = vsel %vm134_vm3, %v1101_v37, %v1119_v43 }
 0x77f   :  { %v4929_v44 = vpop.eup %4928  ;;  %v1121_v57 = vsel %vm137_vm4, %v1105_v48, %v1120_v42 }
 0x780   :  { %v4931_v51 = vpop.eup %4930  ;;  %v1109_v25 = vrot.slane %v4929_v44, %v5410_v50 }
 0x781   :  { %v1113_v24 = vrot.slane %v4931_v51, %v5410_v50 }
 0x782   :  { %v1122_v26 = vsel %vm140_vm5, %v1109_v25, %v1121_v57 }
 0x783   :  { %v4933_v27 = vpop.eup %4932  ;;  %v1123_v17 = vsel %vm143_vm6, %v1113_v24, %v1122_v26 }
 0x784   :  { %v1117_v30 = vrot.slane %v4933_v27, %v5410_v50 }
 0x786   :  { %v1124_v34 = vsel %vm145_vm7, %v1117_v30, %v1123_v17 }
 0x787   :  { %v1126_v36 = vsel %vm147_vm8, %v1124_v34, 0.0 }
 0x788   :  { %1127 = vadd.xlane.f32.xlu1 %v1126_v36 }
 0x815   :  { %v1128_v37 = vpop.xlane.xlu1 %1127 }
 0x816   :  { %4934 = vrcp.f32 %v1128_v37 }
 0x820   :  { %v4935_v43 = vpop.eup %4934 }
 0x821   :  { %v1138_v45 = vrot.slane %v4935_v43, %v5429_v38  ;;  %v1134_v42 = vrot.slane %v4935_v43, %v5364_v23  ;;  %v1142_v57 = vrot.slane %v4935_v43, %v5432_v39  ;;  %v1146_v33 = vrot.slane %v4935_v43, %v5438_v46 }
 0x822   :  { %v1150_v24 = vrot.slane %v4935_v43, %v5442_v49  ;;  %v1154_v30 = vrot.slane %v4935_v43, %v5446_v56  ;;  %v1158_v37 = vrot.slane %v4935_v43, %v5450_v15 }
 0x823   :  { %v1172_v48 = vmul.f32 %v4921_v13, %v1138_v45  ;;  %v1171_v25 = vmul.f32 %v4919_v54, %v1134_v42  ;;  %v1173_v26 = vmul.f32 %v4923_v28, %v1142_v57  ;;  %v1174_v17 = vmul.f32 %v4925_v0, %v1146_v33 }
 0x824   :  { %v1175_v34 = vmul.f32 %v4927_v58, %v1150_v24  ;;  %v1176_v36 = vmul.f32 %v4929_v44, %v1154_v30  ;;  %v1162_v45 = vrot.slane %v4935_v43, %v5454_v14  ;;  %v1177_v54 = vmul.f32 %v4931_v51, %v1158_v37 }
 0x825   :  { %1186 = vperm.xlu1 %4852, %v1172_v48   ;;  %1181 = vperm.xlu0 %4853, %v1171_v25  }
 0x826   :  { %v1178_v13 = vmul.f32 %v4933_v27, %v1162_v45 }
 0x829   :  { %1191 = vperm.xlu1 %4852, %v1173_v26   ;;  %1196 = vperm.xlu0 %4853, %v1174_v17  }
 0x82d   :  { %1201 = vperm.xlu1 %4852, %v1175_v34   ;;  %1206 = vperm.xlu0 %4853, %v1176_v36  }
 0x831   :  { %1211 = vperm.xlu1 %4852, %v1177_v54   ;;  %1216 = vperm.xlu0 %4853, %v1178_v13  }
 0x8a4   :  { %v5614_v28 = vpop.permute.xlu1 %1186  ;;  %v5616_v33 = vpop.permute.xlu0 %1181 }
 0x8a5   :  { %6699 = vst [vmem:[#allocation28_spill] sm:$0xff] %v5614_v28  ;;  %6700 = vst [vmem:[#allocation29_spill] sm:$0xff] %v5616_v33  ;;  %v1220_v0 = vmul.f32 %v5614_v28, %v5326_v62  ;;  %v1219_v58 = vmul.f32 %v5616_v33, %v5322_v60 }
 0x8a7   :  { %v1233_v44 = vrot.slane %v1220_v0, 4  ;;  %v1227_v42 = vrot.slane %v1219_v58, 4 }
 0x8a8   :  { %v5622_v48 = vpop.permute.xlu1 %1191  ;;  %v5624_v43 = vpop.permute.xlu0 %1196 }
 0x8a9   :  { %6701 = vst [vmem:[#allocation30_spill] sm:$0xff] %v5622_v48  ;;  %v1234_v51 = vadd.f32 %v1233_v44, %v1220_v0  ;;  %v1228_v27 = vadd.f32 %v1227_v42, %v1219_v58  ;;  %v1221_v25 = vmul.f32 %v5622_v48, %v5330_v1  ;;  %v1222_v57 = vmul.f32 %v5624_v43, %v5334_v3 }
 0x8ab   :  { %v1235_v26 = vrot.slane %v1234_v51, 2  ;;  %v1229_v17 = vrot.slane %v1228_v27, 2  ;;  %v1239_v24 = vrot.slane %v1221_v25, 4  ;;  %v1245_v30 = vrot.slane %v1222_v57, 4 }
 0x8ac   :  { %v5630_v34 = vpop.permute.xlu1 %1201  ;;  %v5632_v36 = vpop.permute.xlu0 %1206 }
 0x8ad   :  { %6702 = vst [vmem:[#allocation31_spill] sm:$0xff] %v5632_v36  ;;  %v1236_v37 = vadd.f32 %v1235_v26, %v1234_v51  ;;  %v1230_v45 = vadd.f32 %v1229_v17, %v1228_v27  ;;  %v1240_v54 = vadd.f32 %v1239_v24, %v1221_v25  ;;  %v1223_v13 = vmul.f32 %v5630_v34, %v5338_v5 }
 0x8ae   :  { %v1246_v0 = vadd.f32 %v1245_v30, %v1222_v57  ;;  %v1224_v58 = vmul.f32 %v5632_v36, %v5342_v7 }
 0x8af   :  { %v1237_v44 = vrot.slane %v1236_v37, 1  ;;  %v1231_v42 = vrot.slane %v1230_v45, 1  ;;  %v1241_v29 = vrot.slane %v1240_v54, 2  ;;  %v1251_v48 = vrot.slane %v1223_v13, 4 }
 0x8b0   :  { %v1247_v22 = vrot.slane %v1246_v0, 2  ;;  %v1257_v16 = vrot.slane %v1224_v58, 4  ;;  %v5638_v33 = vpop.permute.xlu1 %1211  ;;  %v5640_v28 = vpop.permute.xlu0 %1216 }
 0x8b1   :  { %6703 = vst [vmem:[#allocation32_spill] sm:$0xff] %v5638_v33  ;;  %6704 = vst [vmem:[#allocation33_spill] sm:$0xff] %v5640_v28  ;;  %v1238_v51 = vadd.f32 %v1237_v44, %v1236_v37  ;;  %v1232_v27 = vadd.f32 %v1231_v42, %v1230_v45  ;;  %v1242_v25 = vadd.f32 %v1241_v29, %v1240_v54 }
 0x8b2   :  { %v1252_v26 = vadd.f32 %v1251_v48, %v1223_v13  ;;  %v1248_v17 = vadd.f32 %v1247_v22, %v1246_v0  ;;  %v1258_v24 = vadd.f32 %v1257_v16, %v1224_v58  ;;  %v1225_v57 = vmul.f32 %v5638_v33, %v5346_v9 }
 0x8b3   :  { %v1283_v30 = vsel %vm128_vm1, %v1238_v51, %v1232_v27  ;;  %v1243_v7 = vrot.slane %v1242_v25, 1  ;;  %v1226_v3 = vmul.f32 %v5640_v28, %v5350_v11 }
 0x8b4   :  { %v1253_v21 = vrot.slane %v1252_v26, 2  ;;  %v1249_v36 = vrot.slane %v1248_v17, 1  ;;  %v1259_v1 = vrot.slane %v1258_v24, 2  ;;  %v1263_v35 = vrot.slane %v1225_v57, 4 }
 0x8b5   :  { %v1244_v5 = vadd.f32 %v1243_v7, %v1242_v25  ;;  %v1269_v45 = vrot.slane %v1226_v3, 4 }
 0x8b6   :  { %v1254_v37 = vadd.f32 %v1253_v21, %v1252_v26  ;;  %v1250_v29 = vadd.f32 %v1249_v36, %v1248_v17  ;;  %v1260_v48 = vadd.f32 %v1259_v1, %v1258_v24  ;;  %v1264_v22 = vadd.f32 %v1263_v35, %v1225_v57 }
 0x8b7   :  { %v1284_v16 = vsel %vm131_vm2, %v1244_v5, %v1283_v30  ;;  %v1270_v13 = vadd.f32 %v1269_v45, %v1226_v3  ;;  %v5655_v3 = vld [vmem:[%s6621_s6 + $0x1] ss:$0 sm:$0xff] }
 0x8b8   :  { %v1255_v54 = vrot.slane %v1254_v37, 1  ;;  %v1285_v0 = vsel %vm134_vm3, %v1250_v29, %v1284_v16  ;;  %v1261_v58 = vrot.slane %v1260_v48, 1  ;;  %v1265_v44 = vrot.slane %v1264_v22, 2 }
 0x8b9   :  { %v1271_v51 = vrot.slane %v1270_v13, 2 }
 0x8ba   :  { %v1256_v42 = vadd.f32 %v1255_v54, %v1254_v37  ;;  %v1262_v27 = vadd.f32 %v1261_v58, %v1260_v48  ;;  %v1266_v28 = vadd.f32 %v1265_v44, %v1264_v22  ;;  %v3205_v54 = vcombine.high %v5535_v20, %v5535_v20 }
 0x8bb   :  { %v1272_v7 = vadd.f32 %v1271_v51, %v1270_v13  ;;  %v3212_v13 = vrot.slane %v5535_v20, %v5358_v18 }
 0x8bc   :  { %v1286_v33 = vsel %vm137_vm4, %v1256_v42, %v1285_v0  ;;  %v1267_v36 = vrot.slane %v1266_v28, 1  ;;  %v3219_v0 = vrot.slane %v3205_v54, %v5358_v18 }
 0x8bd   :  { %v1287_v21 = vsel %vm140_vm5, %v1262_v27, %v1286_v33  ;;  %v1273_v1 = vrot.slane %v1272_v7, 1  ;;  %v3220_v42 = vcombine.high %v3212_v13, %v3212_v13 }
 0x8be   :  { %v1268_v35 = vadd.f32 %v1267_v36, %v1266_v28 }
 0x8bf   :  { %v1274_v25 = vadd.f32 %v1273_v1, %v1272_v7  ;;  %v3221_v7 = vcombine.high %v3219_v0, %v3219_v0 }
 0x8c0   :  { %v1288_v5 = vsel %vm143_vm6, %v1268_v35, %v1287_v21  ;;  %v3235_v21 = vrot.slane %v3219_v0, %v5358_v18  ;;  %v3242_v35 = vrot.slane %v3220_v42, %v5358_v18 }
 0x8c1   :  { %v1289_v26 = vsel %vm145_vm7, %v1274_v25, %v1288_v5 }
 0x8c2   :  { %v1291_v17 = vadd.f32 %v1289_v26, %v5550_v55 }
 0x8c4   :  { %v1292_v24 = vadd.f32 %v5655_v3, %v1291_v17 }
 0x8c6   :  { %4936 = vtanh.f32 %v1292_v24  ;;  %v4685_v33 = vmul.f32 -1.442695, %v1292_v24 }
 0x8c8   :  { %4938 = vpow2.f32 %v4685_v33  ;;  %v3251_v33 = vcombine.high %v3235_v21, %v3235_v21 }
 0x8d0   :  { %v4937_v57 = vpop.eup %4936 }
 0x8d1   :  { %1302 = vrot.lane.b32.xlu1 %v4937_v57, %s5174_s28  ;;  %v3249_v57 = vrot.slane %v3221_v7, %v5358_v18 }
 0x8d2   :  { %v4939_v28 = vpop.eup %4938 }
 0x8d3   :  { %v1296_v30 = vadd.f32 1.0, %v4939_v28  ;;  %v3253_v42 = vcombine.high %v3249_v57, %v3249_v57 }
 0x8d5   :  { %4940 = vrcp.f32 %v1296_v30 }
 0x8df   :  { %v4941_v37 = vpop.eup %4940 }
 0x8e0   :  { %v1300_v48 = vmul.f32 %v4941_v37, %v5503_v59  ;;  %v3228_v59 = vrot.slane %v3212_v13, %v5358_v18 }
 0x8e2   :  { %v3250_v25 = vcombine.high %v3228_v59, %v3228_v59 }
 0x943   :  { %v1303_v45 = vpop.permute.xlu1 %1302 }
 0x944   :  { %v1305_v29 = vmul.f32 %v4941_v37, %v1303_v45 }
 0x946   :  { %1307 = vrot.lane.b32.xlu0 %v1305_v29, %s5175_s29 }
 0x9b8   :  { %v1308_v22 = vpop.permute.xlu0 %1307 }
 0x9b9   :  { %v5663_v55 = vadd.f32 %v1308_v22, %v1300_v48  ;;  %v3252_v48 = vcombine.high %v3242_v35, %v3242_v35 }
 0x9bb   :  { %4942 = vtanh.f32 %v5663_v55 }
 0x9c5   :  { %v4943_v16 = vpop.eup %4942 }
 0x9c6   :  { %1313 = vrot.lane.b32.xlu1 %v4943_v16, %s5174_s28 }
 0xa38   :  { %v1314_v58 = vpop.permute.xlu1 %1313 }
 0xa39   :  { %v1316_v44 = vmul.f32 %v4941_v37, %v1314_v58 }
 0xa3b   :  { %v3262_v51 = vcombine.high %v1316_v44, %v1316_v44  ;;  %v3269_v27 = vrot.slane %v1316_v44, %v5358_v18  ;;  %1318 = vrot.lane.b32.xlu0 %v1316_v44, %s5175_s29 }
 0xa3d   :  { %v3276_v36 = vrot.slane %v3262_v51, %v5358_v18  ;;  %v3277_v1 = vcombine.high %v3269_v27, %v3269_v27  ;;  %v3285_v20 = vrot.slane %v3269_v27, %v5358_v18 }
 0xa3f   :  { %v3278_v5 = vcombine.high %v3276_v36, %v3276_v36  ;;  %v3292_v26 = vrot.slane %v3276_v36, %v5358_v18  ;;  %v3299_v17 = vrot.slane %v3277_v1, %v5358_v18  ;;  %v3307_v24 = vcombine.high %v3285_v20, %v3285_v20 }
 0xa40   :  { %v3511_v28 = vrot.slane %v3285_v20, %v5364_v23 }
 0xa41   :  { %v3306_v30 = vrot.slane %v3278_v5, %v5358_v18  ;;  %v3308_v37 = vcombine.high %v3292_v26, %v3292_v26  ;;  %v3309_v45 = vcombine.high %v3299_v17, %v3299_v17  ;;  %v3515_v29 = vrot.slane %v3299_v17, %v5364_v23 }
 0xa42   :  { %v3519_v22 = vrot.slane %v3307_v24, %v5364_v23  ;;  %v3527_v16 = vrot.slane %v3292_v26, %v5364_v23  ;;  %v5688_v54 = vsel %vm3708_vm11, %v3228_v59, %v3511_v28 }
 0xa43   :  { %v3310_v13 = vcombine.high %v3306_v30, %v3306_v30  ;;  %v3523_v0 = vrot.slane %v3309_v45, %v5364_v23  ;;  %v3531_v58 = vrot.slane %v3306_v30, %v5364_v23  ;;  %v3535_v44 = vrot.slane %v3308_v37, %v5364_v23 }
 0xa44   :  { %v5694_v51 = vsel %vm3708_vm11, %v3242_v35, %v3515_v29  ;;  %v5697_v27 = vsel %vm3708_vm11, %v3250_v25, %v3519_v22  ;;  %v5700_v7 = vsel %vm3708_vm11, %v3235_v21, %v3527_v16  ;;  %v6705_v21 = vmov 0.0  }
 0xa45   :  { %v3539_v59 = vrot.slane %v3310_v13, %v5364_v23  ;;  %v5704_v36 = vsel %vm3708_vm11, %v3252_v48, %v3523_v0  ;;  %v5707_v1 = vsel %vm3708_vm11, %v3249_v57, %v3531_v58  ;;  %v5710_v20 = vsel %vm3708_vm11, %v3251_v33, %v3535_v44 }
 0xa47   :  { %v5713_v35 = vsel %vm3708_vm11, %v3253_v42, %v3539_v59 }
 0xaad   :  { %v1319_v5 = vpop.permute.xlu0 %1318 }
 0xaae   :  { %v1321_v25 = vsel %vm373_vm9, %v1319_v5, %v5663_v55 }
 0xaaf   :  { %4686 = vmatmul.mubr.msk.f32.vlgmr.msra.gmra.mrb[16].mxu1 %vm375_vm10, %v1321_v25 }
 0xab0   :  { %4802 = vmatpush1.bf16.msra.mxu1 %v5506_v31  ;;  %2333 = vmatprep.mubr.f32.mxu1 %v6705_v21 }
 0xab1   :  { %4804 = vmatprep.subr.bf16.mxu1 %v5508_v32 }
 0xab4   :  { %4806 = vmatpush1.bf16.msra.mxu1 %v5512_v40 }
 0xab5   :  { %4808 = vmatprep.subr.bf16.mxu1 %v5515_v41 }
 0xab8   :  { %4810 = vmatpush1.bf16.msra.mxu1 %v5520_v53 }
 0xab9   :  { %4812 = vmatprep.subr.bf16.mxu1 %v5523_v52 }
 0xabc   :  { %4814 = vmatpush1.bf16.msra.mxu1 %v5528_v19 }
 0xb82   :  { %v5726_v26 = vpop.f32.mrb[16].mxu1 }
 0xb83   :  { %v1393_v17 = vpop.f32.mrb[17].mxu1 }
 0xb84   :  { %v1397_v24 = vcombine.high %v1393_v17, %v1393_v17  ;;  %v1404_v57 = vrot.slane %v1393_v17, %v5358_v18 }
 0xb86   :  { %v1411_v33 = vrot.slane %v1397_v24, %v5358_v18  ;;  %v1412_v28 = vcombine.high %v1404_v57, %v1404_v57  ;;  %v1420_v30 = vrot.slane %v1404_v57, %v5358_v18 }
 0xb88   :  { %v1413_v37 = vcombine.high %v1411_v33, %v1411_v33  ;;  %v1427_v45 = vrot.slane %v1411_v33, %v5358_v18  ;;  %v1434_v29 = vrot.slane %v1412_v28, %v5358_v18  ;;  %v1442_v48 = vcombine.high %v1420_v30, %v1420_v30 }
 0xb89   :  { %v1449_v22 = vrot.slane %v1420_v30, %v5364_v23 }
 0xb8a   :  { %v1441_v16 = vrot.slane %v1413_v37, %v5358_v18  ;;  %v1443_v13 = vcombine.high %v1427_v45, %v1427_v45  ;;  %v1444_v0 = vcombine.high %v1434_v29, %v1434_v29  ;;  %v1453_v58 = vrot.slane %v1434_v29, %v5364_v23 }
 0xb8b   :  { %v1457_v44 = vrot.slane %v1442_v48, %v5364_v23  ;;  %v1465_v42 = vrot.slane %v1427_v45, %v5364_v23  ;;  %v1486_v59 = vadd.f32 %v1449_v22, %v5324_v61 }
 0xb8c   :  { %v1445_v5 = vcombine.high %v1441_v16, %v1441_v16  ;;  %v1461_v25 = vrot.slane %v1444_v0, %v5364_v23  ;;  %v1469_v17 = vrot.slane %v1441_v16, %v5364_v23  ;;  %v1473_v24 = vrot.slane %v1443_v13, %v5364_v23  ;;  %v5753_v16 = vld [vmem:[%s6619_s4] ss:$0 sm:$0xff] }
 0xb8d   :  { %v1487_v57 = vadd.f32 %v1453_v58, %v5328_v63  ;;  %v1488_v33 = vadd.f32 %v1457_v44, %v5332_v2  ;;  %v1490_v28 = vadd.f32 %v1465_v42, %v5340_v6  ;;  %4944 = vtanh.f32 %v1486_v59  ;;  %6706 = vst [vmem:[#allocation34_spill] sm:$0xff] %v5753_v16 }
 0xb8e   :  { %v1477_v30 = vrot.slane %v1445_v5, %v5364_v23  ;;  %v1489_v37 = vadd.f32 %v1461_v25, %v5336_v4  ;;  %v1491_v45 = vadd.f32 %v1469_v17, %v5344_v8  ;;  %v1492_v29 = vadd.f32 %v1473_v24, %v5348_v10 }
 0xb8f   :  { %4946 = vtanh.f32 %v1487_v57 }
 0xb90   :  { %v1493_v48 = vadd.f32 %v1477_v30, %v5352_v12  ;;  %4948 = vtanh.f32 %v1488_v33 }
 0xb91   :  { %4950 = vtanh.f32 %v1489_v37 }
 0xb92   :  { %4952 = vtanh.f32 %v1490_v28 }
 0xb93   :  { %4954 = vtanh.f32 %v1491_v45 }
 0xb94   :  { %4956 = vtanh.f32 %v1493_v48 }
 0xb95   :  { %4958 = vtanh.f32 %v1492_v29 }
 0xb97   :  { %v4945_v22 = vpop.eup %4944 }
 0xb98   :  { %v1502_v13 = vmul.f32 %v5753_v16, %v4945_v22 }
 0xb99   :  { %v4947_v0 = vpop.eup %4946 }
 0xb9a   :  { %v4949_v58 = vpop.eup %4948  ;;  %v1510_v44 = vsel %vm147_vm8, %v1502_v13, 0.0  ;;  %v1503_v42 = vmul.f32 %v5753_v16, %v4947_v0 }
 0xb9b   :  { %v4951_v59 = vpop.eup %4950  ;;  %1511 = vadd.xlane.f32.xlu1 %v1510_v44  ;;  %v1504_v24 = vmul.f32 %v5753_v16, %v4949_v58 }
 0xb9c   :  { %v4953_v5 = vpop.eup %4952  ;;  %v1513_v25 = vsel %vm147_vm8, %v1503_v42, 0.0  ;;  %v1505_v17 = vmul.f32 %v5753_v16, %v4951_v59 }
 0xb9d   :  { %v4955_v57 = vpop.eup %4954  ;;  %1514 = vadd.xlane.f32.xlu0 %v1513_v25  ;;  %v1516_v37 = vsel %vm147_vm8, %v1504_v24, 0.0  ;;  %v1506_v45 = vmul.f32 %v5753_v16, %v4953_v5 }
 0xb9e   :  { %v1519_v33 = vsel %vm147_vm8, %v1505_v17, 0.0  ;;  %v1507_v28 = vmul.f32 %v5753_v16, %v4955_v57  ;;  %v4957_v30 = vpop.eup %4956 }
 0xb9f   :  { %1520 = vadd.xlane.f32.xlu1 %v1519_v33  ;;  %v4959_v29 = vpop.eup %4958  ;;  %v1509_v22 = vmul.f32 %v5753_v16, %v4957_v30  ;;  %v1522_v13 = vsel %vm147_vm8, %v1506_v45, 0.0 }
 0xba0   :  { %v1525_v48 = vsel %vm147_vm8, %v1507_v28, 0.0  ;;  %v1508_v0 = vmul.f32 %v5753_v16, %v4959_v29 }
 0xba1   :  { %1517 = vadd.xlane.f32.xlu0 %v1516_v37  ;;  %v1531_v58 = vsel %vm147_vm8, %v1509_v22, 0.0 }
 0xba2   :  { %v1528_v44 = vsel %vm147_vm8, %v1508_v0, 0.0 }
 0xba3   :  { %1526 = vadd.xlane.f32.xlu1 %v1525_v48 }
 0xba5   :  { %1523 = vadd.xlane.f32.xlu0 %v1522_v13 }
 0xba7   :  { %1532 = vadd.xlane.f32.xlu1 %v1531_v58 }
 0xba9   :  { %1529 = vadd.xlane.f32.xlu0 %v1528_v44 }
 0xc28   :  { %v1512_v42 = vpop.xlane.xlu1 %1511 }
 0xc29   :  { %v1534_v59 = vmul.f32 1.442695, %v1512_v42 }
 0xc2a   :  { %v1515_v5 = vpop.xlane.xlu0 %1514 }
 0xc2b   :  { %v1536_v25 = vmul.f32 1.442695, %v1515_v5 }
 0xc2c   :  { %v1521_v17 = vpop.xlane.xlu1 %1520 }
 0xc2d   :  { %4960 = vpow2.f32 %v1536_v25  ;;  %v1540_v24 = vmul.f32 1.442695, %v1521_v17 }
 0xc2e   :  { %4962 = vpow2.f32 %v1534_v59  ;;  %v1518_v57 = vpop.xlane.xlu0 %1517 }
 0xc2f   :  { %v1538_v33 = vmul.f32 1.442695, %v1518_v57 }
 0xc30   :  { %v1527_v28 = vpop.xlane.xlu1 %1526 }
 0xc31   :  { %4964 = vpow2.f32 %v1538_v33  ;;  %v1544_v30 = vmul.f32 1.442695, %v1527_v28 }
 0xc32   :  { %4966 = vpow2.f32 %v1540_v24  ;;  %v1524_v37 = vpop.xlane.xlu0 %1523 }
 0xc33   :  { %v1542_v45 = vmul.f32 1.442695, %v1524_v37 }
 0xc34   :  { %v1533_v29 = vpop.xlane.xlu1 %1532 }
 0xc35   :  { %4968 = vpow2.f32 %v1542_v45  ;;  %v1548_v48 = vmul.f32 1.442695, %v1533_v29 }
 0xc36   :  { %4970 = vpow2.f32 %v1544_v30  ;;  %v1530_v22 = vpop.xlane.xlu0 %1529 }
 0xc37   :  { %v4961_v13 = vpop.eup %4960  ;;  %v1546_v0 = vmul.f32 1.442695, %v1530_v22  ;;  %4972 = vpow2.f32 %v1548_v48 }
 0xc38   :  { %v4963_v58 = vpop.eup %4962  ;;  %v1565_v44 = vrot.slane %v4961_v13, %v5410_v50 }
 0xc39   :  { %4974 = vpow2.f32 %v1546_v0  ;;  %v1561_v59 = vrot.slane %v4963_v58, %v5410_v50 }
 0xc3b   :  { %v4965_v42 = vpop.eup %4964  ;;  %v1590_v17 = vsel %vm128_vm1, %v1565_v44, %v1561_v59 }
 0xc3c   :  { %v4967_v5 = vpop.eup %4966  ;;  %v1569_v25 = vrot.slane %v4965_v42, %v5410_v50 }
 0xc3d   :  { %v1573_v33 = vrot.slane %v4967_v5, %v5410_v50 }
 0xc3e   :  { %v1591_v24 = vsel %vm131_vm2, %v1569_v25, %v1590_v17 }
 0xc3f   :  { %v4969_v57 = vpop.eup %4968  ;;  %v1592_v37 = vsel %vm134_vm3, %v1573_v33, %v1591_v24 }
 0xc40   :  { %v4971_v28 = vpop.eup %4970  ;;  %v1577_v30 = vrot.slane %v4969_v57, %v5410_v50 }
 0xc41   :  { %v4973_v45 = vpop.eup %4972  ;;  %v1581_v22 = vrot.slane %v4971_v28, %v5410_v50 }
 0xc42   :  { %v1593_v29 = vsel %vm137_vm4, %v1577_v30, %v1592_v37  ;;  %v1589_v44 = vrot.slane %v4973_v45, %v5410_v50 }
 0xc43   :  { %v4975_v48 = vpop.eup %4974  ;;  %v1594_v59 = vsel %vm140_vm5, %v1581_v22, %v1593_v29 }
 0xc44   :  { %v1585_v0 = vrot.slane %v4975_v48, %v5410_v50 }
 0xc46   :  { %v1595_v25 = vsel %vm143_vm6, %v1585_v0, %v1594_v59 }
 0xc47   :  { %v1596_v17 = vsel %vm145_vm7, %v1589_v44, %v1595_v25 }
 0xc48   :  { %v1598_v16 = vsel %vm147_vm8, %v1596_v17, 0.0 }
 0xc49   :  { %1599 = vadd.xlane.f32.xlu0 %v1598_v16 }
 0xcd6   :  { %v1600_v24 = vpop.xlane.xlu0 %1599 }
 0xcd7   :  { %4976 = vrcp.f32 %v1600_v24  ;;  %v4388_v24 = vrot.slane %v5473_v47, %v5410_v50 }
 0xce1   :  { %v4977_v33 = vpop.eup %4976 }
 0xce2   :  { %v1610_v30 = vrot.slane %v4977_v33, %v5429_v38  ;;  %v1606_v37 = vrot.slane %v4977_v33, %v5364_v23  ;;  %v1622_v8 = vrot.slane %v4977_v33, %v5442_v49  ;;  %v1614_v29 = vrot.slane %v4977_v33, %v5432_v39 }
 0xce3   :  { %v1630_v44 = vrot.slane %v4977_v33, %v5450_v15  ;;  %v1618_v16 = vrot.slane %v4977_v33, %v5438_v46  ;;  %v1626_v17 = vrot.slane %v4977_v33, %v5446_v56 }
 0xce4   :  { %v1644_v12 = vmul.f32 %v4961_v13, %v1610_v30  ;;  %v1643_v10 = vmul.f32 %v4963_v58, %v1606_v37  ;;  %v1647_v22 = vmul.f32 %v4969_v57, %v1622_v8  ;;  %v1645_v0 = vmul.f32 %v4965_v42, %v1614_v29 }
 0xce5   :  { %v1649_v59 = vmul.f32 %v4975_v48, %v1630_v44  ;;  %v1646_v25 = vmul.f32 %v4967_v5, %v1618_v16  ;;  %v1648_v13 = vmul.f32 %v4971_v28, %v1626_v17  ;;  %v1634_v58 = vrot.slane %v4977_v33, %v5454_v14  ;;  %v6711_v16 = vld [vmem:[#allocation24_spill] sm:$0xff] }
 0xce6   :  { %1658 = vperm.xlu0 %4853, %v1644_v12   ;;  %1653 = vperm.xlu1 %4852, %v1643_v10   ;;  %v4428_v57 = vrot.slane %v5630_v34, %v5410_v50  ;;  %v4384_v34 = vrot.slane %v6711_v16, %v5410_v50 }
 0xce7   :  { %v1650_v12 = vmul.f32 %v4973_v45, %v1634_v58  ;;  %v4424_v45 = vrot.slane %v5624_v43, %v5410_v50 }
 0xcea   :  { %1673 = vperm.xlu0 %4853, %v1647_v22   ;;  %1663 = vperm.xlu1 %4852, %v1645_v0   ;;  %v6710_v22 = vld [vmem:[#allocation12_spill] sm:$0xff] }
 0xcee   :  { %1683 = vperm.xlu0 %4853, %v1649_v59   ;;  %1668 = vperm.xlu1 %4852, %v1646_v25   ;;  %v4613_v59 = vsel %vm3708_vm11, %v4388_v24, %v4428_v57  ;;  %v6712_v25 = vld [vmem:[#allocation10_spill] sm:$0xff]  ;;  %v6715_v24 = vld [vmem:[#allocation31_spill] sm:$0xff] }
 0xcf2   :  { %1678 = vperm.xlu1 %4852, %v1648_v13  }
 0xcf6   :  { %1688 = vperm.xlu1 %4852, %v1650_v12   ;;  %v4612_v12 = vsel %vm3708_vm11, %v4384_v34, %v4424_v45 }
 0xd65   :  { %v5795_v8 = vpop.permute.xlu0 %1658  ;;  %v5797_v10 = vpop.permute.xlu1 %1653 }
 0xd66   :  { %6707 = vst [vmem:[#allocation35_spill] sm:$0xff] %v5795_v8  ;;  %6708 = vst [vmem:[#allocation36_spill] sm:$0xff] %v5797_v10  ;;  %v1692_v42 = vmul.f32 %v5795_v8, %v5326_v62  ;;  %v1691_v5 = vmul.f32 %v5797_v10, %v5322_v60 }
 0xd68   :  { %v1705_v48 = vrot.slane %v1692_v42, 4  ;;  %v1699_v28 = vrot.slane %v1691_v5, 4 }
 0xd69   :  { %v1674_v33 = vpop.permute.xlu0 %1673  ;;  %v5809_v30 = vpop.permute.xlu1 %1663 }
 0xd6a   :  { %6709 = vst [vmem:[#allocation37_spill] sm:$0xff] %v5809_v30  ;;  %v1706_v37 = vadd.f32 %v1705_v48, %v1692_v42  ;;  %v1700_v29 = vadd.f32 %v1699_v28, %v1691_v5  ;;  %v1695_v0 = vmul.f32 %v1674_v33, %v6710_v22  ;;  %v4468_v44 = vrot.slane %v1674_v33, %v5410_v50 }
 0xd6b   :  { %v1693_v47 = vmul.f32 %v5809_v30, %v6712_v25  ;;  %v4432_v22 = vrot.slane %v6715_v24, %v5410_v50  ;;  %v6716_v30 = vld [vmem:[#allocation11_spill] sm:$0xff] }
 0xd6c   :  { %v1707_v17 = vrot.slane %v1706_v37, 2  ;;  %v1701_v43 = vrot.slane %v1700_v29, 2  ;;  %v1723_v13 = vrot.slane %v1695_v0, 4  ;;  %v5819_v58 = vsel %vm3717_vm12, %v4613_v59, %v4468_v44 }
 0xd6d   :  { %6713 = vst [vmem:[#allocation24_spill] sm:$0xff] %v5819_v58  ;;  %v1711_v42 = vrot.slane %v1693_v47, 4  ;;  %v5822_v5 = vpop.permute.xlu0 %1683  ;;  %v1669_v48 = vpop.permute.xlu1 %1668 }
 0xd6e   :  { %6714 = vst [vmem:[#allocation38_spill] sm:$0xff] %v5822_v5  ;;  %v1708_v28 = vadd.f32 %v1707_v17, %v1706_v37  ;;  %v1702_v33 = vadd.f32 %v1701_v43, %v1700_v29  ;;  %v1724_v16 = vadd.f32 %v1723_v13, %v1695_v0  ;;  %v1697_v57 = vmul.f32 %v5822_v5, %v5346_v9  ;;  %v6718_v0 = vld [vmem:[#allocation25_spill] sm:$0xff] }
 0xd6f   :  { %v1712_v25 = vadd.f32 %v1711_v42, %v1693_v47  ;;  %v1694_v60 = vmul.f32 %v1669_v48, %v6716_v30  ;;  %v4464_v44 = vrot.slane %v1669_v48, %v5410_v50  ;;  %v4392_v17 = vrot.slane %v6718_v0, %v5410_v50  ;;  %v6719_v5 = vld [vmem:[#allocation13_spill] sm:$0xff] }
 0xd70   :  { %v1709_v59 = vrot.slane %v1708_v28, 1  ;;  %v1703_v45 = vrot.slane %v1702_v33, 1  ;;  %v1725_v34 = vrot.slane %v1724_v16, 2  ;;  %v1735_v58 = vrot.slane %v1697_v57, 4 }
 0xd71   :  { %v1713_v62 = vrot.slane %v1712_v25, 2  ;;  %v1717_v10 = vrot.slane %v1694_v60, 4  ;;  %v5831_v37 = vsel %vm3717_vm12, %v4612_v12, %v4464_v44  ;;  %v1679_v29 = vpop.permute.xlu1 %1678  ;;  %v4614_v30 = vsel %vm3708_vm11, %v4392_v17, %v4432_v22 }
 0xd72   :  { %6717 = vst [vmem:[#allocation31_spill] sm:$0xff] %v5831_v37  ;;  %v1710_v43 = vadd.f32 %v1709_v59, %v1708_v28  ;;  %v1704_v13 = vadd.f32 %v1703_v45, %v1702_v33  ;;  %v1736_v47 = vadd.f32 %v1735_v58, %v1697_v57  ;;  %v1696_v48 = vmul.f32 %v1679_v29, %v6719_v5 }
 0xd73   :  { %v1714_v42 = vadd.f32 %v1713_v62, %v1712_v25  ;;  %v1718_v24 = vadd.f32 %v1717_v10, %v1694_v60  ;;  %v4472_v9 = vrot.slane %v1679_v29, %v5410_v50  ;;  %v1726_v14 = vadd.f32 %v1725_v34, %v1724_v16 }
 0xd74   :  { %v1755_v8 = vsel %vm128_vm1, %v1710_v43, %v1704_v13  ;;  %v1737_v12 = vrot.slane %v1736_v47, 2  ;;  %v1729_v15 = vrot.slane %v1696_v48, 4 }
 0xd75   :  { %v1715_v44 = vrot.slane %v1714_v42, 1  ;;  %v1719_v37 = vrot.slane %v1718_v24, 2  ;;  %v5840_v0 = vsel %vm3717_vm12, %v4614_v30, %v4472_v9  ;;  %v5842_v28 = vpop.permute.xlu1 %1688  ;;  %v1727_v58 = vrot.slane %v1726_v14, 1 }
 0xd76   :  { %6720 = vst [vmem:[#allocation25_spill] sm:$0xff] %v5842_v28  ;;  %v1698_v60 = vmul.f32 %v5842_v28, %v5350_v11  ;;  %v1730_v25 = vadd.f32 %v1729_v15, %v1696_v48  ;;  %v1738_v22 = vadd.f32 %v1737_v12, %v1736_v47 }
 0xd77   :  { %v1716_v62 = vadd.f32 %v1715_v44, %v1714_v42  ;;  %v1720_v10 = vadd.f32 %v1719_v37, %v1718_v24  ;;  %v1728_v9 = vadd.f32 %v1727_v58, %v1726_v14 }
 0xd78   :  { %v1741_v33 = vrot.slane %v1698_v60, 4  ;;  %v1731_v59 = vrot.slane %v1730_v25, 2  ;;  %v1739_v30 = vrot.slane %v1738_v22, 1 }
 0xd79   :  { %v1756_v16 = vsel %vm131_vm2, %v1716_v62, %v1755_v8  ;;  %v1721_v57 = vrot.slane %v1720_v10, 1 }
 0xd7a   :  { %v1742_v45 = vadd.f32 %v1741_v33, %v1698_v60  ;;  %v1732_v29 = vadd.f32 %v1731_v59, %v1730_v25  ;;  %v1740_v24 = vadd.f32 %v1739_v30, %v1738_v22 }
 0xd7b   :  { %v1722_v34 = vadd.f32 %v1721_v57, %v1720_v10 }
 0xd7c   :  { %v1743_v17 = vrot.slane %v1742_v45, 2  ;;  %v1733_v13 = vrot.slane %v1732_v29, 1 }
 0xd7d   :  { %v1757_v43 = vsel %vm134_vm3, %v1722_v34, %v1756_v16 }
 0xd7e   :  { %v1758_v42 = vsel %vm137_vm4, %v1728_v9, %v1757_v43  ;;  %v1744_v37 = vadd.f32 %v1743_v17, %v1742_v45  ;;  %v1734_v15 = vadd.f32 %v1733_v13, %v1732_v29 }
 0xd80   :  { %v1745_v47 = vrot.slane %v1744_v37, 1  ;;  %v1759_v48 = vsel %vm140_vm5, %v1734_v15, %v1758_v42 }
 0xd81   :  { %v1760_v8 = vsel %vm143_vm6, %v1740_v24, %v1759_v48 }
 0xd82   :  { %v1746_v12 = vadd.f32 %v1745_v47, %v1744_v37 }
 0xd84   :  { %v1761_v44 = vsel %vm145_vm7, %v1746_v12, %v1760_v8 }
 0xd85   :  { %v1763_v14 = vadd.f32 %v1761_v44, %v5726_v26 }
 0xd87   :  { %v1764_v60 = vadd.f32 %v5655_v3, %v1763_v14 }
 0xd89   :  { %4978 = vtanh.f32 %v1764_v60  ;;  %v4687_v10 = vmul.f32 -1.442695, %v1764_v60 }
 0xd8b   :  { %4980 = vpow2.f32 %v4687_v10 }
 0xd93   :  { %v4979_v62 = vpop.eup %4978 }
 0xd94   :  { %1774 = vrot.lane.b32.xlu0 %v4979_v62, %s5174_s28 }
 0xd95   :  { %v4981_v25 = vpop.eup %4980 }
 0xd96   :  { %v1768_v58 = vadd.f32 1.0, %v4981_v25 }
 0xd98   :  { %4982 = vrcp.f32 %v1768_v58 }
 0xda2   :  { %v4983_v22 = vpop.eup %4982 }
 0xda3   :  { %v1772_v57 = vmul.f32 %v4983_v22, %v5663_v55 }
 0xe06   :  { %v1775_v33 = vpop.permute.xlu0 %1774 }
 0xe07   :  { %v1777_v16 = vmul.f32 %v4983_v22, %v1775_v33 }
 0xe09   :  { %1779 = vrot.lane.b32.xlu1 %v1777_v16, %s5175_s29 }
 0xe7b   :  { %v1780_v59 = vpop.permute.xlu1 %1779 }
 0xe7c   :  { %v5857_v26 = vadd.f32 %v1780_v59, %v1772_v57 }
 0xe7e   :  { %4984 = vtanh.f32 %v5857_v26 }
 0xe88   :  { %v4985_v3 = vpop.eup %4984 }
 0xe89   :  { %1785 = vrot.lane.b32.xlu0 %v4985_v3, %s5174_s28 }
 0xefb   :  { %v1786_v45 = vpop.permute.xlu0 %1785 }
 0xefc   :  { %v1788_v34 = vmul.f32 %v4983_v22, %v1786_v45 }
 0xefe   :  { %v3311_v29 = vcombine.high %v1788_v34, %v1788_v34  ;;  %v3318_v9 = vrot.slane %v1788_v34, %v5358_v18  ;;  %1790 = vrot.lane.b32.xlu1 %v1788_v34, %s5175_s29 }
 0xf00   :  { %v3325_v30 = vrot.slane %v3311_v29, %v5358_v18  ;;  %v3326_v17 = vcombine.high %v3318_v9, %v3318_v9  ;;  %v3334_v55 = vrot.slane %v3318_v9, %v5358_v18 }
 0xf02   :  { %v3327_v43 = vcombine.high %v3325_v30, %v3325_v30  ;;  %v3341_v13 = vrot.slane %v3325_v30, %v5358_v18  ;;  %v3348_v42 = vrot.slane %v3326_v17, %v5358_v18  ;;  %v3356_v37 = vcombine.high %v3334_v55, %v3334_v55 }
 0xf03   :  { %v3551_v15 = vrot.slane %v3334_v55, %v5364_v23 }
 0xf04   :  { %v3355_v24 = vrot.slane %v3327_v43, %v5358_v18  ;;  %v3357_v47 = vcombine.high %v3341_v13, %v3341_v13  ;;  %v3358_v48 = vcombine.high %v3348_v42, %v3348_v42  ;;  %v3555_v8 = vrot.slane %v3348_v42, %v5364_v23 }
 0xf05   :  { %v3559_v12 = vrot.slane %v3356_v37, %v5364_v23  ;;  %v3567_v44 = vrot.slane %v3341_v13, %v5364_v23  ;;  %v5874_v14 = vsel %vm3717_vm12, %v5688_v54, %v3551_v15 }
 0xf06   :  { %v3359_v60 = vcombine.high %v3355_v24, %v3355_v24  ;;  %v3563_v62 = vrot.slane %v3358_v48, %v5364_v23  ;;  %v3571_v10 = vrot.slane %v3355_v24, %v5364_v23  ;;  %v3575_v25 = vrot.slane %v3357_v47, %v5364_v23 }
 0xf07   :  { %v5881_v58 = vsel %vm3717_vm12, %v5694_v51, %v3555_v8  ;;  %v5885_v22 = vsel %vm3717_vm12, %v5697_v27, %v3559_v12  ;;  %v5889_v33 = vsel %vm3717_vm12, %v5700_v7, %v3567_v44  ;;  %v6721_v8 = vld [vmem:[#allocation14_spill] sm:$0xff]  ;;  %v6722_v44 = vld [vmem:[#allocation16_spill] sm:$0xff] }
 0xf08   :  { %v3579_v54 = vrot.slane %v3359_v60, %v5364_v23  ;;  %v5894_v16 = vsel %vm3717_vm12, %v5704_v36, %v3563_v62  ;;  %v5898_v57 = vsel %vm3717_vm12, %v5707_v1, %v3571_v10  ;;  %v5902_v51 = vsel %vm3717_vm12, %v5710_v20, %v3575_v25  ;;  %v6723_v62 = vld [vmem:[#allocation17_spill] sm:$0xff] }
 0xf0a   :  { %v5906_v27 = vsel %vm3717_vm12, %v5713_v35, %v3579_v54  ;;  %v6724_v54 = vld [vmem:[#allocation34_spill] sm:$0xff] }
 0xf70   :  { %v1791_v7 = vpop.permute.xlu1 %1790 }
 0xf71   :  { %v1793_v59 = vsel %vm373_vm9, %v1791_v7, %v5857_v26 }
 0xf72   :  { %4688 = vmatmul.mubr.msk.f32.vlgmr.msra.gmra.mrb[6].mxu0 %vm375_vm10, %v1793_v59 }
 0xf73   :  { %4818 = vmatpush1.bf16.msra.mxu0 %v5506_v31  ;;  %2805 = vmatprep.mubr.f32.mxu0 %v6705_v21 }
 0xf74   :  { %4820 = vmatprep.subr.bf16.mxu0 %v5508_v32 }
 0xf77   :  { %4822 = vmatpush1.bf16.msra.mxu0 %v5512_v40 }
 0xf78   :  { %4824 = vmatprep.subr.bf16.mxu0 %v5515_v41 }
 0xf7b   :  { %4826 = vmatpush1.bf16.msra.mxu0 %v5520_v53 }
 0xf7c   :  { %4828 = vmatprep.subr.bf16.mxu0 %v5523_v52 }
 0xf7f   :  { %4830 = vmatpush1.bf16.msra.mxu0 %v5528_v19 }
0x1045   :  { %v5919_v36 = vpop.f32.mrb[6].mxu0 }
0x1046   :  { %v1865_v1 = vpop.f32.mrb[7].mxu0 }
0x1047   :  { %v1869_v20 = vcombine.high %v1865_v1, %v1865_v1  ;;  %v1876_v31 = vrot.slane %v1865_v1, %v5358_v18 }
0x1049   :  { %v1883_v35 = vrot.slane %v1869_v20, %v5358_v18  ;;  %v1884_v21 = vcombine.high %v1876_v31, %v1876_v31  ;;  %v1892_v32 = vrot.slane %v1876_v31, %v5358_v18 }
0x104b   :  { %v1885_v40 = vcombine.high %v1883_v35, %v1883_v35  ;;  %v1899_v41 = vrot.slane %v1883_v35, %v5358_v18  ;;  %v1906_v53 = vrot.slane %v1884_v21, %v5358_v18  ;;  %v1914_v3 = vcombine.high %v1892_v32, %v1892_v32 }
0x104c   :  { %v1921_v52 = vrot.slane %v1892_v32, %v5364_v23 }
0x104d   :  { %v1913_v19 = vrot.slane %v1885_v40, %v5358_v18  ;;  %v1915_v45 = vcombine.high %v1899_v41, %v1899_v41  ;;  %v1916_v34 = vcombine.high %v1906_v53, %v1906_v53  ;;  %v1925_v29 = vrot.slane %v1906_v53, %v5364_v23 }
0x104e   :  { %v1929_v9 = vrot.slane %v1914_v3, %v5364_v23  ;;  %v1937_v30 = vrot.slane %v1899_v41, %v5364_v23  ;;  %v1958_v17 = vadd.f32 %v1921_v52, %v5324_v61 }
0x104f   :  { %v1917_v55 = vcombine.high %v1913_v19, %v1913_v19  ;;  %v1933_v43 = vrot.slane %v1916_v34, %v5364_v23  ;;  %v1941_v13 = vrot.slane %v1913_v19, %v5364_v23  ;;  %v1945_v42 = vrot.slane %v1915_v45, %v5364_v23 }
0x1050   :  { %v1959_v37 = vadd.f32 %v1925_v29, %v5328_v63  ;;  %v1960_v15 = vadd.f32 %v1929_v9, %v5332_v2  ;;  %v1962_v24 = vadd.f32 %v1937_v30, %v5340_v6  ;;  %4986 = vtanh.f32 %v1958_v17 }
0x1051   :  { %v1949_v47 = vrot.slane %v1917_v55, %v5364_v23  ;;  %v1961_v48 = vadd.f32 %v1933_v43, %v5336_v4  ;;  %v1963_v12 = vadd.f32 %v1941_v13, %v6721_v8  ;;  %v1964_v60 = vadd.f32 %v1945_v42, %v6722_v44 }
0x1052   :  { %4988 = vtanh.f32 %v1959_v37 }
0x1053   :  { %v1965_v10 = vadd.f32 %v1949_v47, %v6723_v62  ;;  %4990 = vtanh.f32 %v1960_v15 }
0x1054   :  { %4992 = vtanh.f32 %v1961_v48 }
0x1055   :  { %4994 = vtanh.f32 %v1962_v24 }
0x1056   :  { %4996 = vtanh.f32 %v1964_v60 }
0x1057   :  { %4998 = vtanh.f32 %v1963_v12 }
0x1058   :  { %5000 = vtanh.f32 %v1965_v10 }
0x105a   :  { %v4987_v25 = vpop.eup %4986 }
0x105b   :  { %v1974_v7 = vmul.f32 %v6724_v54, %v4987_v25 }
0x105c   :  { %v4989_v59 = vpop.eup %4988 }
0x105d   :  { %v4991_v1 = vpop.eup %4990  ;;  %v1982_v20 = vsel %vm147_vm8, %v1974_v7, 0.0  ;;  %v1975_v31 = vmul.f32 %v6724_v54, %v4989_v59 }
0x105e   :  { %v4993_v35 = vpop.eup %4992  ;;  %1983 = vadd.xlane.f32.xlu0 %v1982_v20  ;;  %v1976_v21 = vmul.f32 %v6724_v54, %v4991_v1 }
0x105f   :  { %v4995_v32 = vpop.eup %4994  ;;  %v1985_v40 = vsel %vm147_vm8, %v1975_v31, 0.0  ;;  %v1977_v52 = vmul.f32 %v6724_v54, %v4993_v35 }
0x1060   :  { %1986 = vadd.xlane.f32.xlu1 %v1985_v40  ;;  %v1978_v41 = vmul.f32 %v6724_v54, %v4995_v32  ;;  %v4997_v53 = vpop.eup %4996  ;;  %v1988_v3 = vsel %vm147_vm8, %v1976_v21, 0.0 }
0x1061   :  { %v4999_v19 = vpop.eup %4998  ;;  %v1980_v34 = vmul.f32 %v6724_v54, %v4997_v53  ;;  %v1991_v29 = vsel %vm147_vm8, %v1977_v52, 0.0 }
0x1062   :  { %1989 = vadd.xlane.f32.xlu0 %v1988_v3  ;;  %v1994_v45 = vsel %vm147_vm8, %v1978_v41, 0.0  ;;  %v1979_v9 = vmul.f32 %v6724_v54, %v4999_v19  ;;  %v5001_v30 = vpop.eup %5000 }
0x1063   :  { %v2000_v17 = vsel %vm147_vm8, %v1980_v34, 0.0  ;;  %v1981_v43 = vmul.f32 %v6724_v54, %v5001_v30 }
0x1064   :  { %1995 = vadd.xlane.f32.xlu1 %v1994_v45  ;;  %v1997_v55 = vsel %vm147_vm8, %v1979_v9, 0.0 }
0x1065   :  { %v2003_v13 = vsel %vm147_vm8, %v1981_v43, 0.0 }
0x1066   :  { %1992 = vadd.xlane.f32.xlu0 %v1991_v29 }
0x1068   :  { %2001 = vadd.xlane.f32.xlu1 %v2000_v17 }
0x106a   :  { %1998 = vadd.xlane.f32.xlu0 %v1997_v55 }
0x106e   :  { %2004 = vadd.xlane.f32.xlu0 %v2003_v13 }
0x10eb   :  { %v1984_v42 = vpop.xlane.xlu0 %1983 }
0x10ec   :  { %v2006_v37 = vmul.f32 1.442695, %v1984_v42 }
0x10ed   :  { %v1987_v15 = vpop.xlane.xlu1 %1986 }
0x10ee   :  { %v2008_v24 = vmul.f32 1.442695, %v1987_v15  ;;  %5002 = vpow2.f32 %v2006_v37 }
0x10ef   :  { %v1990_v47 = vpop.xlane.xlu0 %1989 }
0x10f0   :  { %5004 = vpow2.f32 %v2008_v24  ;;  %v2010_v48 = vmul.f32 1.442695, %v1990_v47 }
0x10f1   :  { %v1996_v12 = vpop.xlane.xlu1 %1995 }
0x10f2   :  { %5006 = vpow2.f32 %v2010_v48  ;;  %v2014_v60 = vmul.f32 1.442695, %v1996_v12 }
0x10f3   :  { %v1993_v10 = vpop.xlane.xlu0 %1992 }
0x10f4   :  { %v2012_v25 = vmul.f32 1.442695, %v1993_v10 }
0x10f5   :  { %v2002_v7 = vpop.xlane.xlu1 %2001 }
0x10f6   :  { %5008 = vpow2.f32 %v2012_v25  ;;  %v2018_v54 = vmul.f32 1.442695, %v2002_v7 }
0x10f7   :  { %5010 = vpow2.f32 %v2014_v60  ;;  %v1999_v59 = vpop.xlane.xlu0 %1998 }
0x10f8   :  { %v2016_v1 = vmul.f32 1.442695, %v1999_v59  ;;  %v5003_v20 = vpop.eup %5002 }
0x10f9   :  { %v2033_v41 = vrot.slane %v5003_v20, %v5410_v50 }
0x10fa   :  { %v5005_v31 = vpop.eup %5004  ;;  %5012 = vpow2.f32 %v2016_v1 }
0x10fb   :  { %v2037_v35 = vrot.slane %v5005_v31, %v5410_v50  ;;  %5014 = vpow2.f32 %v2018_v54  ;;  %v2005_v21 = vpop.xlane.xlu0 %2004 }
0x10fc   :  { %v5007_v32 = vpop.eup %5006  ;;  %v2020_v40 = vmul.f32 1.442695, %v2005_v21 }
0x10fd   :  { %v2041_v53 = vrot.slane %v5007_v32, %v5410_v50  ;;  %v2062_v3 = vsel %vm128_vm1, %v2037_v35, %v2033_v41 }
0x10fe   :  { %5016 = vpow2.f32 %v2020_v40 }
0x10ff   :  { %v2063_v34 = vsel %vm131_vm2, %v2041_v53, %v2062_v3 }
0x1100   :  { %v5009_v52 = vpop.eup %5008 }
0x1101   :  { %v5011_v19 = vpop.eup %5010  ;;  %v2045_v45 = vrot.slane %v5009_v52, %v5410_v50 }
0x1102   :  { %v2049_v30 = vrot.slane %v5011_v19, %v5410_v50 }
0x1103   :  { %v2064_v29 = vsel %vm134_vm3, %v2045_v45, %v2063_v34  ;;  %v6725_v45 = vld [vmem:[#allocation19_spill] sm:$0xff] }
0x1104   :  { %v5013_v9 = vpop.eup %5012  ;;  %v2065_v43 = vsel %vm137_vm4, %v2049_v30, %v2064_v29 }
0x1105   :  { %v5015_v17 = vpop.eup %5014  ;;  %v2053_v55 = vrot.slane %v5013_v9, %v5410_v50 }
0x1106   :  { %v2057_v37 = vrot.slane %v5015_v17, %v5410_v50 }
0x1107   :  { %v2066_v13 = vsel %vm140_vm5, %v2053_v55, %v2065_v43  ;;  %v6728_v55 = vld [vmem:[#allocation29_spill] sm:$0xff] }
0x1108   :  { %v5017_v42 = vpop.eup %5016  ;;  %v2067_v24 = vsel %vm143_vm6, %v2057_v37, %v2066_v13  ;;  %v4412_v43 = vrot.slane %v6728_v55, %v5410_v50  ;;  %v6729_v13 = vld [vmem:[#allocation21_spill] sm:$0xff] }
0x1109   :  { %v2061_v15 = vrot.slane %v5017_v42, %v5410_v50 }
0x110b   :  { %v2068_v47 = vsel %vm145_vm7, %v2061_v15, %v2067_v24  ;;  %v6731_v15 = vld [vmem:[#allocation35_spill] sm:$0xff] }
0x110c   :  { %v2070_v48 = vsel %vm147_vm8, %v2068_v47, 0.0  ;;  %v4456_v24 = vrot.slane %v6731_v15, %v5410_v50 }
0x110d   :  { %2071 = vadd.xlane.f32.xlu1 %v2070_v48 }
0x119a   :  { %v2072_v12 = vpop.xlane.xlu1 %2071 }
0x119b   :  { %5018 = vrcp.f32 %v2072_v12  ;;  %v6733_v12 = vld [vmem:[#allocation30_spill] sm:$0xff] }
0x11a5   :  { %v5019_v60 = vpop.eup %5018 }
0x11a6   :  { %v2082_v10 = vrot.slane %v5019_v60, %v5429_v38  ;;  %v2078_v25 = vrot.slane %v5019_v60, %v5364_v23  ;;  %v2086_v59 = vrot.slane %v5019_v60, %v5432_v39  ;;  %v2090_v1 = vrot.slane %v5019_v60, %v5438_v46 }
0x11a7   :  { %v2094_v40 = vrot.slane %v5019_v60, %v5442_v49  ;;  %v2098_v41 = vrot.slane %v5019_v60, %v5446_v56  ;;  %v2102_v34 = vrot.slane %v5019_v60, %v6725_v45 }
0x11a8   :  { %v2116_v7 = vmul.f32 %v5005_v31, %v2082_v10  ;;  %v2115_v54 = vmul.f32 %v5003_v20, %v2078_v25  ;;  %v2117_v35 = vmul.f32 %v5007_v32, %v2086_v59  ;;  %v2118_v21 = vmul.f32 %v5009_v52, %v2090_v1  ;;  %v6726_v31 = vld [vmem:[#allocation20_spill] sm:$0xff] }
0x11a9   :  { %v2119_v53 = vmul.f32 %v5011_v19, %v2094_v40  ;;  %v2120_v3 = vmul.f32 %v5013_v9, %v2098_v41  ;;  %v2106_v20 = vrot.slane %v5019_v60, %v6726_v31  ;;  %v2121_v29 = vmul.f32 %v5015_v17, %v2102_v34  ;;  %v6727_v32 = vld [vmem:[#allocation28_spill] sm:$0xff]  ;;  %v6730_v9 = vld [vmem:[#allocation22_spill] sm:$0xff]  ;;  %v6736_v40 = vld [vmem:[#allocation23_spill] sm:$0xff] }
0x11aa   :  { %2130 = vperm.xlu1 %4852, %v2116_v7   ;;  %2125 = vperm.xlu0 %4853, %v2115_v54   ;;  %v4416_v52 = vrot.slane %v6727_v32, %v5410_v50  ;;  %v4376_v19 = vrot.slane %v6729_v13, %v5410_v50  ;;  %v4372_v37 = vrot.slane %v6730_v9, %v5410_v50  ;;  %v6732_v17 = vld [vmem:[#allocation36_spill] sm:$0xff]  ;;  %v6734_v7 = vld [vmem:[#allocation9_spill] sm:$0xff] }
0x11ab   :  { %v2122_v30 = vmul.f32 %v5017_v42, %v2106_v20  ;;  %v4452_v42 = vrot.slane %v6732_v17, %v5410_v50  ;;  %v4420_v60 = vrot.slane %v6733_v12, %v5410_v50  ;;  %v6735_v1 = vld [vmem:[#allocation8_spill] sm:$0xff]  ;;  %v4380_v41 = vrot.slane %v6736_v40, %v5410_v50  ;;  %v6737_v34 = vld [vmem:[#allocation37_spill] sm:$0xff] }
0x11ac   :  { %v4610_v47 = vsel %vm3708_vm11, %v4376_v19, %v4416_v52  ;;  %v4609_v48 = vsel %vm3708_vm11, %v4372_v37, %v4412_v43  ;;  %v4460_v20 = vrot.slane %v6737_v34, %v5410_v50  ;;  %v6738_v37 = vld [vmem:[#allocation10_spill] sm:$0xff]  ;;  %v6743_v34 = vld [vmem:[#allocation12_spill] sm:$0xff] }
0x11ad   :  { %v4611_v55 = vsel %vm3708_vm11, %v4380_v41, %v4420_v60 }
0x11ae   :  { %2135 = vperm.xlu1 %4852, %v2117_v35   ;;  %2140 = vperm.xlu0 %4853, %v2118_v21   ;;  %v4619_v17 = vsel %vm3717_vm12, %v4611_v55, %v4460_v20 }
0x11b2   :  { %2145 = vperm.xlu1 %4852, %v2119_v53   ;;  %2150 = vperm.xlu0 %4853, %v2120_v3   ;;  %v4618_v53 = vsel %vm3717_vm12, %v4610_v47, %v4456_v24  ;;  %v4617_v3 = vsel %vm3717_vm12, %v4609_v48, %v4452_v42  ;;  %v6739_v42 = vld [vmem:[#allocation11_spill] sm:$0xff] }
0x11b6   :  { %2155 = vperm.xlu1 %4852, %v2121_v29   ;;  %2160 = vperm.xlu0 %4853, %v2122_v30  }
0x1229   :  { %v2131_v10 = vpop.permute.xlu1 %2130  ;;  %v2126_v25 = vpop.permute.xlu0 %2125 }
0x122a   :  { %v2164_v54 = vmul.f32 %v2131_v10, %v6734_v7  ;;  %v4496_v59 = vrot.slane %v2131_v10, %v5410_v50  ;;  %v2163_v35 = vmul.f32 %v2126_v25, %v6735_v1  ;;  %v4492_v21 = vrot.slane %v2126_v25, %v5410_v50 }
0x122c   :  { %v2177_v29 = vrot.slane %v2164_v54, 4  ;;  %v6010_v30 = vsel %vm3726_vm13, %v4618_v53, %v4496_v59  ;;  %v2171_v32 = vrot.slane %v2163_v35, 4  ;;  %v6013_v52 = vsel %vm3726_vm13, %v4617_v3, %v4492_v21  ;;  %v6741_v21 = vld [vmem:[#allocation31_spill] sm:$0xff] }
0x122d   :  { %v2136_v43 = vpop.permute.xlu1 %2135  ;;  %v2141_v13 = vpop.permute.xlu0 %2140 }
0x122e   :  { %v2178_v19 = vadd.f32 %v2177_v29, %v2164_v54  ;;  %v2172_v9 = vadd.f32 %v2171_v32, %v2163_v35  ;;  %v2165_v15 = vmul.f32 %v2136_v43, %v6738_v37  ;;  %v4500_v24 = vrot.slane %v2136_v43, %v5410_v50 }
0x122f   :  { %v2166_v47 = vmul.f32 %v2141_v13, %v6739_v42  ;;  %v4504_v48 = vrot.slane %v2141_v13, %v5410_v50 }
0x1230   :  { %v2179_v12 = vrot.slane %v2178_v19, 2  ;;  %v2173_v10 = vrot.slane %v2172_v9, 2  ;;  %v2183_v25 = vrot.slane %v2165_v15, 4  ;;  %v6022_v59 = vsel %vm3726_vm13, %v4619_v17, %v4500_v24 }
0x1231   :  { %6740 = vst [vmem:[#allocation14_spill] sm:$0xff] %v6022_v59  ;;  %v2189_v60 = vrot.slane %v2166_v47, 4  ;;  %v6026_v54 = vsel %vm3726_vm13, %v6741_v21, %v4504_v48  ;;  %v2146_v35 = vpop.permute.xlu1 %2145  ;;  %v2151_v40 = vpop.permute.xlu0 %2150  ;;  %v6744_v21 = vld [vmem:[#allocation24_spill] sm:$0xff] }
0x1232   :  { %6742 = vst [vmem:[#allocation16_spill] sm:$0xff] %v6026_v54  ;;  %v2180_v41 = vadd.f32 %v2179_v12, %v2178_v19  ;;  %v2174_v53 = vadd.f32 %v2173_v10, %v2172_v9  ;;  %v2184_v3 = vadd.f32 %v2183_v25, %v2165_v15  ;;  %v2167_v20 = vmul.f32 %v2146_v35, %v6743_v34 }
0x1233   :  { %v2190_v29 = vadd.f32 %v2189_v60, %v2166_v47  ;;  %v4508_v32 = vrot.slane %v2146_v35, %v5410_v50  ;;  %v2168_v55 = vmul.f32 %v2151_v40, %v6719_v5  ;;  %v4512_v43 = vrot.slane %v2151_v40, %v5410_v50  ;;  %v6749_v5 = vld [vmem:[#allocation15_spill] sm:$0xff] }
0x1234   :  { %v2181_v13 = vrot.slane %v2180_v41, 1  ;;  %v2175_v24 = vrot.slane %v2174_v53, 1  ;;  %v2185_v17 = vrot.slane %v2184_v3, 2  ;;  %v2195_v28 = vrot.slane %v2167_v20, 4 }
0x1235   :  { %v2191_v48 = vrot.slane %v2190_v29, 2  ;;  %v6034_v54 = vsel %vm3726_vm13, %v6744_v21, %v4508_v32  ;;  %v2201_v19 = vrot.slane %v2168_v55, 4  ;;  %v6038_v9 = vsel %vm3726_vm13, %v5840_v0, %v4512_v43  ;;  %v6040_v15 = vpop.permute.xlu1 %2155  ;;  %v6042_v47 = vpop.permute.xlu0 %2160 }
0x1236   :  { %6745 = vst [vmem:[#allocation17_spill] sm:$0xff] %v6034_v54  ;;  %6746 = vst [vmem:[#allocation34_spill] sm:$0xff] %v6038_v9  ;;  %v2182_v12 = vadd.f32 %v2181_v13, %v2180_v41  ;;  %v2176_v10 = vadd.f32 %v2175_v24, %v2174_v53  ;;  %v2186_v25 = vadd.f32 %v2185_v17, %v2184_v3 }
0x1237   :  { %6747 = vst [vmem:[#allocation19_spill] sm:$0xff] %v6040_v15  ;;  %6748 = vst [vmem:[#allocation20_spill] sm:$0xff] %v6042_v47  ;;  %v2196_v60 = vadd.f32 %v2195_v28, %v2167_v20  ;;  %v2192_v35 = vadd.f32 %v2191_v48, %v2190_v29  ;;  %v2202_v40 = vadd.f32 %v2201_v19, %v2168_v55 }
0x1238   :  { %v2169_v42 = vmul.f32 %v6040_v15, %v6749_v5  ;;  %v2227_v32 = vsel %vm128_vm1, %v2182_v12, %v2176_v10  ;;  %v2187_v21 = vrot.slane %v2186_v25, 1  ;;  %v2170_v0 = vmul.f32 %v6042_v47, %v5350_v11 }
0x1239   :  { %v2197_v59 = vrot.slane %v2196_v60, 2  ;;  %v2193_v43 = vrot.slane %v2192_v35, 1  ;;  %v2203_v9 = vrot.slane %v2202_v40, 2 }
0x123a   :  { %v2207_v54 = vrot.slane %v2169_v42, 4  ;;  %v2188_v37 = vadd.f32 %v2187_v21, %v2186_v25  ;;  %v2213_v53 = vrot.slane %v2170_v0, 4 }
0x123b   :  { %v2198_v41 = vadd.f32 %v2197_v59, %v2196_v60  ;;  %v2194_v3 = vadd.f32 %v2193_v43, %v2192_v35  ;;  %v2204_v28 = vadd.f32 %v2203_v9, %v2202_v40 }
0x123c   :  { %v2208_v20 = vadd.f32 %v2207_v54, %v2169_v42  ;;  %v2228_v29 = vsel %vm131_vm2, %v2188_v37, %v2227_v32  ;;  %v2214_v13 = vadd.f32 %v2213_v53, %v2170_v0  ;;  %v6059_v32 = vld [vmem:[%s6621_s6 + $0x1] ss:$0 sm:$0xff] }
0x123d   :  { %v2199_v55 = vrot.slane %v2198_v41, 1  ;;  %v2229_v24 = vsel %vm134_vm3, %v2194_v3, %v2228_v29  ;;  %v2205_v17 = vrot.slane %v2204_v28, 1 }
0x123e   :  { %v2209_v48 = vrot.slane %v2208_v20, 2  ;;  %v2215_v12 = vrot.slane %v2214_v13, 2 }
0x123f   :  { %v2200_v19 = vadd.f32 %v2199_v55, %v2198_v41  ;;  %v2206_v10 = vadd.f32 %v2205_v17, %v2204_v28 }
0x1240   :  { %v2210_v47 = vadd.f32 %v2209_v48, %v2208_v20  ;;  %v2216_v25 = vadd.f32 %v2215_v12, %v2214_v13 }
0x1241   :  { %v2230_v15 = vsel %vm137_vm4, %v2200_v19, %v2229_v24 }
0x1242   :  { %v2231_v59 = vsel %vm140_vm5, %v2206_v10, %v2230_v15  ;;  %v2211_v60 = vrot.slane %v2210_v47, 1  ;;  %v2217_v9 = vrot.slane %v2216_v25, 1 }
0x1244   :  { %v2212_v42 = vadd.f32 %v2211_v60, %v2210_v47  ;;  %v2218_v54 = vadd.f32 %v2217_v9, %v2216_v25 }
0x1246   :  { %v2232_v37 = vsel %vm143_vm6, %v2212_v42, %v2231_v59 }
0x1247   :  { %v2233_v35 = vsel %vm145_vm7, %v2218_v54, %v2232_v37 }
0x1248   :  { %v2235_v40 = vadd.f32 %v2233_v35, %v5919_v36 }
0x124a   :  { %v2236_v21 = vadd.f32 %v6059_v32, %v2235_v40 }
0x124c   :  { %5020 = vtanh.f32 %v2236_v21  ;;  %v4689_v15 = vmul.f32 -1.442695, %v2236_v21 }
0x124e   :  { %5022 = vpow2.f32 %v4689_v15 }
0x1256   :  { %v5021_v0 = vpop.eup %5020 }
0x1257   :  { %2246 = vrot.lane.b32.xlu1 %v5021_v0, %s5174_s28 }
0x1258   :  { %v5023_v47 = vpop.eup %5022 }
0x1259   :  { %v2240_v43 = vadd.f32 1.0, %v5023_v47 }
0x125b   :  { %5024 = vrcp.f32 %v2240_v43 }
0x1265   :  { %v5025_v41 = vpop.eup %5024 }
0x1266   :  { %v2244_v36 = vmul.f32 %v5025_v41, %v5857_v26 }
0x12c9   :  { %v2247_v53 = vpop.permute.xlu1 %2246 }
0x12ca   :  { %v2249_v3 = vmul.f32 %v5025_v41, %v2247_v53 }
0x12cc   :  { %2251 = vrot.lane.b32.xlu0 %v2249_v3, %s5175_s29 }
0x133e   :  { %v2252_v28 = vpop.permute.xlu0 %2251 }
0x133f   :  { %v6065_v20 = vadd.f32 %v2252_v28, %v2244_v36 }
0x1341   :  { %5026 = vtanh.f32 %v6065_v20 }
0x134b   :  { %v5027_v29 = vpop.eup %5026 }
0x134c   :  { %2257 = vrot.lane.b32.xlu1 %v5027_v29, %s5174_s28 }
0x13be   :  { %v2258_v55 = vpop.permute.xlu1 %2257 }
0x13bf   :  { %v2260_v13 = vmul.f32 %v5025_v41, %v2258_v55 }
0x13c1   :  { %v3360_v24 = vcombine.high %v2260_v13, %v2260_v13  ;;  %v3367_v17 = vrot.slane %v2260_v13, %v5358_v18  ;;  %2262 = vrot.lane.b32.xlu0 %v2260_v13, %s5175_s29 }
0x13c3   :  { %v3374_v48 = vrot.slane %v3360_v24, %v5358_v18  ;;  %v3375_v19 = vcombine.high %v3367_v17, %v3367_v17  ;;  %v3383_v26 = vrot.slane %v3367_v17, %v5358_v18 }
0x13c5   :  { %v3376_v12 = vcombine.high %v3374_v48, %v3374_v48  ;;  %v3390_v10 = vrot.slane %v3374_v48, %v5358_v18  ;;  %v3397_v25 = vrot.slane %v3375_v19, %v5358_v18  ;;  %v3405_v59 = vcombine.high %v3383_v26, %v3383_v26 }
0x13c6   :  { %v3591_v60 = vrot.slane %v3383_v26, %v5364_v23 }
0x13c7   :  { %v3404_v9 = vrot.slane %v3376_v12, %v5358_v18  ;;  %v3406_v42 = vcombine.high %v3390_v10, %v3390_v10  ;;  %v3407_v54 = vcombine.high %v3397_v25, %v3397_v25  ;;  %v3595_v37 = vrot.slane %v3397_v25, %v5364_v23 }
0x13c8   :  { %v3599_v35 = vrot.slane %v3405_v59, %v5364_v23  ;;  %v3607_v40 = vrot.slane %v3390_v10, %v5364_v23  ;;  %v6082_v21 = vsel %vm3726_vm13, %v5874_v14, %v3591_v60 }
0x13c9   :  { %v3408_v0 = vcombine.high %v3404_v9, %v3404_v9  ;;  %v3603_v15 = vrot.slane %v3407_v54, %v5364_v23  ;;  %v3611_v47 = vrot.slane %v3404_v9, %v5364_v23  ;;  %v3615_v43 = vrot.slane %v3406_v42, %v5364_v23 }
0x13ca   :  { %v6089_v41 = vsel %vm3726_vm13, %v5881_v58, %v3595_v37  ;;  %v6093_v53 = vsel %vm3726_vm13, %v5885_v22, %v3599_v35  ;;  %v6097_v3 = vsel %vm3726_vm13, %v5889_v33, %v3607_v40 }
0x13cb   :  { %v3619_v14 = vrot.slane %v3408_v0, %v5364_v23  ;;  %v6102_v36 = vsel %vm3726_vm13, %v5894_v16, %v3603_v15  ;;  %v6106_v28 = vsel %vm3726_vm13, %v5898_v57, %v3611_v47  ;;  %v6110_v58 = vsel %vm3726_vm13, %v5902_v51, %v3615_v43 }
0x13cd   :  { %v6114_v22 = vsel %vm3726_vm13, %v5906_v27, %v3619_v14 }
0x1433   :  { %v2263_v33 = vpop.permute.xlu0 %2262 }
0x1434   :  { %v2265_v29 = vsel %vm373_vm9, %v2263_v33, %v6065_v20 }
0x1435   :  { %4690 = vmatmul.mubr.msk.f32.vlgmr.msra.gmra.mrb[18].mxu1 %vm375_vm10, %v2265_v29 }
0x1508   :  { %v6119_v16 = vpop.f32.mrb[18].mxu1 }
0x1509   :  { %v2337_v55 = vpop.f32.mrb[19].mxu1 }
0x150a   :  { %v2341_v13 = vcombine.high %v2337_v55, %v2337_v55  ;;  %v2348_v57 = vrot.slane %v2337_v55, %v5358_v18 }
0x150c   :  { %v2355_v24 = vrot.slane %v2341_v13, %v5358_v18  ;;  %v2356_v51 = vcombine.high %v2348_v57, %v2348_v57  ;;  %v2364_v17 = vrot.slane %v2348_v57, %v5358_v18 }
0x150e   :  { %v2357_v48 = vcombine.high %v2355_v24, %v2355_v24  ;;  %v2371_v27 = vrot.slane %v2355_v24, %v5358_v18  ;;  %v2378_v19 = vrot.slane %v2356_v51, %v5358_v18  ;;  %v2386_v26 = vcombine.high %v2364_v17, %v2364_v17  ;;  %v6146_v24 = vld [vmem:[%s6619_s4] ss:$0 sm:$0xff] }
0x150f   :  { %v2393_v12 = vrot.slane %v2364_v17, %v5364_v23 }
0x1510   :  { %v2385_v10 = vrot.slane %v2357_v48, %v5358_v18  ;;  %v2387_v25 = vcombine.high %v2371_v27, %v2371_v27  ;;  %v2388_v59 = vcombine.high %v2378_v19, %v2378_v19  ;;  %v2397_v60 = vrot.slane %v2378_v19, %v5364_v23 }
0x1511   :  { %v2401_v9 = vrot.slane %v2386_v26, %v5364_v23  ;;  %v2409_v42 = vrot.slane %v2371_v27, %v5364_v23  ;;  %v2430_v54 = vadd.f32 %v2393_v12, %v5324_v61 }
0x1512   :  { %v2389_v37 = vcombine.high %v2385_v10, %v2385_v10  ;;  %v2405_v35 = vrot.slane %v2388_v59, %v5364_v23  ;;  %v2413_v40 = vrot.slane %v2385_v10, %v5364_v23  ;;  %v2417_v0 = vrot.slane %v2387_v25, %v5364_v23 }
0x1513   :  { %v2431_v15 = vadd.f32 %v2397_v60, %v5328_v63  ;;  %v2432_v47 = vadd.f32 %v2401_v9, %v5332_v2  ;;  %v2434_v43 = vadd.f32 %v2409_v42, %v5340_v6  ;;  %5028 = vtanh.f32 %v2430_v54 }
0x1514   :  { %v2421_v14 = vrot.slane %v2389_v37, %v5364_v23  ;;  %v2433_v33 = vadd.f32 %v2405_v35, %v5336_v4  ;;  %v2435_v29 = vadd.f32 %v2413_v40, %v6721_v8  ;;  %v2436_v55 = vadd.f32 %v2417_v0, %v6722_v44 }
0x1515   :  { %5030 = vtanh.f32 %v2431_v15 }
0x1516   :  { %v2437_v13 = vadd.f32 %v2421_v14, %v6723_v62  ;;  %5032 = vtanh.f32 %v2432_v47 }
0x1517   :  { %5034 = vtanh.f32 %v2433_v33 }
0x1518   :  { %5036 = vtanh.f32 %v2434_v43 }
0x1519   :  { %5038 = vtanh.f32 %v2435_v29 }
0x151a   :  { %5040 = vtanh.f32 %v2437_v13 }
0x151b   :  { %5042 = vtanh.f32 %v2436_v55 }
0x151d   :  { %v5029_v57 = vpop.eup %5028 }
0x151e   :  { %v2446_v51 = vmul.f32 %v6146_v24, %v5029_v57 }
0x151f   :  { %v5031_v17 = vpop.eup %5030 }
0x1520   :  { %v5033_v48 = vpop.eup %5032  ;;  %v2454_v27 = vsel %vm147_vm8, %v2446_v51, 0.0  ;;  %v2447_v19 = vmul.f32 %v6146_v24, %v5031_v17 }
0x1521   :  { %v5035_v26 = vpop.eup %5034  ;;  %2455 = vadd.xlane.f32.xlu1 %v2454_v27  ;;  %v2448_v59 = vmul.f32 %v6146_v24, %v5033_v48 }
0x1522   :  { %v5037_v12 = vpop.eup %5036  ;;  %v2457_v10 = vsel %vm147_vm8, %v2447_v19, 0.0  ;;  %v2449_v25 = vmul.f32 %v6146_v24, %v5035_v26 }
0x1523   :  { %v5039_v60 = vpop.eup %5038  ;;  %2458 = vadd.xlane.f32.xlu0 %v2457_v10  ;;  %v2460_v37 = vsel %vm147_vm8, %v2448_v59, 0.0  ;;  %v2450_v35 = vmul.f32 %v6146_v24, %v5037_v12 }
0x1524   :  { %v2463_v9 = vsel %vm147_vm8, %v2449_v25, 0.0  ;;  %v2451_v42 = vmul.f32 %v6146_v24, %v5039_v60  ;;  %v5041_v54 = vpop.eup %5040 }
0x1525   :  { %2464 = vadd.xlane.f32.xlu1 %v2463_v9  ;;  %v5043_v40 = vpop.eup %5042  ;;  %v2453_v15 = vmul.f32 %v6146_v24, %v5041_v54  ;;  %v2466_v47 = vsel %vm147_vm8, %v2450_v35, 0.0 }
0x1526   :  { %v2469_v0 = vsel %vm147_vm8, %v2451_v42, 0.0  ;;  %v2452_v43 = vmul.f32 %v6146_v24, %v5043_v40 }
0x1527   :  { %2461 = vadd.xlane.f32.xlu0 %v2460_v37  ;;  %v2475_v14 = vsel %vm147_vm8, %v2453_v15, 0.0 }
0x1528   :  { %v2472_v33 = vsel %vm147_vm8, %v2452_v43, 0.0 }
0x1529   :  { %2470 = vadd.xlane.f32.xlu1 %v2469_v0 }
0x152b   :  { %2467 = vadd.xlane.f32.xlu0 %v2466_v47 }
0x152d   :  { %2476 = vadd.xlane.f32.xlu1 %v2475_v14 }
0x152f   :  { %2473 = vadd.xlane.f32.xlu0 %v2472_v33 }
0x15ae   :  { %v2456_v29 = vpop.xlane.xlu1 %2455 }
0x15af   :  { %v2478_v55 = vmul.f32 1.442695, %v2456_v29 }
0x15b0   :  { %v2459_v13 = vpop.xlane.xlu0 %2458 }
0x15b1   :  { %v2480_v57 = vmul.f32 1.442695, %v2459_v13 }
0x15b2   :  { %v2465_v51 = vpop.xlane.xlu1 %2464 }
0x15b3   :  { %5044 = vpow2.f32 %v2480_v57  ;;  %v2484_v17 = vmul.f32 1.442695, %v2465_v51 }
0x15b4   :  { %5046 = vpow2.f32 %v2478_v55  ;;  %v2462_v48 = vpop.xlane.xlu0 %2461 }
0x15b5   :  { %v2482_v27 = vmul.f32 1.442695, %v2462_v48 }
0x15b6   :  { %v2471_v19 = vpop.xlane.xlu1 %2470 }
0x15b7   :  { %5048 = vpow2.f32 %v2482_v27  ;;  %v2488_v26 = vmul.f32 1.442695, %v2471_v19 }
0x15b8   :  { %5050 = vpow2.f32 %v2484_v17  ;;  %v2468_v12 = vpop.xlane.xlu0 %2467 }
0x15b9   :  { %v2486_v10 = vmul.f32 1.442695, %v2468_v12 }
0x15ba   :  { %v2477_v25 = vpop.xlane.xlu1 %2476 }
0x15bb   :  { %5052 = vpow2.f32 %v2486_v10  ;;  %v2492_v59 = vmul.f32 1.442695, %v2477_v25 }
0x15bc   :  { %5054 = vpow2.f32 %v2488_v26  ;;  %v2474_v60 = vpop.xlane.xlu0 %2473 }
0x15bd   :  { %v5045_v9 = vpop.eup %5044  ;;  %v2490_v42 = vmul.f32 1.442695, %v2474_v60  ;;  %5056 = vpow2.f32 %v2492_v59 }
0x15be   :  { %v5047_v54 = vpop.eup %5046  ;;  %v2509_v37 = vrot.slane %v5045_v9, %v5410_v50 }
0x15bf   :  { %5058 = vpow2.f32 %v2490_v42  ;;  %v2505_v40 = vrot.slane %v5047_v54, %v5410_v50 }
0x15c1   :  { %v5049_v35 = vpop.eup %5048  ;;  %v2534_v47 = vsel %vm128_vm1, %v2509_v37, %v2505_v40 }
0x15c2   :  { %v5051_v0 = vpop.eup %5050  ;;  %v2513_v15 = vrot.slane %v5049_v35, %v5410_v50 }
0x15c3   :  { %v2517_v33 = vrot.slane %v5051_v0, %v5410_v50 }
0x15c4   :  { %v2535_v43 = vsel %vm131_vm2, %v2513_v15, %v2534_v47 }
0x15c5   :  { %v5053_v14 = vpop.eup %5052  ;;  %v2536_v13 = vsel %vm134_vm3, %v2517_v33, %v2535_v43 }
0x15c6   :  { %v5055_v29 = vpop.eup %5054  ;;  %v2521_v55 = vrot.slane %v5053_v14, %v5410_v50 }
0x15c7   :  { %v5057_v57 = vpop.eup %5056  ;;  %v2525_v48 = vrot.slane %v5055_v29, %v5410_v50 }
0x15c8   :  { %v2537_v51 = vsel %vm137_vm4, %v2521_v55, %v2536_v13  ;;  %v2533_v19 = vrot.slane %v5057_v57, %v5410_v50 }
0x15c9   :  { %v5059_v17 = vpop.eup %5058  ;;  %v2538_v26 = vsel %vm140_vm5, %v2525_v48, %v2537_v51 }
0x15ca   :  { %v2529_v27 = vrot.slane %v5059_v17, %v5410_v50 }
0x15cc   :  { %v2539_v12 = vsel %vm143_vm6, %v2529_v27, %v2538_v26 }
0x15cd   :  { %v2540_v10 = vsel %vm145_vm7, %v2533_v19, %v2539_v12 }
0x15ce   :  { %v2542_v25 = vsel %vm147_vm8, %v2540_v10, 0.0 }
0x15cf   :  { %2543 = vadd.xlane.f32.xlu0 %v2542_v25 }
0x165c   :  { %v2544_v59 = vpop.xlane.xlu0 %2543 }
0x165d   :  { %5060 = vrcp.f32 %v2544_v59 }
0x1667   :  { %v5061_v60 = vpop.eup %5060 }
0x1668   :  { %v2554_v42 = vrot.slane %v5061_v60, %v5429_v38  ;;  %v2550_v37 = vrot.slane %v5061_v60, %v5364_v23  ;;  %v2566_v47 = vrot.slane %v5061_v60, %v5442_v49  ;;  %v2558_v43 = vrot.slane %v5061_v60, %v5432_v39 }
0x1669   :  { %v2574_v13 = vrot.slane %v5061_v60, %v6725_v45  ;;  %v2562_v51 = vrot.slane %v5061_v60, %v5438_v46  ;;  %v2570_v19 = vrot.slane %v5061_v60, %v5446_v56 }
0x166a   :  { %v2588_v40 = vmul.f32 %v5045_v9, %v2554_v42  ;;  %v2587_v15 = vmul.f32 %v5047_v54, %v2550_v37  ;;  %v2591_v33 = vmul.f32 %v5053_v14, %v2566_v47  ;;  %v2589_v55 = vmul.f32 %v5049_v35, %v2558_v43  ;;  %v6752_v43 = vld [vmem:[#allocation10_spill] sm:$0xff] }
0x166b   :  { %v2593_v48 = vmul.f32 %v5059_v17, %v2574_v13  ;;  %v2590_v27 = vmul.f32 %v5051_v0, %v2562_v51  ;;  %v2592_v9 = vmul.f32 %v5055_v29, %v2570_v19  ;;  %v2578_v54 = vrot.slane %v5061_v60, %v6726_v31  ;;  %v6755_v19 = vld [vmem:[#allocation14_spill] sm:$0xff] }
0x166c   :  { %2602 = vperm.xlu0 %4853, %v2588_v40   ;;  %2597 = vperm.xlu1 %4852, %v2587_v15  }
0x166d   :  { %v2594_v26 = vmul.f32 %v5057_v57, %v2578_v54 }
0x1670   :  { %2617 = vperm.xlu0 %4853, %v2591_v33   ;;  %2607 = vperm.xlu1 %4852, %v2589_v55  }
0x1674   :  { %2627 = vperm.xlu0 %4853, %v2593_v48   ;;  %2612 = vperm.xlu1 %4852, %v2590_v27   ;;  %v6753_v48 = vld [vmem:[#allocation17_spill] sm:$0xff] }
0x1678   :  { %2622 = vperm.xlu1 %4852, %v2592_v9  }
0x167c   :  { %2632 = vperm.xlu1 %4852, %v2594_v26  }
0x16eb   :  { %v2603_v35 = vpop.permute.xlu0 %2602  ;;  %v2598_v14 = vpop.permute.xlu1 %2597 }
0x16ec   :  { %v2636_v12 = vmul.f32 %v2603_v35, %v6734_v7  ;;  %v4536_v10 = vrot.slane %v2603_v35, %v5410_v50  ;;  %v2635_v17 = vmul.f32 %v2598_v14, %v6735_v1  ;;  %v4532_v0 = vrot.slane %v2598_v14, %v5410_v50 }
0x16ee   :  { %v2649_v25 = vrot.slane %v2636_v12, 4  ;;  %v6194_v29 = vsel %vm3735_vm14, %v6010_v30, %v4536_v10  ;;  %v2643_v59 = vrot.slane %v2635_v17, 4  ;;  %v6198_v57 = vsel %vm3735_vm14, %v6013_v52, %v4532_v0  ;;  %v6758_v0 = vld [vmem:[#allocation11_spill] sm:$0xff] }
0x16ef   :  { %6750 = vst [vmem:[#allocation28_spill] sm:$0xff] %v6194_v29  ;;  %6751 = vst [vmem:[#allocation29_spill] sm:$0xff] %v6198_v57  ;;  %v2618_v60 = vpop.permute.xlu0 %2617  ;;  %v2608_v42 = vpop.permute.xlu1 %2607  ;;  %v6761_v29 = vld [vmem:[#allocation34_spill] sm:$0xff] }
0x16f0   :  { %v2650_v37 = vadd.f32 %v2649_v25, %v2636_v12  ;;  %v2644_v40 = vadd.f32 %v2643_v59, %v2635_v17  ;;  %v2639_v15 = vmul.f32 %v2618_v60, %v6743_v34  ;;  %v4548_v47 = vrot.slane %v2618_v60, %v5410_v50 }
0x16f1   :  { %v2637_v33 = vmul.f32 %v2608_v42, %v6752_v43  ;;  %v4540_v55 = vrot.slane %v2608_v42, %v5410_v50 }
0x16f2   :  { %v2651_v13 = vrot.slane %v2650_v37, 2  ;;  %v2645_v30 = vrot.slane %v2644_v40, 2  ;;  %v2667_v51 = vrot.slane %v2639_v15, 4  ;;  %v6206_v27 = vsel %vm3735_vm14, %v6753_v48, %v4548_v47 }
0x16f3   :  { %6754 = vst [vmem:[#allocation21_spill] sm:$0xff] %v6206_v27  ;;  %v2655_v52 = vrot.slane %v2637_v33, 4  ;;  %v6210_v9 = vsel %vm3735_vm14, %v6755_v19, %v4540_v55  ;;  %v6212_v54 = vpop.permute.xlu0 %2627  ;;  %v2613_v26 = vpop.permute.xlu1 %2612  ;;  %v6759_v27 = vld [vmem:[#allocation16_spill] sm:$0xff] }
0x16f4   :  { %6756 = vst [vmem:[#allocation22_spill] sm:$0xff] %v6210_v9  ;;  %6757 = vst [vmem:[#allocation35_spill] sm:$0xff] %v6212_v54  ;;  %v2652_v35 = vadd.f32 %v2651_v13, %v2650_v37  ;;  %v2646_v14 = vadd.f32 %v2645_v30, %v2644_v40  ;;  %v2668_v12 = vadd.f32 %v2667_v51, %v2639_v15  ;;  %v6760_v51 = vld [vmem:[#allocation13_spill] sm:$0xff] }
0x16f5   :  { %v2641_v10 = vmul.f32 %v6212_v54, %v6749_v5  ;;  %v2656_v17 = vadd.f32 %v2655_v52, %v2637_v33  ;;  %v2638_v25 = vmul.f32 %v2613_v26, %v6758_v0  ;;  %v4544_v59 = vrot.slane %v2613_v26, %v5410_v50 }
0x16f6   :  { %v2653_v60 = vrot.slane %v2652_v35, 1  ;;  %v2647_v42 = vrot.slane %v2646_v14, 1  ;;  %v2669_v47 = vrot.slane %v2668_v12, 2 }
0x16f7   :  { %v2679_v48 = vrot.slane %v2641_v10, 4  ;;  %v2657_v55 = vrot.slane %v2656_v17, 2  ;;  %v2661_v19 = vrot.slane %v2638_v25, 4  ;;  %v6220_v34 = vsel %vm3735_vm14, %v6759_v27, %v4544_v59  ;;  %v2623_v37 = vpop.permute.xlu1 %2622 }
0x16f8   :  { %v2654_v40 = vadd.f32 %v2653_v60, %v2652_v35  ;;  %v2648_v15 = vadd.f32 %v2647_v42, %v2646_v14  ;;  %v2640_v52 = vmul.f32 %v2623_v37, %v6760_v51  ;;  %v4552_v26 = vrot.slane %v2623_v37, %v5410_v50 }
0x16f9   :  { %v2680_v13 = vadd.f32 %v2679_v48, %v2641_v10  ;;  %v2658_v30 = vadd.f32 %v2657_v55, %v2656_v17  ;;  %v2662_v33 = vadd.f32 %v2661_v19, %v2638_v25  ;;  %v2670_v9 = vadd.f32 %v2669_v47, %v2668_v12 }
0x16fa   :  { %v2699_v5 = vsel %vm128_vm1, %v2654_v40, %v2648_v15  ;;  %v2673_v57 = vrot.slane %v2640_v52, 4  ;;  %v6227_v27 = vsel %vm3735_vm14, %v6761_v29, %v4552_v26 }
0x16fb   :  { %v2681_v0 = vrot.slane %v2680_v13, 2  ;;  %v2659_v43 = vrot.slane %v2658_v30, 1  ;;  %v2663_v54 = vrot.slane %v2662_v33, 2  ;;  %6762 = vst [vmem:[#allocation36_spill] sm:$0xff] %v6227_v27  ;;  %v6229_v35 = vpop.permute.xlu1 %2632  ;;  %v2671_v59 = vrot.slane %v2670_v9, 1 }
0x16fc   :  { %v2642_v14 = vmul.f32 %v6229_v35, %v5350_v11  ;;  %v2674_v25 = vadd.f32 %v2673_v57, %v2640_v52 }
0x16fd   :  { %v2660_v10 = vadd.f32 %v2659_v43, %v2658_v30  ;;  %v2664_v17 = vadd.f32 %v2663_v54, %v2662_v33  ;;  %v2682_v60 = vadd.f32 %v2681_v0, %v2680_v13  ;;  %v2672_v29 = vadd.f32 %v2671_v59, %v2670_v9 }
0x16fe   :  { %v2685_v42 = vrot.slane %v2642_v14, 4  ;;  %v2675_v48 = vrot.slane %v2674_v25, 2 }
0x16ff   :  { %v2700_v12 = vsel %vm131_vm2, %v2660_v10, %v2699_v5  ;;  %v2665_v47 = vrot.slane %v2664_v17, 1  ;;  %v2683_v40 = vrot.slane %v2682_v60, 1 }
0x1700   :  { %v2686_v55 = vadd.f32 %v2685_v42, %v2642_v14  ;;  %v2676_v37 = vadd.f32 %v2675_v48, %v2674_v25 }
0x1701   :  { %v2666_v19 = vadd.f32 %v2665_v47, %v2664_v17  ;;  %v2684_v30 = vadd.f32 %v2683_v40, %v2682_v60 }
0x1702   :  { %v2687_v15 = vrot.slane %v2686_v55, 2  ;;  %v2677_v27 = vrot.slane %v2676_v37, 1 }
0x1703   :  { %v2701_v26 = vsel %vm134_vm3, %v2666_v19, %v2700_v12 }
0x1704   :  { %v2702_v43 = vsel %vm137_vm4, %v2672_v29, %v2701_v26  ;;  %v2688_v54 = vadd.f32 %v2687_v15, %v2686_v55  ;;  %v2678_v57 = vadd.f32 %v2677_v27, %v2676_v37 }
0x1706   :  { %v2689_v0 = vrot.slane %v2688_v54, 1  ;;  %v2703_v13 = vsel %vm140_vm5, %v2678_v57, %v2702_v43 }
0x1707   :  { %v2704_v5 = vsel %vm143_vm6, %v2684_v30, %v2703_v13 }
0x1708   :  { %v2690_v33 = vadd.f32 %v2689_v0, %v2688_v54 }
0x170a   :  { %v2705_v52 = vsel %vm145_vm7, %v2690_v33, %v2704_v5 }
0x170b   :  { %v2707_v9 = vadd.f32 %v2705_v52, %v6119_v16 }
0x170d   :  { %v2708_v14 = vadd.f32 %v6059_v32, %v2707_v9 }
0x170f   :  { %5062 = vtanh.f32 %v2708_v14  ;;  %v4691_v17 = vmul.f32 -1.442695, %v2708_v14 }
0x1711   :  { %5064 = vpow2.f32 %v4691_v17 }
0x1719   :  { %v5063_v10 = vpop.eup %5062 }
0x171a   :  { %2718 = vrot.lane.b32.xlu0 %v5063_v10, %s5174_s28 }
0x171b   :  { %v5065_v27 = vpop.eup %5064 }
0x171c   :  { %v2712_v25 = vadd.f32 1.0, %v5065_v27 }
0x171e   :  { %5066 = vrcp.f32 %v2712_v25 }
0x1728   :  { %v5067_v59 = vpop.eup %5066 }
0x1729   :  { %v2716_v12 = vmul.f32 %v5067_v59, %v6065_v20 }
0x178c   :  { %v2719_v60 = vpop.permute.xlu0 %2718 }
0x178d   :  { %v2721_v42 = vmul.f32 %v5067_v59, %v2719_v60 }
0x178f   :  { %2723 = vrot.lane.b32.xlu1 %v2721_v42, %s5175_s29 }
0x1801   :  { %v2724_v47 = vpop.permute.xlu1 %2723 }
0x1802   :  { %v6244_v16 = vadd.f32 %v2724_v47, %v2716_v12 }
0x1804   :  { %5068 = vtanh.f32 %v6244_v16 }
0x180e   :  { %v5069_v32 = vpop.eup %5068 }
0x180f   :  { %2729 = vrot.lane.b32.xlu0 %v5069_v32, %s5174_s28 }
0x1881   :  { %v2730_v48 = vpop.permute.xlu0 %2729 }
0x1882   :  { %v2732_v55 = vmul.f32 %v5067_v59, %v2730_v48 }
0x1884   :  { %v3409_v19 = vcombine.high %v2732_v55, %v2732_v55  ;;  %v3416_v37 = vrot.slane %v2732_v55, %v5358_v18  ;;  %2734 = vrot.lane.b32.xlu1 %v2732_v55, %s5175_s29 }
0x1886   :  { %v3423_v29 = vrot.slane %v3409_v19, %v5358_v18  ;;  %v3424_v40 = vcombine.high %v3416_v37, %v3416_v37  ;;  %v3432_v20 = vrot.slane %v3416_v37, %v5358_v18 }
0x1888   :  { %v3425_v15 = vcombine.high %v3423_v29, %v3423_v29  ;;  %v3439_v26 = vrot.slane %v3423_v29, %v5358_v18  ;;  %v3446_v43 = vrot.slane %v3424_v40, %v5358_v18  ;;  %v3454_v54 = vcombine.high %v3432_v20, %v3432_v20 }
0x1889   :  { %v3631_v57 = vrot.slane %v3432_v20, %v5364_v23 }
0x188a   :  { %v3453_v30 = vrot.slane %v3425_v15, %v5358_v18  ;;  %v3455_v0 = vcombine.high %v3439_v26, %v3439_v26  ;;  %v3456_v13 = vcombine.high %v3446_v43, %v3446_v43  ;;  %v3635_v5 = vrot.slane %v3446_v43, %v5364_v23 }
0x188b   :  { %v3639_v33 = vrot.slane %v3454_v54, %v5364_v23  ;;  %v3647_v52 = vrot.slane %v3439_v26, %v5364_v23  ;;  %v6261_v9 = vsel %vm3735_vm14, %v6082_v21, %v3631_v57 }
0x188c   :  { %v3457_v14 = vcombine.high %v3453_v30, %v3453_v30  ;;  %v3643_v10 = vrot.slane %v3456_v13, %v5364_v23  ;;  %v3651_v17 = vrot.slane %v3453_v30, %v5364_v23  ;;  %v3655_v27 = vrot.slane %v3455_v0, %v5364_v23 }
0x188d   :  { %v6268_v25 = vsel %vm3735_vm14, %v6089_v41, %v3635_v5  ;;  %v6272_v59 = vsel %vm3735_vm14, %v6093_v53, %v3639_v33  ;;  %v6276_v60 = vsel %vm3735_vm14, %v6097_v3, %v3647_v52 }
0x188e   :  { %v3659_v21 = vrot.slane %v3457_v14, %v5364_v23  ;;  %v6281_v42 = vsel %vm3735_vm14, %v6102_v36, %v3643_v10  ;;  %v6285_v12 = vsel %vm3735_vm14, %v6106_v28, %v3651_v17  ;;  %v6289_v41 = vsel %vm3735_vm14, %v6110_v58, %v3655_v27 }
0x1890   :  { %v6293_v53 = vsel %vm3735_vm14, %v6114_v22, %v3659_v21 }
0x18f6   :  { %v2735_v3 = vpop.permute.xlu1 %2734 }
0x18f7   :  { %v2737_v47 = vsel %vm373_vm9, %v2735_v3, %v6244_v16 }
0x18f8   :  { %4692 = vmatmul.mubr.msk.f32.vlgmr.msra.gmra.mrb[8].mxu0 %vm375_vm10, %v2737_v47 }
0x19cb   :  { %v6298_v36 = vpop.f32.mrb[8].mxu0 }
0x19cc   :  { %v2809_v32 = vpop.f32.mrb[9].mxu0 }
0x19cd   :  { %v2813_v48 = vcombine.high %v2809_v32, %v2809_v32  ;;  %v2820_v28 = vrot.slane %v2809_v32, %v5358_v18 }
0x19cf   :  { %v2827_v55 = vrot.slane %v2813_v48, %v5358_v18  ;;  %v2828_v58 = vcombine.high %v2820_v28, %v2820_v28  ;;  %v2836_v19 = vrot.slane %v2820_v28, %v5358_v18 }
0x19d1   :  { %v2829_v37 = vcombine.high %v2827_v55, %v2827_v55  ;;  %v2843_v22 = vrot.slane %v2827_v55, %v5358_v18  ;;  %v2850_v29 = vrot.slane %v2828_v58, %v5358_v18  ;;  %v2858_v40 = vcombine.high %v2836_v19, %v2836_v19 }
0x19d2   :  { %v2865_v20 = vrot.slane %v2836_v19, %v5364_v23 }
0x19d3   :  { %v2857_v15 = vrot.slane %v2829_v37, %v5358_v18  ;;  %v2859_v26 = vcombine.high %v2843_v22, %v2843_v22  ;;  %v2860_v43 = vcombine.high %v2850_v29, %v2850_v29  ;;  %v2869_v54 = vrot.slane %v2850_v29, %v5364_v23 }
0x19d4   :  { %v2873_v57 = vrot.slane %v2858_v40, %v5364_v23  ;;  %v2881_v30 = vrot.slane %v2843_v22, %v5364_v23  ;;  %v2902_v0 = vadd.f32 %v2865_v20, %v5324_v61 }
0x19d5   :  { %v2861_v13 = vcombine.high %v2857_v15, %v2857_v15  ;;  %v2877_v5 = vrot.slane %v2860_v43, %v5364_v23  ;;  %v2885_v33 = vrot.slane %v2857_v15, %v5364_v23  ;;  %v2889_v52 = vrot.slane %v2859_v26, %v5364_v23 }
0x19d6   :  { %v2903_v14 = vadd.f32 %v2869_v54, %v5328_v63  ;;  %v2904_v10 = vadd.f32 %v2873_v57, %v5332_v2  ;;  %v2906_v17 = vadd.f32 %v2881_v30, %v5340_v6  ;;  %5070 = vtanh.f32 %v2902_v0 }
0x19d7   :  { %v2893_v27 = vrot.slane %v2861_v13, %v5364_v23  ;;  %v2905_v21 = vadd.f32 %v2877_v5, %v5336_v4  ;;  %v2907_v61 = vadd.f32 %v2885_v33, %v6721_v8  ;;  %v2908_v3 = vadd.f32 %v2889_v52, %v6722_v44 }
0x19d8   :  { %5072 = vtanh.f32 %v2903_v14 }
0x19d9   :  { %v2909_v47 = vadd.f32 %v2893_v27, %v6723_v62  ;;  %5074 = vtanh.f32 %v2904_v10 }
0x19da   :  { %5076 = vtanh.f32 %v2905_v21 }
0x19db   :  { %5078 = vtanh.f32 %v2906_v17 }
0x19dc   :  { %5080 = vtanh.f32 %v2908_v3 }
0x19dd   :  { %5082 = vtanh.f32 %v2907_v61 }
0x19de   :  { %5084 = vtanh.f32 %v2909_v47 }
0x19e0   :  { %v5071_v63 = vpop.eup %5070 }
0x19e1   :  { %v2918_v2 = vmul.f32 %v6146_v24, %v5071_v63 }
0x19e2   :  { %v5073_v6 = vpop.eup %5072 }
0x19e3   :  { %v5075_v32 = vpop.eup %5074  ;;  %v2926_v4 = vsel %vm147_vm8, %v2918_v2, 0.0  ;;  %v2919_v8 = vmul.f32 %v6146_v24, %v5073_v6 }
0x19e4   :  { %v5077_v48 = vpop.eup %5076  ;;  %2927 = vadd.xlane.f32.xlu0 %v2926_v4  ;;  %v2920_v44 = vmul.f32 %v6146_v24, %v5075_v32 }
0x19e5   :  { %v5079_v62 = vpop.eup %5078  ;;  %v2929_v28 = vsel %vm147_vm8, %v2919_v8, 0.0  ;;  %v2921_v37 = vmul.f32 %v6146_v24, %v5077_v48 }
0x19e6   :  { %2930 = vadd.xlane.f32.xlu1 %v2929_v28  ;;  %v2922_v55 = vmul.f32 %v6146_v24, %v5079_v62  ;;  %v5081_v58 = vpop.eup %5080  ;;  %v2932_v19 = vsel %vm147_vm8, %v2920_v44, 0.0 }
0x19e7   :  { %v5083_v22 = vpop.eup %5082  ;;  %v2924_v40 = vmul.f32 %v6146_v24, %v5081_v58  ;;  %v2935_v20 = vsel %vm147_vm8, %v2921_v37, 0.0 }
0x19e8   :  { %2933 = vadd.xlane.f32.xlu0 %v2932_v19  ;;  %v2938_v29 = vsel %vm147_vm8, %v2922_v55, 0.0  ;;  %v2923_v15 = vmul.f32 %v6146_v24, %v5083_v22  ;;  %v5085_v26 = vpop.eup %5084 }
0x19e9   :  { %v2944_v43 = vsel %vm147_vm8, %v2924_v40, 0.0  ;;  %v2925_v57 = vmul.f32 %v6146_v24, %v5085_v26 }
0x19ea   :  { %2939 = vadd.xlane.f32.xlu1 %v2938_v29  ;;  %v2941_v54 = vsel %vm147_vm8, %v2923_v15, 0.0 }
0x19eb   :  { %v2947_v30 = vsel %vm147_vm8, %v2925_v57, 0.0 }
0x19ec   :  { %2936 = vadd.xlane.f32.xlu0 %v2935_v20 }
0x19ee   :  { %2945 = vadd.xlane.f32.xlu1 %v2944_v43 }
0x19f0   :  { %2942 = vadd.xlane.f32.xlu0 %v2941_v54 }
0x19f4   :  { %2948 = vadd.xlane.f32.xlu0 %v2947_v30 }
0x1a71   :  { %v2928_v0 = vpop.xlane.xlu0 %2927 }
0x1a72   :  { %v2950_v13 = vmul.f32 1.442695, %v2928_v0 }
0x1a73   :  { %v2931_v5 = vpop.xlane.xlu1 %2930 }
0x1a74   :  { %v2952_v33 = vmul.f32 1.442695, %v2931_v5  ;;  %5086 = vpow2.f32 %v2950_v13 }
0x1a75   :  { %v2934_v52 = vpop.xlane.xlu0 %2933 }
0x1a76   :  { %5088 = vpow2.f32 %v2952_v33  ;;  %v2954_v14 = vmul.f32 1.442695, %v2934_v52 }
0x1a77   :  { %v2940_v10 = vpop.xlane.xlu1 %2939 }
0x1a78   :  { %5090 = vpow2.f32 %v2954_v14  ;;  %v2958_v17 = vmul.f32 1.442695, %v2940_v10 }
0x1a79   :  { %v2937_v27 = vpop.xlane.xlu0 %2936 }
0x1a7a   :  { %v2956_v21 = vmul.f32 1.442695, %v2937_v27 }
0x1a7b   :  { %v2946_v61 = vpop.xlane.xlu1 %2945 }
0x1a7c   :  { %5092 = vpow2.f32 %v2956_v21  ;;  %v2962_v24 = vmul.f32 1.442695, %v2946_v61 }
0x1a7d   :  { %5094 = vpow2.f32 %v2958_v17  ;;  %v2943_v3 = vpop.xlane.xlu0 %2942 }
0x1a7e   :  { %v2960_v47 = vmul.f32 1.442695, %v2943_v3  ;;  %v5087_v63 = vpop.eup %5086 }
0x1a7f   :  { %v2977_v48 = vrot.slane %v5087_v63, %v5410_v50 }
0x1a80   :  { %v5089_v2 = vpop.eup %5088  ;;  %5096 = vpow2.f32 %v2960_v47 }
0x1a81   :  { %v2981_v6 = vrot.slane %v5089_v2, %v5410_v50  ;;  %5098 = vpow2.f32 %v2962_v24  ;;  %v2949_v32 = vpop.xlane.xlu0 %2948 }
0x1a82   :  { %v5091_v4 = vpop.eup %5090  ;;  %v2964_v8 = vmul.f32 1.442695, %v2949_v32 }
0x1a83   :  { %v2985_v44 = vrot.slane %v5091_v4, %v5410_v50  ;;  %v3006_v62 = vsel %vm128_vm1, %v2981_v6, %v2977_v48 }
0x1a84   :  { %5100 = vpow2.f32 %v2964_v8  ;;  %v6765_v8 = vld [vmem:[#allocation26_spill] sm:$0xff] }
0x1a85   :  { %v3007_v19 = vsel %vm131_vm2, %v2985_v44, %v3006_v62  ;;  %v4396_v48 = vrot.slane %v6765_v8, %v5410_v50  ;;  %v6766_v44 = vld [vmem:[#allocation27_spill] sm:$0xff] }
0x1a86   :  { %v5093_v28 = vpop.eup %5092 }
0x1a87   :  { %v5095_v55 = vpop.eup %5094  ;;  %v2989_v58 = vrot.slane %v5093_v28, %v5410_v50 }
0x1a88   :  { %v2993_v29 = vrot.slane %v5095_v55, %v5410_v50 }
0x1a89   :  { %v3008_v37 = vsel %vm134_vm3, %v2989_v58, %v3007_v19 }
0x1a8a   :  { %v5097_v22 = vpop.eup %5096  ;;  %v3009_v15 = vsel %vm137_vm4, %v2993_v29, %v3008_v37 }
0x1a8b   :  { %v5099_v40 = vpop.eup %5098  ;;  %v2997_v20 = vrot.slane %v5097_v22, %v5410_v50 }
0x1a8c   :  { %v3001_v54 = vrot.slane %v5099_v40, %v5410_v50 }
0x1a8d   :  { %v3010_v26 = vsel %vm140_vm5, %v2997_v20, %v3009_v15 }
0x1a8e   :  { %v5101_v43 = vpop.eup %5100  ;;  %v3011_v30 = vsel %vm143_vm6, %v3001_v54, %v3010_v26  ;;  %v6769_v26 = vld [vmem:[#allocation19_spill] sm:$0xff]  ;;  %v6770_v54 = vld [vmem:[#allocation20_spill] sm:$0xff] }
0x1a8f   :  { %v3005_v57 = vrot.slane %v5101_v43, %v5410_v50 }
0x1a91   :  { %v3012_v0 = vsel %vm145_vm7, %v3005_v57, %v3011_v30  ;;  %v4520_v57 = vrot.slane %v6770_v54, %v5410_v50  ;;  %v6778_v54 = vld [vmem:[#allocation21_spill] sm:$0xff] }
0x1a92   :  { %v3014_v13 = vsel %vm147_vm8, %v3012_v0, 0.0  ;;  %v6771_v0 = vld [vmem:[#allocation28_spill] sm:$0xff] }
0x1a93   :  { %3015 = vadd.xlane.f32.xlu1 %v3014_v13 }
0x1b20   :  { %v3016_v5 = vpop.xlane.xlu1 %3015 }
0x1b21   :  { %5102 = vrcp.f32 %v3016_v5  ;;  %v6772_v5 = vld [vmem:[#allocation29_spill] sm:$0xff] }
0x1b2b   :  { %v5103_v33 = vpop.eup %5102 }
0x1b2c   :  { %v3026_v52 = vrot.slane %v5103_v33, %v5429_v38  ;;  %v3022_v14 = vrot.slane %v5103_v33, %v5364_v23  ;;  %v3030_v27 = vrot.slane %v5103_v33, %v5432_v39  ;;  %v3034_v21 = vrot.slane %v5103_v33, %v5438_v46 }
0x1b2d   :  { %v3038_v3 = vrot.slane %v5103_v33, %v5442_v49  ;;  %v3042_v47 = vrot.slane %v5103_v33, %v5446_v56  ;;  %v3046_v32 = vrot.slane %v5103_v33, %v6725_v45  ;;  %v6764_v49 = vld [vmem:[#allocation33_spill] sm:$0xff]  ;;  %v4400_v45 = vrot.slane %v6766_v44, %v5410_v50 }
0x1b2e   :  { %v3060_v10 = vmul.f32 %v5089_v2, %v3026_v52  ;;  %v3059_v17 = vmul.f32 %v5087_v63, %v3022_v14  ;;  %v3061_v61 = vmul.f32 %v5091_v4, %v3030_v27  ;;  %v3062_v24 = vmul.f32 %v5093_v28, %v3034_v21  ;;  %v6763_v2 = vld [vmem:[#allocation32_spill] sm:$0xff]  ;;  %v6768_v28 = vld [vmem:[#allocation25_spill] sm:$0xff]  ;;  %v6773_v14 = vld [vmem:[#allocation35_spill] sm:$0xff] }
0x1b2f   :  { %v3063_v6 = vmul.f32 %v5095_v55, %v3038_v3  ;;  %v3064_v38 = vmul.f32 %v5097_v22, %v3042_v47  ;;  %v3050_v63 = vrot.slane %v5103_v33, %v6726_v31  ;;  %v3065_v39 = vmul.f32 %v5099_v40, %v3046_v32  ;;  %v6767_v31 = vld [vmem:[#allocation38_spill] sm:$0xff]  ;;  %v6775_v32 = vld [vmem:[#allocation11_spill] sm:$0xff] }
0x1b30   :  { %3074 = vperm.xlu1 %4852, %v3060_v10   ;;  %3069 = vperm.xlu0 %4853, %v3059_v17   ;;  %v4436_v4 = vrot.slane %v6763_v2, %v5410_v50  ;;  %v4440_v56 = vrot.slane %v6764_v49, %v5410_v50  ;;  %v4476_v62 = vrot.slane %v6767_v31, %v5410_v50  ;;  %v6776_v49 = vld [vmem:[#allocation22_spill] sm:$0xff] }
0x1b31   :  { %v3066_v46 = vmul.f32 %v5101_v43, %v3050_v63  ;;  %v4480_v55 = vrot.slane %v6768_v28, %v5410_v50  ;;  %v4516_v43 = vrot.slane %v6769_v26, %v5410_v50  ;;  %v4556_v10 = vrot.slane %v6773_v14, %v5410_v50 }
0x1b32   :  { %v4615_v20 = vsel %vm3708_vm11, %v4396_v48, %v4436_v4  ;;  %v4616_v15 = vsel %vm3708_vm11, %v4400_v45, %v4440_v56  ;;  %v4560_v48 = vrot.slane %v6229_v35, %v5410_v50  ;;  %v6777_v35 = vld [vmem:[#allocation12_spill] sm:$0xff] }
0x1b33   :  { %v4623_v33 = vsel %vm3717_vm12, %v4615_v20, %v4476_v62  ;;  %v4624_v52 = vsel %vm3717_vm12, %v4616_v15, %v4480_v55 }
0x1b34   :  { %3079 = vperm.xlu1 %4852, %v3061_v61   ;;  %3084 = vperm.xlu0 %4853, %v3062_v24   ;;  %v6774_v24 = vld [vmem:[#allocation10_spill] sm:$0xff] }
0x1b38   :  { %3089 = vperm.xlu1 %4852, %v3063_v6   ;;  %3094 = vperm.xlu0 %4853, %v3064_v38   ;;  %v4631_v6 = vsel %vm3726_vm13, %v4623_v33, %v4516_v43  ;;  %v4632_v38 = vsel %vm3726_vm13, %v4624_v52, %v4520_v57 }
0x1b39   :  { %v4639_v8 = vsel %vm3735_vm14, %v4631_v6, %v4556_v10 }
0x1b3c   :  { %3099 = vperm.xlu1 %4852, %v3065_v39   ;;  %3104 = vperm.xlu0 %4853, %v3066_v46  }
0x1baf   :  { %v3075_v58 = vpop.permute.xlu1 %3074  ;;  %v3070_v19 = vpop.permute.xlu0 %3069 }
0x1bb0   :  { %v3108_v37 = vmul.f32 %v3075_v58, %v6734_v7  ;;  %v4576_v22 = vrot.slane %v3075_v58, %v5410_v50  ;;  %v3107_v29 = vmul.f32 %v3070_v19, %v6735_v1  ;;  %v4572_v40 = vrot.slane %v3070_v19, %v5410_v50 }
0x1bb2   :  { %v3121_v30 = vrot.slane %v3108_v37, 4  ;;  %v4642_v7 = vsel %vm3744_vm15, %v6771_v0, %v4576_v22  ;;  %v3115_v13 = vrot.slane %v3107_v29, 4  ;;  %v4641_v1 = vsel %vm3744_vm15, %v6772_v5, %v4572_v40  ;;  %v6779_v0 = vld [vmem:[#allocation36_spill] sm:$0xff] }
0x1bb3   :  { %4651 = vst.msk [vmem:[%s6625_s10 + $0x8] sm:$0x3f] %vm4649_vm0, %v4642_v7  ;;  %4650 = vst.msk [vmem:[%s6625_s10] sm:$0x3f] %vm4649_vm0, %v4641_v1  ;;  %v3080_v17 = vpop.permute.xlu1 %3079  ;;  %v3085_v27 = vpop.permute.xlu0 %3084 }
0x1bb4   :  { %v3122_v21 = vadd.f32 %v3121_v30, %v3108_v37  ;;  %v3116_v61 = vadd.f32 %v3115_v13, %v3107_v29  ;;  %v3109_v3 = vmul.f32 %v3080_v17, %v6774_v24  ;;  %v4580_v47 = vrot.slane %v3080_v17, %v5410_v50  ;;  %v6780_v17 = vld [vmem:[#allocation15_spill] sm:$0xff] }
0x1bb5   :  { %v3110_v63 = vmul.f32 %v3085_v27, %v6775_v32  ;;  %v4584_v39 = vrot.slane %v3085_v27, %v5410_v50 }
0x1bb6   :  { %v3123_v46 = vrot.slane %v3122_v21, 2  ;;  %v3117_v2 = vrot.slane %v3116_v61, 2  ;;  %v3127_v4 = vrot.slane %v3109_v3, 4  ;;  %v4643_v56 = vsel %vm3744_vm15, %v6776_v49, %v4580_v47 }
0x1bb7   :  { %4652 = vst.msk [vmem:[%s6625_s10 + $0x10] sm:$0x3f] %vm4649_vm0, %v4643_v56  ;;  %v3133_v44 = vrot.slane %v3110_v63, 4  ;;  %v4644_v45 = vsel %vm3744_vm15, %v6220_v34, %v4584_v39  ;;  %v3090_v31 = vpop.permute.xlu1 %3089  ;;  %v3095_v62 = vpop.permute.xlu0 %3094  ;;  %v4640_v56 = vsel %vm3735_vm14, %v4632_v38, %v4560_v48 }
0x1bb8   :  { %v3124_v28 = vadd.f32 %v3123_v46, %v3122_v21  ;;  %v3118_v55 = vadd.f32 %v3117_v2, %v3116_v61  ;;  %v3128_v58 = vadd.f32 %v3127_v4, %v3109_v3  ;;  %4653 = vst.msk [vmem:[%s6625_s10 + $0x18] sm:$0x3f] %vm4649_vm0, %v4644_v45  ;;  %v3111_v19 = vmul.f32 %v3090_v31, %v6777_v35 }
0x1bb9   :  { %v3134_v37 = vadd.f32 %v3133_v44, %v3110_v63  ;;  %v4588_v22 = vrot.slane %v3090_v31, %v5410_v50  ;;  %v3112_v29 = vmul.f32 %v3095_v62, %v6760_v51  ;;  %v4592_v40 = vrot.slane %v3095_v62, %v5410_v50 }
0x1bba   :  { %v3125_v34 = vrot.slane %v3124_v28, 1  ;;  %v3119_v20 = vrot.slane %v3118_v55, 1  ;;  %v3129_v15 = vrot.slane %v3128_v58, 2  ;;  %v3139_v26 = vrot.slane %v3111_v19, 4 }
0x1bbb   :  { %v3135_v43 = vrot.slane %v3134_v37, 2  ;;  %v4645_v57 = vsel %vm3744_vm15, %v6778_v54, %v4588_v22  ;;  %v3145_v30 = vrot.slane %v3112_v29, 4  ;;  %v4646_v7 = vsel %vm3744_vm15, %v6779_v0, %v4592_v40  ;;  %v3100_v13 = vpop.permute.xlu1 %3099  ;;  %v3105_v5 = vpop.permute.xlu0 %3104 }
0x1bbc   :  { %v3126_v1 = vadd.f32 %v3125_v34, %v3124_v28  ;;  %v3120_v33 = vadd.f32 %v3119_v20, %v3118_v55  ;;  %v3130_v52 = vadd.f32 %v3129_v15, %v3128_v58  ;;  %v3140_v51 = vadd.f32 %v3139_v26, %v3111_v19  ;;  %4654 = vst.msk [vmem:[%s6625_s10 + $0x20] sm:$0x3f] %vm4649_vm0, %v4645_v57  ;;  %v5115_v57 = vld [vmem:[%s6621_s6 + $0x1] ss:$0 sm:$0xff] }
0x1bbd   :  { %4655 = vst.msk [vmem:[%s6625_s10 + $0x28] sm:$0x3f] %vm4649_vm0, %v4646_v7  ;;  %v3136_v14 = vadd.f32 %v3135_v43, %v3134_v37  ;;  %v3146_v10 = vadd.f32 %v3145_v30, %v3112_v29  ;;  %v3113_v27 = vmul.f32 %v3100_v13, %v6780_v17  ;;  %v4596_v21 = vrot.slane %v3100_v13, %v5410_v50  ;;  %v107_v17 = vld [vmem:[%s6622_s7] sm:$0xff] }
0x1bbe   :  { %v3171_v61 = vsel %vm128_vm1, %v3126_v1, %v3120_v33  ;;  %v3131_v24 = vrot.slane %v3130_v52, 1  ;;  %v3141_v3 = vrot.slane %v3140_v51, 2  ;;  %v3114_v47 = vmul.f32 %v3105_v5, %v5350_v11 }
0x1bbf   :  { %v3137_v6 = vrot.slane %v3136_v14, 1  ;;  %v3147_v32 = vrot.slane %v3146_v10, 2  ;;  %v3151_v63 = vrot.slane %v3113_v27, 4  ;;  %v4647_v39 = vsel %vm3744_vm15, %v4639_v8, %v4596_v21  ;;  %v109_v21 = vld [vmem:[%s6622_s7 + $0x10] sm:$0xff] }
0x1bc0   :  { %v3132_v46 = vadd.f32 %v3131_v24, %v3130_v52  ;;  %v3142_v2 = vadd.f32 %v3141_v3, %v3140_v51  ;;  %4656 = vst.msk [vmem:[%s6625_s10 + $0x30] sm:$0x3f] %vm4649_vm0, %v4647_v39  ;;  %v3157_v4 = vrot.slane %v3114_v47, 4  ;;  %v4600_v49 = vrot.slane %v3105_v5, %v5410_v50 }
0x1bc1   :  { %v3138_v44 = vadd.f32 %v3137_v6, %v3136_v14  ;;  %v3148_v45 = vadd.f32 %v3147_v32, %v3146_v10  ;;  %v3152_v11 = vadd.f32 %v3151_v63, %v3113_v27  ;;  %v108_v27 = vld [vmem:[%s6622_s7 + $0x8] sm:$0xff]  ;;  %v5176_v3 = vmov 1983009808  }
0x1bc2   :  { %v3172_v31 = vsel %vm131_vm2, %v3132_v46, %v3171_v61  ;;  %v3143_v62 = vrot.slane %v3142_v2, 1  ;;  %v3158_v28 = vadd.f32 %v3157_v4, %v3114_v47  ;;  %v4648_v8 = vsel %vm3744_vm15, %v4640_v56, %v4600_v49 }
0x1bc3   :  { %v3173_v55 = vsel %vm134_vm3, %v3138_v44, %v3172_v31  ;;  %v3149_v58 = vrot.slane %v3148_v45, 1  ;;  %v3153_v35 = vrot.slane %v3152_v11, 2  ;;  %4657 = vst.msk [vmem:[%s6625_s10 + $0x38] sm:$0x3f] %vm4649_vm0, %v4648_v8  ;;  %v4831_v61 = vpack.c.bf16 %v108_v27, %v107_v17  ;;  %v6781_v31 = vld [vmem:[#allocation18_spill] sm:$0xff] }
0x1bc4   :  { %v3144_v50 = vadd.f32 %v3143_v62, %v3142_v2  ;;  %v3159_v38 = vrot.slane %v3158_v28, 2  ;;  %v3763_v47 = vunpack.c.l.s4 %v5176_v3  ;;  %vm4360_vm1 = vcmask 29696  }
0x1bc5   :  { %v3150_v48 = vadd.f32 %v3149_v58, %v3148_v45  ;;  %v3154_v19 = vadd.f32 %v3153_v35, %v3152_v11  ;;  %4832 = vmatprep.subr.bf16.mxu1 %v4831_v61 }
0x1bc6   :  { %v3174_v37 = vsel %vm137_vm4, %v3144_v50, %v3173_v55  ;;  %v3160_v22 = vadd.f32 %v3159_v38, %v3158_v28  ;;  %4834 = vmatpush3.bf16.msra.mxu1 %v4831_v61  ;;  %v3764_v46 = vunpack.c.0.s8 %v3763_v47 }
0x1bc7   :  { %v3175_v29 = vsel %vm140_vm5, %v3150_v48, %v3174_v37  ;;  %v3155_v40 = vrot.slane %v3154_v19, 1 }
0x1bc8   :  { %v3161_v34 = vrot.slane %v3160_v22, 1  ;;  %v6485_v62 = vsub.s32 %v3764_v46, %v6781_v31 }
0x1bc9   :  { %v3156_v20 = vadd.f32 %v3155_v40, %v3154_v19 }
0x1bca   :  { %v3162_v15 = vadd.f32 %v3161_v34, %v3160_v22 }
0x1bcb   :  { %v3176_v26 = vsel %vm143_vm6, %v3156_v20, %v3175_v29 }
0x1bcc   :  { %v3177_v43 = vsel %vm145_vm7, %v3162_v15, %v3176_v26 }
0x1bcd   :  { %v3179_v54 = vadd.f32 %v3177_v43, %v6298_v36 }
0x1bcf   :  { %v3180_v30 = vadd.f32 %v5115_v57, %v3179_v54 }
0x1bd1   :  { %5104 = vtanh.f32 %v3180_v30  ;;  %v4693_v7 = vmul.f32 -1.442695, %v3180_v30 }
0x1bd3   :  { %5106 = vpow2.f32 %v4693_v7 }
0x1bdb   :  { %v5105_v0 = vpop.eup %5104 }
0x1bdc   :  { %3190 = vrot.lane.b32.xlu1 %v5105_v0, %s5174_s28 }
0x1bdd   :  { %v5107_v13 = vpop.eup %5106 }
0x1bde   :  { %v3184_v5 = vadd.f32 1.0, %v5107_v13 }
0x1be0   :  { %5108 = vrcp.f32 %v3184_v5 }
0x1bea   :  { %v5109_v1 = vpop.eup %5108 }
0x1beb   :  { %v3188_v36 = vmul.f32 %v5109_v1, %v6244_v16  ;;  %v110_v16 = vld [vmem:[%s6622_s7 + $0x18] sm:$0xff] }
0x1bec   :  { %v4835_v24 = vpack.c.bf16 %v110_v16, %v109_v21 }
0x1bee   :  { %4836 = vmatprep.subr.bf16.mxu1 %v4835_v24 }
0x1bef   :  { %4838 = vmatpush3.bf16.msra.mxu1 %v4835_v24 }
0x1c4e   :  { %v3191_v33 = vpop.permute.xlu1 %3190 }
0x1c4f   :  { %v3193_v52 = vmul.f32 %v5109_v1, %v3191_v33 }
0x1c51   :  { %3195 = vrot.lane.b32.xlu0 %v3193_v52, %s5175_s29 }
0x1cc3   :  { %v3196_v51 = vpop.permute.xlu0 %3195 }
0x1cc4   :  { %v3198_v14 = vadd.f32 %v3196_v51, %v3188_v36 }
0x1cc6   :  { %5110 = vtanh.f32 %v3198_v14 }
0x1cd0   :  { %v5111_v10 = vpop.eup %5110 }
0x1cd1   :  { %3201 = vrot.lane.b32.xlu1 %v5111_v10, %s5174_s28 }
0x1d43   :  { %v3202_v6 = vpop.permute.xlu1 %3201 }
0x1d44   :  { %v3204_v32 = vmul.f32 %v5109_v1, %v3202_v6 }
0x1d46   :  { %v3459_v63 = vcombine.high %v3204_v32, %v3204_v32  ;;  %v3466_v39 = vrot.slane %v3204_v32, %v5358_v18 }
0x1d48   :  { %v3473_v2 = vrot.slane %v3459_v63, %v5358_v18  ;;  %v3474_v4 = vcombine.high %v3466_v39, %v3466_v39  ;;  %v3482_v49 = vrot.slane %v3466_v39, %v5358_v18 }
0x1d4a   :  { %v3475_v56 = vcombine.high %v3473_v2, %v3473_v2  ;;  %v3489_v44 = vrot.slane %v3473_v2, %v5358_v18  ;;  %v3496_v45 = vrot.slane %v3474_v4, %v5358_v18  ;;  %v3504_v11 = vcombine.high %v3482_v49, %v3482_v49 }
0x1d4b   :  { %v3671_v28 = vrot.slane %v3482_v49, %v5364_v23 }
0x1d4c   :  { %v3503_v8 = vrot.slane %v3475_v56, %v5358_v18  ;;  %v3505_v55 = vcombine.high %v3489_v44, %v3489_v44  ;;  %v3506_v58 = vcombine.high %v3496_v45, %v3496_v45  ;;  %v3675_v35 = vrot.slane %v3496_v45, %v5364_v23 }
0x1d4d   :  { %v3679_v50 = vrot.slane %v3504_v11, %v5364_v23  ;;  %v3687_v38 = vrot.slane %v3489_v44, %v5364_v23  ;;  %v3745_v48 = vsel %vm3744_vm15, %v6261_v9, %v3671_v28 }
0x1d4e   :  { %v3507_v19 = vcombine.high %v3503_v8, %v3503_v8  ;;  %v3683_v37 = vrot.slane %v3506_v58, %v5364_v23  ;;  %v3691_v22 = vrot.slane %v3503_v8, %v5364_v23  ;;  %v3695_v29 = vrot.slane %v3505_v55, %v5364_v23 }
0x1d4f   :  { %v3746_v18 = vsel %vm3744_vm15, %v6268_v25, %v3675_v35  ;;  %v3747_v40 = vsel %vm3744_vm15, %v6272_v59, %v3679_v50  ;;  %v3749_v34 = vsel %vm3744_vm15, %v6276_v60, %v3687_v38  ;;  %v3761_v20 = vcombine.high %v3745_v48, %v3745_v48 }
0x1d50   :  { %v3699_v15 = vrot.slane %v3507_v19, %v5364_v23  ;;  %v3768_v9 = vrot.slane %v3745_v48, %v6485_v62  ;;  %v3777_v26 = vcombine.high %v3746_v18, %v3746_v18  ;;  %v3793_v43 = vcombine.high %v3747_v40, %v3747_v40 }
0x1d51   :  { %v3825_v54 = vcombine.high %v3749_v34, %v3749_v34  ;;  %v3775_v57 = vrot.slane %v3761_v20, %v6485_v62  ;;  %v3784_v30 = vrot.slane %v3746_v18, %v6485_v62  ;;  %v3800_v25 = vrot.slane %v3747_v40, %v6485_v62 }
0x1d52   :  { %v3776_v0 = vcombine.high %v3768_v9, %v3768_v9  ;;  %v3791_v59 = vrot.slane %v3777_v26, %v6485_v62  ;;  %v3748_v60 = vsel %vm3744_vm15, %v6281_v42, %v3683_v37  ;;  %v3807_v7 = vrot.slane %v3793_v43, %v6485_v62 }
0x1d53   :  { %v3896_v23 = vcombine.low %v3775_v57, %v3784_v30  ;;  %v3792_v13 = vcombine.high %v3784_v30, %v3784_v30  ;;  %v3808_v5 = vcombine.high %v3800_v25, %v3800_v25  ;;  %v3809_v1 = vcombine.high %v3748_v60, %v3748_v60 }
0x1d54   :  { %v3895_v33 = vcombine.low %v3768_v9, %v3776_v0  ;;  %v3816_v52 = vrot.slane %v3748_v60, %v6485_v62  ;;  %v3750_v36 = vsel %vm3744_vm15, %v6285_v12, %v3691_v22  ;;  %v3832_v51 = vrot.slane %v3749_v34, %v6485_v62 }
0x1d55   :  { %v3910_v14 = vrot.slane %v3896_v23, %v6485_v62  ;;  %v3912_v10 = vcombine.low %v3792_v13, %v3791_v59  ;;  %v3913_v17 = vcombine.low %v3800_v25, %v3808_v5  ;;  %v3823_v42 = vrot.slane %v3809_v1, %v6485_v62  ;;  %v4694_v59 = vld [vmem:[%s6623_s8] ss:$0 sm:$0xff] }
0x1d56   :  { %v3903_v27 = vrot.slane %v3895_v33, %v6485_v62  ;;  %v3824_v21 = vcombine.high %v3816_v52, %v3816_v52  ;;  %v3929_v61 = vcombine.low %v3807_v7, %v3816_v52  ;;  %v3839_v16 = vrot.slane %v3825_v54, %v6485_v62 }
0x1d57   :  { %v3920_v24 = vrot.slane %v3912_v10, %v6485_v62  ;;  %v3927_v3 = vrot.slane %v3913_v17, %v6485_v62  ;;  %v3840_v47 = vcombine.high %v3832_v51, %v3832_v51  ;;  %v3848_v12 = vrot.slane %v3750_v36, %v6485_v62 }
0x1d58   :  { %v3911_v6 = vcombine.low %v3903_v27, %v3910_v14  ;;  %v3930_v32 = vcombine.low %v3824_v21, %v3823_v42  ;;  %v3937_v63 = vrot.slane %v3929_v61, %v6485_v62  ;;  %v3751_v39 = vsel %vm3744_vm15, %v6289_v41, %v3695_v29 }
0x1d59   :  { %v3928_v46 = vcombine.low %v3920_v24, %v3927_v3  ;;  %v3946_v2 = vcombine.low %v3832_v51, %v3840_v47  ;;  %v3947_v4 = vcombine.low %v3839_v16, %v3848_v12  ;;  %v3841_v49 = vcombine.high %v3750_v36, %v3750_v36 }
0x1d5a   :  { %3997 = vrot.lane.b32.xlu0 %v3911_v6, %s5175_s29  ;;  %v3944_v56 = vrot.slane %v3930_v32, %v6485_v62  ;;  %v3856_v44 = vcombine.high %v3848_v12, %v3848_v12  ;;  %v3864_v45 = vrot.slane %v3751_v39, %v6485_v62  ;;  %v3752_v11 = vsel %vm3744_vm15, %v6293_v53, %v3699_v15 }
0x1d5b   :  { %3999 = vrot.lane.b32.xlu1 %v3928_v46, %s5175_s29  ;;  %v3954_v31 = vrot.slane %v3946_v2, %v6485_v62  ;;  %v3961_v41 = vrot.slane %v3947_v4, %v6485_v62  ;;  %v3855_v28 = vrot.slane %v3841_v49, %v6485_v62  ;;  %v3857_v8 = vcombine.high %v3751_v39, %v3751_v39 }
0x1d5c   :  { %v3945_v55 = vcombine.low %v3937_v63, %v3944_v56  ;;  %v3872_v58 = vcombine.high %v3864_v45, %v3864_v45  ;;  %v3873_v35 = vcombine.high %v3752_v11, %v3752_v11  ;;  %v3880_v50 = vrot.slane %v3752_v11, %v6485_v62 }
0x1d5d   :  { %v3962_v38 = vcombine.low %v3954_v31, %v3961_v41  ;;  %v3963_v48 = vcombine.low %v3856_v44, %v3855_v28  ;;  %v3871_v19 = vrot.slane %v3857_v8, %v6485_v62 }
0x1d5e   :  { %4001 = vrot.lane.b32.xlu0 %v3945_v55, %s5175_s29  ;;  %v3964_v53 = vcombine.low %v3864_v45, %v3872_v58  ;;  %v3887_v37 = vrot.slane %v3873_v35, %v6485_v62  ;;  %v3888_v22 = vcombine.high %v3880_v50, %v3880_v50 }
0x1d5f   :  { %4003 = vrot.lane.b32.xlu1 %v3962_v38, %s5175_s29  ;;  %v3971_v29 = vrot.slane %v3963_v48, %v6485_v62  ;;  %v3980_v18 = vcombine.low %v3871_v19, %v3880_v50 }
0x1d60   :  { %v3978_v40 = vrot.slane %v3964_v53, %v6485_v62  ;;  %v3981_v34 = vcombine.low %v3888_v22, %v3887_v37 }
0x1d61   :  { %v3988_v15 = vrot.slane %v3980_v18, %v6485_v62 }
0x1d62   :  { %v3979_v20 = vcombine.low %v3971_v29, %v3978_v40  ;;  %v3995_v9 = vrot.slane %v3981_v34, %v6485_v62 }
0x1d64   :  { %4005 = vrot.lane.b32.xlu0 %v3979_v20, %s5175_s29  ;;  %v3996_v26 = vcombine.low %v3988_v15, %v3995_v9 }
0x1d66   :  { %4007 = vrot.lane.b32.xlu1 %v3996_v26, %s5175_s29 }
0x1dcc   :  { %v3998_v43 = vpop.permute.xlu0 %3997 }
0x1dcd   :  { %4726 = vmatprep.mubr.msk.f32.mxu1 %vm373_vm9, %v3998_v43  ;;  %v4000_v54 = vpop.permute.xlu1 %3999 }
0x1dce   :  { %4727 = vmatmul.mubr.msk.f32.vlgmr.msra.gmra.mrb[20].mxu1 %vm373_vm9, %v4000_v54 }
0x1dd0   :  { %v4002_v57 = vpop.permute.xlu0 %4001 }
0x1dd1   :  { %4729 = vmatprep.mubr.msk.f32.mxu1 %vm373_vm9, %v4002_v57  ;;  %v4004_v30 = vpop.permute.xlu1 %4003 }
0x1dd2   :  { %4730 = vmatmul.mubr.msk.f32.gmra.mrb[22].mxu1 %vm373_vm9, %v4004_v30 }
0x1dd6   :  { %v4006_v25 = vpop.permute.xlu0 %4005 }
0x1dd7   :  { %4732 = vmatprep.mubr.msk.f32.mxu1 %vm373_vm9, %v4006_v25 }
0x1dd8   :  { %v4008_v0 = vpop.permute.xlu1 %4007 }
0x1dd9   :  { %4733 = vmatmul.mubr.msk.f32.gmra.mrb[24].mxu1 %vm373_vm9, %v4008_v0 }
0x1ea1   :  { %v4728_v60 = vpop.f32.mrb[20].mxu1 }
0x1ea2   :  { %v4093_v7 = vadd.f32 %v4728_v60, %v4694_v59  ;;  %v4087_v23 = vpop.f32.mrb[21].mxu1 }
0x1ea3   :  { %v4088_v13 = vadd.f32 %v4694_v59, %v4087_v23 }
0x1ea4   :  { %v4139_v5 = vcombine.high %v4093_v7, %v4093_v7  ;;  %v4146_v1 = vrot.slane %v4093_v7, %v6485_v62 }
0x1ea5   :  { %v4122_v33 = vcombine.high %v4088_v13, %v4088_v13  ;;  %v4129_v52 = vrot.slane %v4088_v13, %v6485_v62  ;;  %v4731_v36 = vpop.f32.mrb[22].mxu1 }
0x1ea6   :  { %v4153_v51 = vrot.slane %v4139_v5, %v6485_v62  ;;  %v4154_v14 = vcombine.high %v4146_v1, %v4146_v1  ;;  %v4103_v10 = vadd.f32 %v4731_v36, %v4694_v59  ;;  %v4097_v17 = vpop.f32.mrb[23].mxu1 }
0x1ea7   :  { %v4136_v42 = vrot.slane %v4122_v33, %v6485_v62  ;;  %v4137_v27 = vcombine.high %v4129_v52, %v4129_v52  ;;  %v4098_v21 = vadd.f32 %v4694_v59, %v4097_v17 }
0x1ea8   :  { %v4155_v61 = vcombine.high %v4153_v51, %v4153_v51  ;;  %v4173_v16 = vcombine.high %v4103_v10, %v4103_v10  ;;  %v4180_v24 = vrot.slane %v4103_v10, %v6485_v62  ;;  %v4254_v3 = vrot.slane %v4154_v14, %v6485_v62 }
0x1ea9   :  { %v4138_v47 = vcombine.high %v4136_v42, %v4136_v42  ;;  %v4224_v12 = vcombine.low %v4129_v52, %v4137_v27  ;;  %v4156_v6 = vcombine.high %v4098_v21, %v4098_v21  ;;  %v4163_v46 = vrot.slane %v4098_v21, %v6485_v62 }
0x1eaa   :  { %v4256_v32 = vcombine.low %v4153_v51, %v4155_v61  ;;  %v4187_v63 = vrot.slane %v4173_v16, %v6485_v62  ;;  %v4188_v39 = vcombine.high %v4180_v24, %v4180_v24  ;;  %v4238_v4 = vrot.slane %v4136_v42, %v6485_v62 }
0x1eab   :  { %v4231_v2 = vrot.slane %v4224_v12, %v6485_v62  ;;  %v4240_v49 = vcombine.low %v4138_v47, %v4146_v1  ;;  %v4170_v56 = vrot.slane %v4156_v6, %v6485_v62  ;;  %v4171_v11 = vcombine.high %v4163_v46, %v4163_v46 }
0x1eac   :  { %v4288_v44 = vcombine.low %v4180_v24, %v4188_v39  ;;  %v4302_v45 = vrot.slane %v4187_v63, %v6485_v62  ;;  %v4263_v31 = vrot.slane %v4256_v32, %v6485_v62  ;;  %v4734_v41 = vpop.f32.mrb[24].mxu1  ;;  %v4270_v58 = vrot.slane %v4163_v46, %v6485_v62 }
0x1ead   :  { %v4239_v28 = vcombine.low %v4231_v2, %v4238_v4  ;;  %v4247_v8 = vrot.slane %v4240_v49, %v6485_v62  ;;  %v4172_v55 = vcombine.high %v4170_v56, %v4170_v56  ;;  %v4107_v35 = vpop.f32.mrb[25].mxu1  ;;  %v4272_v38 = vcombine.low %v4171_v11, %v4170_v56 }
0x1eae   :  { %v4295_v50 = vrot.slane %v4288_v44, %v6485_v62  ;;  %v4113_v48 = vadd.f32 %v4734_v41, %v4694_v59  ;;  %v4108_v19 = vadd.f32 %v4694_v59, %v4107_v35  ;;  %v4271_v37 = vcombine.low %v4263_v31, %v4270_v58 }
0x1eaf   :  { %v4255_v53 = vcombine.low %v4247_v8, %v4254_v3  ;;  %4361 = vst.msk [vmem:[%s6624_s9] sm:$0x3f] %vm4360_vm1, %v4239_v28  ;;  %v4286_v22 = vrot.slane %v4172_v55, %v6485_v62  ;;  %v4189_v29 = vcombine.high %v4187_v63, %v4187_v63  ;;  %v4279_v40 = vrot.slane %v4272_v38, %v6485_v62 }
0x1eb0   :  { %v4303_v18 = vcombine.low %v4295_v50, %v4302_v45  ;;  %v4207_v34 = vcombine.high %v4113_v48, %v4113_v48  ;;  %v4214_v20 = vrot.slane %v4113_v48, %v6485_v62  ;;  %4363 = vst.msk [vmem:[%s6624_s9 + $0x10] sm:$0x3f] %vm4360_vm1, %v4271_v37  ;;  %v4190_v15 = vcombine.high %v4108_v19, %v4108_v19 }
0x1eb1   :  { %4362 = vst.msk [vmem:[%s6624_s9 + $0x8] sm:$0x3f] %vm4360_vm1, %v4255_v53  ;;  %v4197_v9 = vrot.slane %v4108_v19, %v6485_v62  ;;  %v4287_v26 = vcombine.low %v4279_v40, %v4286_v22 }
0x1eb2   :  { %4365 = vst.msk [vmem:[%s6624_s9 + $0x20] sm:$0x3f] %vm4360_vm1, %v4303_v18  ;;  %v4221_v43 = vrot.slane %v4207_v34, %v6485_v62  ;;  %v4222_v54 = vcombine.high %v4214_v20, %v4214_v20  ;;  %v4204_v57 = vrot.slane %v4190_v15, %v6485_v62  ;;  %v4334_v36 = vrot.slane %v4214_v20, %v6485_v62 }
0x1eb3   :  { %v4205_v30 = vcombine.high %v4197_v9, %v4197_v9  ;;  %v4304_v25 = vcombine.low %v4189_v29, %v4197_v9  ;;  %4364 = vst.msk [vmem:[%s6624_s9 + $0x18] sm:$0x3f] %vm4360_vm1, %v4287_v26 }
0x1eb4   :  { %v4223_v0 = vcombine.high %v4221_v43, %v4221_v43  ;;  %v4336_v59 = vcombine.low %v4222_v54, %v4221_v43  ;;  %v4206_v60 = vcombine.high %v4204_v57, %v4204_v57 }
0x1eb5   :  { %v4311_v7 = vrot.slane %v4304_v25, %v6485_v62  ;;  %v4318_v23 = vrot.slane %v4205_v30, %v6485_v62 }
0x1eb6   :  { %v4343_v13 = vrot.slane %v4336_v59, %v6485_v62  ;;  %v4350_v5 = vrot.slane %v4223_v0, %v6485_v62  ;;  %v4320_v33 = vcombine.low %v4204_v57, %v4206_v60 }
0x1eb7   :  { %v4319_v1 = vcombine.low %v4311_v7, %v4318_v23 }
0x1eb8   :  { %v4351_v52 = vcombine.low %v4343_v13, %v4350_v5  ;;  %v4327_v51 = vrot.slane %v4320_v33, %v6485_v62 }
0x1eb9   :  { %4366 = vst.msk [vmem:[%s6624_s9 + $0x28] sm:$0x3f] %vm4360_vm1, %v4319_v1 }
0x1eba   :  { %4368 = vst.msk [vmem:[%s6624_s9 + $0x38] sm:$0x3f] %vm4360_vm1, %v4351_v52  ;;  %v4335_v14 = vcombine.low %v4327_v51, %v4334_v36 }
0x1ebc   :  { %4367 = vst.msk [vmem:[%s6624_s9 + $0x30] sm:$0x3f] %vm4360_vm1, %v4335_v14 }
0x1ebd   :  { %4666 = vsyncpa [#allocation3], 1 }
0x1ebe   :  { %4667 = vsyncpa [#allocation5], 1 }

</bundles_post_ra>
